<compile_context>
chip_gen: v6e
topology: v6e:2x2x1
jax: 0.10.0
libtpu: 0.0.40
codegen_flags: <defaults>
</compile_context>

<pallas_src>
import functools

import jax
import jax.numpy as jnp
from jax.experimental import pallas as pl
from jax.experimental.pallas import tpu as pltpu


# ----------------------------------------------------------------------------
# Kernel: fused encoder -> (folded seam) -> decoder -> (folded fused head).
# All weights (~0.9 MiB bf16) are fully VMEM-resident; one batch tile per step.
# ----------------------------------------------------------------------------
def ae_kernel(x_ref,
              w1, b1, w2, b2, w3, b3,       # encoder 512->256->256->128
              wm, bm,                       # folded enc4 @ dec1   (128->128)
              w5, b5, w6, b6,               # decoder 128->256->256
              wh, bh,                       # folded dec4 @ [cls|reg] (256->head_pad)
              out_ref,
              *, relu_bf16):

    def lin_relu(h, w_ref, b_ref):
        # bf16 x bf16 MXU matmul with f32 accumulation; bias add in f32 (VPU).
        y = jnp.dot(h, w_ref[...], preferred_element_type=jnp.float32) + b_ref[...]
        if relu_bf16:
            # v6e/v7x: downcast first, ReLU in bf16 (2 elems/lane; commutes with cast).
            return jnp.maximum(y.astype(jnp.bfloat16), jnp.bfloat16(0))
        # v5e: no bf16 VALU -> ReLU in f32, then cast for the next MXU matmul.
        return jnp.maximum(y, 0.0).astype(jnp.bfloat16)

    h = x_ref[...]                      # bf16 input tile (tb, 512)
    h = lin_relu(h, w1, b1)             # 512 -> 256
    h = lin_relu(h, w2, b2)             # 256 -> 256
    h = lin_relu(h, w3, b3)             # 256 -> 128
    h = lin_relu(h, wm, bm)             # 128 -> 128   (folded enc4 @ dec1)
    h = lin_relu(h, w5, b5)             # 128 -> 256
    h = lin_relu(h, w6, b6)             # 256 -> 256
    # folded dec4 @ [classification | regression]: lane-dense f32 store.
    out_ref[...] = (jnp.dot(h, wh[...], preferred_element_type=jnp.float32)
                    + bh[...]).astype(out_ref.dtype)


# ----------------------------------------------------------------------------
# Batch-tile heuristic (per TPU generation).
# ----------------------------------------------------------------------------
def _pick_tb(B, device_kind):
    kind = (device_kind or "").lower()
    dual_core = "v7" in kind            # v7x: 2 TensorCores per chip
    cap = 512                           # keeps f32 temporaries well inside VMEM (v7x: 64 MiB phys)
    if dual_core:
        # >=2 grid steps so both cores get work; >=2 steps per core when B allows.
        want = B // 4 if B >= 4 * 256 else max(16, B // 2)
        tb = min(cap, want)
    else:
        # single TensorCore (v5e/v6e): biggest tile; extra steps only add overhead.
        tb = min(cap, B)
    # MXU-friendly alignment of the M dimension.
    if tb >= 256:
        tb = (tb // 256) * 256
    elif tb >= 128:
        tb = 128
    else:
        tb = max(16, (tb // 16) * 16)   # bf16 sublane packing
    return tb


# ----------------------------------------------------------------------------
# Wrapper
# ----------------------------------------------------------------------------
def ae_forward(x, params, class_cnt, regression_out_dim, *, tb=None):
    """params: flat f32 list [W, b] x 10 layers (enc x4, dec x4, cls, reg).
    W[i]: (fan_in, fan_out); b[i]: (fan_out,) or (1, fan_out)."""
    B, D = x.shape
    assert D == 512

    head_dim = class_cnt + regression_out_dim
    head_pad = max(128, ((head_dim + 127) // 128) * 128)   # lane-dense output

    # --- parameter prep (all folding in f32, single cast to bf16) ------------
    W = [params[2 * i] for i in range(10)]
    b = [jnp.reshape(params[2 * i + 1], (1, -1)).astype(jnp.float32)
         for i in range(10)]

    # fused [classification | regression] head, padded to a 128 multiple.
    wh_full = jnp.pad(jnp.concatenate([W[8], W[9]], axis=1),
                      ((0, 0), (0, head_pad - head_dim)))
    bh_full = jnp.pad(jnp.concatenate([b[8], b[9]], axis=1),
                      ((0, 0), (0, head_pad - head_dim)))

    # fold the two ReLU-free seams.
    w_mid = W[3] @ W[4]                      # (128, 128)  enc4 -> dec1
    b_mid = b[3] @ W[4] + b[4]
    w_head = W[7] @ wh_full                  # (256, head_pad)  dec4 -> heads
    b_head = b[7] @ wh_full + bh_full

    folded = [(W[0], b[0]), (W[1], b[1]), (W[2], b[2]),
              (w_mid, b_mid), (W[5], b[5]), (W[6], b[6]),
              (w_head, b_head)]
    kernel_params = []
    for w_, b_ in folded:
        kernel_params.append(w_.astype(jnp.bfloat16))   # bf16 MXU weight
        kernel_params.append(b_)                         # f32 bias

    # --- batch tiling ---------------------------------------------------------
    try:
        device_kind = jax.devices()[0].device_kind
    except Exception:
        device_kind = ""
    if tb is None:
        tb = _pick_tb(B, device_kind)
    Bp = ((B + tb - 1) // tb) * tb

    xb = x.astype(jnp.bfloat16)              # halve the dominant HBM stream
    if Bp != B:
        xb = jnp.pad(xb, ((0, Bp - B), (0, 0)))
    grid = (Bp // tb,)

    in_specs = [pl.BlockSpec((tb, D), lambda i: (i, 0))]
    for p in kernel_params:
        # Constant index_map: DMA'd once, VMEM-resident across all grid steps.
        in_specs.append(pl.BlockSpec(p.shape, lambda i: (0, 0)))

    out_spec = pl.BlockSpec((tb, head_pad), lambda i: (i, 0))
    out_shape = jax.ShapeDtypeStruct((Bp, head_pad), jnp.float32)

    relu_bf16 = "v5" not in device_kind.lower()
    kernel = functools.partial(ae_kernel, relu_bf16=relu_bf16)

    # VMEM budget at tb=512: x bf16 2x0.5 MiB, out f32 2x0.25 MiB, weights bf16
    # 2x~0.9 MiB, plus a few (tb,256/512) temporaries -> comfortably within the
    # default scoped VMEM limit on v5e (16 MiB), v6e (32 MiB) and v7x (32 MiB).
    fused = pl.pallas_call(
        kernel,
        out_shape=out_shape,
        grid_spec=pltpu.PrefetchScalarGridSpec(
            num_scalar_prefetch=0,
            grid=grid,
            in_specs=in_specs,
            out_specs=out_spec,
        ),
        compiler_params=pltpu.CompilerParams(
            dimension_semantics=("parallel",),
        ),
    )(xb, *kernel_params)

    cls_out = fused[:B, :class_cnt]
    reg_out = fused[:B, class_cnt:head_dim]
    return cls_out, reg_out


# ----------------------------------------------------------------------------
# Deterministic parameter construction (synthetic; no checkpoint loading).
# ----------------------------------------------------------------------------
def make_params(key, class_cnt, regression_out_dim):
    layer_dims = [
        (512, 256), (256, 256), (256, 128), (128, 128),   # encoder
        (128, 128), (128, 256), (256, 256), (256, 512),   # decoder
        (512, class_cnt),                                  # classification head
        (512, regression_out_dim),                         # regression head
    ]
    params = []
    for (fan_in, fan_out) in layer_dims:
        key, kw, kb = jax.random.split(key, 3)
        bound = 1.0 / jnp.sqrt(fan_in)
        w = jax.random.uniform(kw, (fan_in, fan_out), jnp.float32, -bound, bound)
        b = jax.random.uniform(kb, (1, fan_out), jnp.float32, -bound, bound)
        params.append(w)
        params.append(b)
    return params


def ae_reference(x, params):
    """Pure-f32 JAX reference with the original (unfolded) PyTorch layer order."""
    relu = lambda v: jnp.maximum(v, 0.0)
    W = [params[2 * i] for i in range(10)]
    b = [jnp.reshape(params[2 * i + 1], (1, -1)) for i in range(10)]

    h = x
    h = relu(h @ W[0] + b[0])
    h = relu(h @ W[1] + b[1])
    h = relu(h @ W[2] + b[2])
    enc = h @ W[3] + b[3]
    h = relu(enc @ W[4] + b[4])
    h = relu(h @ W[5] + b[5])
    h = relu(h @ W[6] + b[6])
    dec = h @ W[7] + b[7]
    return dec @ W[8] + b[8], dec @ W[9] + b[9]


if __name__ == "__main__":
    class_cnt = 10
    regression_out_dim = 3
    batch = 256   # multi-step grid on v7x (tb=128, grid=2); single big tile on v5e/v6e

    key = jax.random.PRNGKey(0)
    key, kx = jax.random.split(key)
    x = jax.random.normal(kx, (batch, 512), jnp.float32)

    params = make_params(key, class_cnt, regression_out_dim)

    cls_out, reg_out = ae_forward(x, params, class_cnt, regression_out_dim)
    cls_out = jax.block_until_ready(cls_out)
    reg_out = jax.block_until_ready(reg_out)

    cls_ref, reg_ref = ae_reference(x, params)
    assert cls_out.shape == (batch, class_cnt)
    assert reg_out.shape == (batch, regression_out_dim)
    # bf16 weights/activations vs pure-f32 reference -> a few % relative error.
    assert jnp.allclose(cls_out, cls_ref, atol=5e-2, rtol=5e-2)
    assert jnp.allclose(reg_out, reg_ref, atol=5e-2, rtol=5e-2)

    print("KERNEL_OK")
</pallas_src>

<mosaic_0001>
module attributes {stable_mosaic.version = 11 : i64} {
  func.func @ae_kernel(%arg0: i32, %arg1: memref<256x512xbf16, #tpu.memory_space<vmem>>, %arg2: memref<512x256xbf16, #tpu.memory_space<vmem>>, %arg3: memref<1x256xf32, #tpu.memory_space<vmem>>, %arg4: memref<256x256xbf16, #tpu.memory_space<vmem>>, %arg5: memref<1x256xf32, #tpu.memory_space<vmem>>, %arg6: memref<256x128xbf16, #tpu.memory_space<vmem>>, %arg7: memref<1x128xf32, #tpu.memory_space<vmem>>, %arg8: memref<128x128xbf16, #tpu.memory_space<vmem>>, %arg9: memref<1x128xf32, #tpu.memory_space<vmem>>, %arg10: memref<128x256xbf16, #tpu.memory_space<vmem>>, %arg11: memref<1x256xf32, #tpu.memory_space<vmem>>, %arg12: memref<256x256xbf16, #tpu.memory_space<vmem>>, %arg13: memref<1x256xf32, #tpu.memory_space<vmem>>, %arg14: memref<256x128xbf16, #tpu.memory_space<vmem>>, %arg15: memref<1x128xf32, #tpu.memory_space<vmem>>, %arg16: memref<256x128xf32, #tpu.memory_space<vmem>>) attributes {dimension_semantics = [#tpu.dimension_semantics<parallel>], iteration_bounds = array<i64: 1>, scalar_prefetch = 0 : i64, scratch_operands = 0 : i64, tpu.core_type = #tpu.core_type<tc>, window_params = [{transform_indices = @transform_0, window_bounds = array<i64: 256, 512>}, {pipeline_mode = #tpu.pipeline_mode<synchronous>, transform_indices = @transform_1, window_bounds = array<i64: 512, 256>}, {pipeline_mode = #tpu.pipeline_mode<synchronous>, transform_indices = @transform_2, window_bounds = array<i64: 1, 256>}, {pipeline_mode = #tpu.pipeline_mode<synchronous>, transform_indices = @transform_3, window_bounds = array<i64: 256, 256>}, {pipeline_mode = #tpu.pipeline_mode<synchronous>, transform_indices = @transform_4, window_bounds = array<i64: 1, 256>}, {pipeline_mode = #tpu.pipeline_mode<synchronous>, transform_indices = @transform_5, window_bounds = array<i64: 256, 128>}, {pipeline_mode = #tpu.pipeline_mode<synchronous>, transform_indices = @transform_6, window_bounds = array<i64: 1, 128>}, {pipeline_mode = #tpu.pipeline_mode<synchronous>, transform_indices = @transform_7, window_bounds = array<i64: 128, 128>}, {pipeline_mode = #tpu.pipeline_mode<synchronous>, transform_indices = @transform_8, window_bounds = array<i64: 1, 128>}, {pipeline_mode = #tpu.pipeline_mode<synchronous>, transform_indices = @transform_9, window_bounds = array<i64: 128, 256>}, {pipeline_mode = #tpu.pipeline_mode<synchronous>, transform_indices = @transform_10, window_bounds = array<i64: 1, 256>}, {pipeline_mode = #tpu.pipeline_mode<synchronous>, transform_indices = @transform_11, window_bounds = array<i64: 256, 256>}, {pipeline_mode = #tpu.pipeline_mode<synchronous>, transform_indices = @transform_12, window_bounds = array<i64: 1, 256>}, {pipeline_mode = #tpu.pipeline_mode<synchronous>, transform_indices = @transform_13, window_bounds = array<i64: 256, 128>}, {pipeline_mode = #tpu.pipeline_mode<synchronous>, transform_indices = @transform_14, window_bounds = array<i64: 1, 128>}, {transform_indices = @transform_15, window_bounds = array<i64: 256, 128>}]} {
    %c0 = arith.constant 0 : index
    %c0_0 = arith.constant 0 : index
    %0 = vector.load %arg1[%c0, %c0_0] : memref<256x512xbf16, #tpu.memory_space<vmem>>, vector<256x512xbf16>
    %c0_1 = arith.constant 0 : index
    %c0_2 = arith.constant 0 : index
    %1 = vector.load %arg2[%c0_1, %c0_2] : memref<512x256xbf16, #tpu.memory_space<vmem>>, vector<512x256xbf16>
    %cst = arith.constant dense<0.000000e+00> : vector<256x256xf32>
    %2 = tpu.matmul %0, %1, %cst {dimension_numbers = #tpu.dot_dimension_numbers<[1], [0], [0], [1], [0, 0, 1, 1], [], []>} : vector<256x512xbf16>, vector<512x256xbf16>, vector<256x256xf32> -> vector<256x256xf32>
    %c0_3 = arith.constant 0 : index
    %c0_4 = arith.constant 0 : index
    %3 = vector.load %arg3[%c0_3, %c0_4] : memref<1x256xf32, #tpu.memory_space<vmem>>, vector<1x256xf32>
    %4 = vector.broadcast %3 : vector<1x256xf32> to vector<256x256xf32>
    %5 = arith.addf %2, %4 : vector<256x256xf32>
    %6 = arith.truncf %5 : vector<256x256xf32> to vector<256x256xbf16>
    %cst_5 = arith.constant 0.000000e+00 : bf16
    %7 = vector.broadcast %cst_5 : bf16 to vector<256x256xbf16>
    %8 = arith.maximumf %6, %7 : vector<256x256xbf16>
    %c0_6 = arith.constant 0 : index
    %c0_7 = arith.constant 0 : index
    %9 = vector.load %arg4[%c0_6, %c0_7] : memref<256x256xbf16, #tpu.memory_space<vmem>>, vector<256x256xbf16>
    %cst_8 = arith.constant dense<0.000000e+00> : vector<256x256xf32>
    %10 = tpu.matmul %8, %9, %cst_8 {dimension_numbers = #tpu.dot_dimension_numbers<[1], [0], [0], [1], [0, 0, 1, 1], [], []>} : vector<256x256xbf16>, vector<256x256xbf16>, vector<256x256xf32> -> vector<256x256xf32>
    %c0_9 = arith.constant 0 : index
    %c0_10 = arith.constant 0 : index
    %11 = vector.load %arg5[%c0_9, %c0_10] : memref<1x256xf32, #tpu.memory_space<vmem>>, vector<1x256xf32>
    %12 = vector.broadcast %11 : vector<1x256xf32> to vector<256x256xf32>
    %13 = arith.addf %10, %12 : vector<256x256xf32>
    %14 = arith.truncf %13 : vector<256x256xf32> to vector<256x256xbf16>
    %cst_11 = arith.constant 0.000000e+00 : bf16
    %15 = vector.broadcast %cst_11 : bf16 to vector<256x256xbf16>
    %16 = arith.maximumf %14, %15 : vector<256x256xbf16>
    %c0_12 = arith.constant 0 : index
    %c0_13 = arith.constant 0 : index
    %17 = vector.load %arg6[%c0_12, %c0_13] : memref<256x128xbf16, #tpu.memory_space<vmem>>, vector<256x128xbf16>
    %cst_14 = arith.constant dense<0.000000e+00> : vector<256x128xf32>
    %18 = tpu.matmul %16, %17, %cst_14 {dimension_numbers = #tpu.dot_dimension_numbers<[1], [0], [0], [1], [0, 0, 1, 1], [], []>} : vector<256x256xbf16>, vector<256x128xbf16>, vector<256x128xf32> -> vector<256x128xf32>
    %c0_15 = arith.constant 0 : index
    %c0_16 = arith.constant 0 : index
    %19 = vector.load %arg7[%c0_15, %c0_16] : memref<1x128xf32, #tpu.memory_space<vmem>>, vector<1x128xf32>
    %20 = vector.broadcast %19 : vector<1x128xf32> to vector<256x128xf32>
    %21 = arith.addf %18, %20 : vector<256x128xf32>
    %22 = arith.truncf %21 : vector<256x128xf32> to vector<256x128xbf16>
    %cst_17 = arith.constant 0.000000e+00 : bf16
    %23 = vector.broadcast %cst_17 : bf16 to vector<256x128xbf16>
    %24 = arith.maximumf %22, %23 : vector<256x128xbf16>
    %c0_18 = arith.constant 0 : index
    %c0_19 = arith.constant 0 : index
    %25 = vector.load %arg8[%c0_18, %c0_19] : memref<128x128xbf16, #tpu.memory_space<vmem>>, vector<128x128xbf16>
    %cst_20 = arith.constant dense<0.000000e+00> : vector<256x128xf32>
    %26 = tpu.matmul %24, %25, %cst_20 {dimension_numbers = #tpu.dot_dimension_numbers<[1], [0], [0], [1], [0, 0, 1, 1], [], []>} : vector<256x128xbf16>, vector<128x128xbf16>, vector<256x128xf32> -> vector<256x128xf32>
    %c0_21 = arith.constant 0 : index
    %c0_22 = arith.constant 0 : index
    %27 = vector.load %arg9[%c0_21, %c0_22] : memref<1x128xf32, #tpu.memory_space<vmem>>, vector<1x128xf32>
    %28 = vector.broadcast %27 : vector<1x128xf32> to vector<256x128xf32>
    %29 = arith.addf %26, %28 : vector<256x128xf32>
    %30 = arith.truncf %29 : vector<256x128xf32> to vector<256x128xbf16>
    %cst_23 = arith.constant 0.000000e+00 : bf16
    %31 = vector.broadcast %cst_23 : bf16 to vector<256x128xbf16>
    %32 = arith.maximumf %30, %31 : vector<256x128xbf16>
    %c0_24 = arith.constant 0 : index
    %c0_25 = arith.constant 0 : index
    %33 = vector.load %arg10[%c0_24, %c0_25] : memref<128x256xbf16, #tpu.memory_space<vmem>>, vector<128x256xbf16>
    %cst_26 = arith.constant dense<0.000000e+00> : vector<256x256xf32>
    %34 = tpu.matmul %32, %33, %cst_26 {dimension_numbers = #tpu.dot_dimension_numbers<[1], [0], [0], [1], [0, 0, 1, 1], [], []>} : vector<256x128xbf16>, vector<128x256xbf16>, vector<256x256xf32> -> vector<256x256xf32>
    %c0_27 = arith.constant 0 : index
    %c0_28 = arith.constant 0 : index
    %35 = vector.load %arg11[%c0_27, %c0_28] : memref<1x256xf32, #tpu.memory_space<vmem>>, vector<1x256xf32>
    %36 = vector.broadcast %35 : vector<1x256xf32> to vector<256x256xf32>
    %37 = arith.addf %34, %36 : vector<256x256xf32>
    %38 = arith.truncf %37 : vector<256x256xf32> to vector<256x256xbf16>
    %cst_29 = arith.constant 0.000000e+00 : bf16
    %39 = vector.broadcast %cst_29 : bf16 to vector<256x256xbf16>
    %40 = arith.maximumf %38, %39 : vector<256x256xbf16>
    %c0_30 = arith.constant 0 : index
    %c0_31 = arith.constant 0 : index
    %41 = vector.load %arg12[%c0_30, %c0_31] : memref<256x256xbf16, #tpu.memory_space<vmem>>, vector<256x256xbf16>
    %cst_32 = arith.constant dense<0.000000e+00> : vector<256x256xf32>
    %42 = tpu.matmul %40, %41, %cst_32 {dimension_numbers = #tpu.dot_dimension_numbers<[1], [0], [0], [1], [0, 0, 1, 1], [], []>} : vector<256x256xbf16>, vector<256x256xbf16>, vector<256x256xf32> -> vector<256x256xf32>
    %c0_33 = arith.constant 0 : index
    %c0_34 = arith.constant 0 : index
    %43 = vector.load %arg13[%c0_33, %c0_34] : memref<1x256xf32, #tpu.memory_space<vmem>>, vector<1x256xf32>
    %44 = vector.broadcast %43 : vector<1x256xf32> to vector<256x256xf32>
    %45 = arith.addf %42, %44 : vector<256x256xf32>
    %46 = arith.truncf %45 : vector<256x256xf32> to vector<256x256xbf16>
    %cst_35 = arith.constant 0.000000e+00 : bf16
    %47 = vector.broadcast %cst_35 : bf16 to vector<256x256xbf16>
    %48 = arith.maximumf %46, %47 : vector<256x256xbf16>
    %c0_36 = arith.constant 0 : index
    %c0_37 = arith.constant 0 : index
    %49 = vector.load %arg14[%c0_36, %c0_37] : memref<256x128xbf16, #tpu.memory_space<vmem>>, vector<256x128xbf16>
    %cst_38 = arith.constant dense<0.000000e+00> : vector<256x128xf32>
    %50 = tpu.matmul %48, %49, %cst_38 {dimension_numbers = #tpu.dot_dimension_numbers<[1], [0], [0], [1], [0, 0, 1, 1], [], []>} : vector<256x256xbf16>, vector<256x128xbf16>, vector<256x128xf32> -> vector<256x128xf32>
    %c0_39 = arith.constant 0 : index
    %c0_40 = arith.constant 0 : index
    %51 = vector.load %arg15[%c0_39, %c0_40] : memref<1x128xf32, #tpu.memory_space<vmem>>, vector<1x128xf32>
    %52 = vector.broadcast %51 : vector<1x128xf32> to vector<256x128xf32>
    %53 = arith.addf %50, %52 : vector<256x128xf32>
    %c0_41 = arith.constant 0 : index
    %c0_42 = arith.constant 0 : index
    %54 = vector.load %arg16[%c0_41, %c0_42] : memref<256x128xf32, #tpu.memory_space<vmem>>, vector<256x128xf32>
    tpu.vector_store %arg16[%c0_41, %c0_42], %53 {strides = array<i32>} : memref<256x128xf32, #tpu.memory_space<vmem>>, vector<256x128xf32>,
    return
  }
  func.func @transform_0(%arg0: i32) -> (i32, i32) {
    %c0_i32 = arith.constant 0 : i32
    %c0_i32_0 = arith.constant 0 : i32
    return %arg0, %c0_i32 : i32, i32
  }
  func.func @transform_1(%arg0: i32) -> (i32, i32) {
    %c0_i32 = arith.constant 0 : i32
    %c0_i32_0 = arith.constant 0 : i32
    %c0_i32_1 = arith.constant 0 : i32
    return %c0_i32, %c0_i32_0 : i32, i32
  }
  func.func @transform_2(%arg0: i32) -> (i32, i32) {
    %c0_i32 = arith.constant 0 : i32
    %c0_i32_0 = arith.constant 0 : i32
    %c0_i32_1 = arith.constant 0 : i32
    return %c0_i32, %c0_i32_0 : i32, i32
  }
  func.func @transform_3(%arg0: i32) -> (i32, i32) {
    %c0_i32 = arith.constant 0 : i32
    %c0_i32_0 = arith.constant 0 : i32
    %c0_i32_1 = arith.constant 0 : i32
    return %c0_i32, %c0_i32_0 : i32, i32
  }
  func.func @transform_4(%arg0: i32) -> (i32, i32) {
    %c0_i32 = arith.constant 0 : i32
    %c0_i32_0 = arith.constant 0 : i32
    %c0_i32_1 = arith.constant 0 : i32
    return %c0_i32, %c0_i32_0 : i32, i32
  }
  func.func @transform_5(%arg0: i32) -> (i32, i32) {
    %c0_i32 = arith.constant 0 : i32
    %c0_i32_0 = arith.constant 0 : i32
    %c0_i32_1 = arith.constant 0 : i32
    return %c0_i32, %c0_i32_0 : i32, i32
  }
  func.func @transform_6(%arg0: i32) -> (i32, i32) {
    %c0_i32 = arith.constant 0 : i32
    %c0_i32_0 = arith.constant 0 : i32
    %c0_i32_1 = arith.constant 0 : i32
    return %c0_i32, %c0_i32_0 : i32, i32
  }
  func.func @transform_7(%arg0: i32) -> (i32, i32) {
    %c0_i32 = arith.constant 0 : i32
    %c0_i32_0 = arith.constant 0 : i32
    %c0_i32_1 = arith.constant 0 : i32
    return %c0_i32, %c0_i32_0 : i32, i32
  }
  func.func @transform_8(%arg0: i32) -> (i32, i32) {
    %c0_i32 = arith.constant 0 : i32
    %c0_i32_0 = arith.constant 0 : i32
    %c0_i32_1 = arith.constant 0 : i32
    return %c0_i32, %c0_i32_0 : i32, i32
  }
  func.func @transform_9(%arg0: i32) -> (i32, i32) {
    %c0_i32 = arith.constant 0 : i32
    %c0_i32_0 = arith.constant 0 : i32
    %c0_i32_1 = arith.constant 0 : i32
    return %c0_i32, %c0_i32_0 : i32, i32
  }
  func.func @transform_10(%arg0: i32) -> (i32, i32) {
    %c0_i32 = arith.constant 0 : i32
    %c0_i32_0 = arith.constant 0 : i32
    %c0_i32_1 = arith.constant 0 : i32
    return %c0_i32, %c0_i32_0 : i32, i32
  }
  func.func @transform_11(%arg0: i32) -> (i32, i32) {
    %c0_i32 = arith.constant 0 : i32
    %c0_i32_0 = arith.constant 0 : i32
    %c0_i32_1 = arith.constant 0 : i32
    return %c0_i32, %c0_i32_0 : i32, i32
  }
  func.func @transform_12(%arg0: i32) -> (i32, i32) {
    %c0_i32 = arith.constant 0 : i32
    %c0_i32_0 = arith.constant 0 : i32
    %c0_i32_1 = arith.constant 0 : i32
    return %c0_i32, %c0_i32_0 : i32, i32
  }
  func.func @transform_13(%arg0: i32) -> (i32, i32) {
    %c0_i32 = arith.constant 0 : i32
    %c0_i32_0 = arith.constant 0 : i32
    %c0_i32_1 = arith.constant 0 : i32
    return %c0_i32, %c0_i32_0 : i32, i32
  }
  func.func @transform_14(%arg0: i32) -> (i32, i32) {
    %c0_i32 = arith.constant 0 : i32
    %c0_i32_0 = arith.constant 0 : i32
    %c0_i32_1 = arith.constant 0 : i32
    return %c0_i32, %c0_i32_0 : i32, i32
  }
  func.func @transform_15(%arg0: i32) -> (i32, i32) {
    %c0_i32 = arith.constant 0 : i32
    %c0_i32_0 = arith.constant 0 : i32
    return %arg0, %c0_i32 : i32, i32
  }
}

</mosaic_0001>

<bundles_post_ra>
// kernel: tpu_custom_call.1
= control target key start
LH: loop header
LB: loop body
LE: loop exit
PB: predicated region body
PF: predicated region fallthrough
CT: control target
= control target key end

     0   :  { %20 = vsyncpa [#allocation3], 0  ;;  %s5532_s0 = inlined_call_operand.hbm [shape: bf16[256,512], index: 0, kind: input, shape index: {}]   ;;  %s5533_s1 = inlined_call_operand.hbm [shape: bf16[512,256], index: 1, kind: input, shape index: {}]   ;;  %s5534_s2 = inlined_call_operand.vmem [shape: f32[1,256], index: 2, kind: input, shape index: {}]   ;;  %s5535_s3 = inlined_call_operand.hbm [shape: bf16[256,256], index: 3, kind: input, shape index: {}]   ;;  %s5536_s4 = inlined_call_operand.vmem [shape: f32[1,256], index: 4, kind: input, shape index: {}]   ;;  %s5537_s5 = inlined_call_operand.hbm [shape: bf16[256,128], index: 5, kind: input, shape index: {}]   ;;  %s5538_s6 = inlined_call_operand.vmem [shape: f32[1,128], index: 6, kind: input, shape index: {}]   ;;  %s5539_s7 = inlined_call_operand.hbm [shape: bf16[128,128], index: 7, kind: input, shape index: {}]   ;;  %s5540_s8 = inlined_call_operand.vmem [shape: f32[1,128], index: 8, kind: input, shape index: {}]   ;;  %s5541_s9 = inlined_call_operand.hbm [shape: bf16[128,256], index: 9, kind: input, shape index: {}]   ;;  %s5542_s10 = inlined_call_operand.vmem [shape: f32[1,256], index: 10, kind: input, shape index: {}]   ;;  %s5543_s11 = inlined_call_operand.hbm [shape: bf16[256,256], index: 11, kind: input, shape index: {}]   ;;  %s5544_s12 = inlined_call_operand.vmem [shape: f32[1,256], index: 12, kind: input, shape index: {}]   ;;  %s5545_s13 = inlined_call_operand.hbm [shape: bf16[256,128], index: 13, kind: input, shape index: {}]   ;;  %s5546_s14 = inlined_call_operand.vmem [shape: f32[1,128], index: 14, kind: input, shape index: {}]   ;;  %s5547_s15 = inlined_call_operand.hbm [shape: f32[256,128], index: 15, kind: output, shape index: {}]  }
   0x1   :  { %21 = vsyncpa [#allocation6], 0 }
   0x2   :  { %22 = vsyncpa [#allocation9], 0 }
   0x3   :  { %23 = vsyncpa [#allocation12], 0 }
   0x4   :  { %24 = vsyncpa [#allocation15], 0 }
   0x5   :  { %25 = vsyncpa [#allocation4], 0  ;;  %s4742_s18 = smov [#allocation5]  }
   0x6   :  { %s43_s19 = sshll.u32 %s4742_s18, 4  ;;  %s44_s19 = int_to_ptr.vmem [resolvable:$true] %s43_s19 }
   0x7   :  { %s4558_s20 = scalar_lea.vmem %s44_s19, 8192  ;;  %p4563_p1 = scmp.lt.s32.totalorder %s44_s19, %s44_s19 }
   0x8   :  { %p4559_p0 = scmp.ne.s32.totalorder %s44_s19, %s4558_s20  ;;  %p4564_p2 = scmp.lt.s32.totalorder %s4558_s20, %s4558_s20 }
   0xa   :  { %p4565_p3 = por %p4564_p2, %p4563_p1 }
   0xc   :  { %p4566_p4 = pnand %p4565_p3, %p4559_p0 }
   0xe   :  { %4569 = shalt.err (!%p4566_p4)
}
   0xf   :  { %s4743_s21 = smov 128   ;;  %s4744_s22 = smov 8  }
  0x10   :  { %49 = dma.hbm_to_vmem [thread:$0]  %s5533_s1, 8192, %s44_s19, [#allocation6], %s4743_s21, %s4743_s21, %s4744_s22  }
  0x11   :  { %s4745_s25 = smov [#allocation8]  }
  0x12   :  { %s71_s26 = sshll.u32 %s4745_s25, 4  ;;  %s72_s26 = int_to_ptr.vmem [resolvable:$true] %s71_s26 }
  0x13   :  { %s4578_s27 = scalar_lea.vmem %s72_s26, 2048  ;;  %p4583_p6 = scmp.lt.s32.totalorder %s72_s26, %s72_s26 }
  0x14   :  { %p4579_p5 = scmp.ne.s32.totalorder %s72_s26, %s4578_s27  ;;  %p4584_p7 = scmp.lt.s32.totalorder %s4578_s27, %s4578_s27 }
  0x16   :  { %p4585_p8 = por %p4584_p7, %p4583_p6 }
  0x18   :  { %p4586_p9 = pnand %p4585_p8, %p4579_p5 }
  0x1a   :  { %4589 = shalt.err (!%p4586_p9)
}
  0x1b   :  { %s4746_s28 = smov 64   ;;  %s4747_s29 = smov 4  }
  0x1c   :  { %77 = dma.hbm_to_vmem [thread:$0]  %s5537_s5, 2048, %s72_s26, [#allocation9], %s4746_s28, %s4746_s28, %s4747_s29  }
  0x1d   :  { %s4748_s1 = smov [#allocation11]   ;;  %s4749_s18 = smov [#allocation2]  }
  0x1e   :  { %s99_s17 = sshll.u32 %s4748_s1, 4  ;;  %s31_s19 = sshll.u32 %s4749_s18, 4  ;;  %s100_s17 = int_to_ptr.vmem [resolvable:$true] %s99_s17  ;;  %s32_s19 = int_to_ptr.vmem [resolvable:$true] %s31_s19 }
  0x1f   :  { %s4598_s20 = scalar_lea.vmem %s100_s17, 2048  ;;  %p4603_p11 = scmp.lt.s32.totalorder %s100_s17, %s100_s17 }
  0x20   :  { %p4599_p10 = scmp.ne.s32.totalorder %s100_s17, %s4598_s20  ;;  %p4604_p12 = scmp.lt.s32.totalorder %s4598_s20, %s4598_s20 }
  0x22   :  { %p4605_p13 = por %p4604_p12, %p4603_p11 }
  0x24   :  { %p4606_p0 = pnand %p4605_p13, %p4599_p10 }
  0x26   :  { %4609 = shalt.err (!%p4606_p0)
}
  0x27   :  { %105 = dma.hbm_to_vmem [thread:$0]  %s5541_s9, 2048, %s100_s17, [#allocation12], %s4743_s21, %s4743_s21, %s4744_s22  }
  0x28   :  { %s4618_s5 = scalar_lea.vmem %s32_s19, 8192  ;;  %p4623_p2 = scmp.lt.s32.totalorder %s32_s19, %s32_s19 }
  0x29   :  { %p4619_p1 = scmp.ne.s32.totalorder %s32_s19, %s4618_s5  ;;  %p4624_p3 = scmp.lt.s32.totalorder %s4618_s5, %s4618_s5 }
  0x2b   :  { %p4625_p4 = por %p4624_p3, %p4623_p2 }
  0x2d   :  { %p4626_p5 = pnand %p4625_p4, %p4619_p1 }
  0x2f   :  { %4629 = shalt.err (!%p4626_p5)
}
  0x30   :  { %s4750_s25 = smov 256   ;;  %s4751_s26 = smov 16  }
  0x31   :  { %37 = dma.hbm_to_vmem [thread:$0]  %s5532_s0, 8192, %s32_s19, [#allocation3], %s4750_s25, %s4750_s25, %s4751_s26  }
  0x32   :  { %s4752_s16 = smov [#allocation7]   ;;  %s4753_s18 = smov [#allocation10]  }
  0x33   :  { %s57_s1 = sshll.u32 %s4752_s16, 4  ;;  %s85_s20 = sshll.u32 %s4753_s18, 4  ;;  %s58_s1 = int_to_ptr.vmem [resolvable:$true] %s57_s1  ;;  %s86_s20 = int_to_ptr.vmem [resolvable:$true] %s85_s20 }
  0x34   :  { %s4638_s9 = scalar_lea.vmem %s58_s1, 4096  ;;  %p4643_p7 = scmp.lt.s32.totalorder %s58_s1, %s58_s1 }
  0x35   :  { %p4639_p6 = scmp.ne.s32.totalorder %s58_s1, %s4638_s9  ;;  %p4644_p8 = scmp.lt.s32.totalorder %s4638_s9, %s4638_s9 }
  0x37   :  { %p4645_p9 = por %p4644_p8, %p4643_p7 }
  0x39   :  { %p4646_p10 = pnand %p4645_p9, %p4639_p6 }
  0x3b   :  { %4649 = shalt.err (!%p4646_p10)
}
  0x3c   :  { %63 = dma.hbm_to_vmem [thread:$0]  %s5535_s3, 4096, %s58_s1, [#allocation6], %s4743_s21, %s4743_s21, %s4744_s22  }
  0x3d   :  { %s4658_s0 = scalar_lea.vmem %s86_s20, 1024  ;;  %p4663_p12 = scmp.lt.s32.totalorder %s86_s20, %s86_s20 }
  0x3e   :  { %p4659_p11 = scmp.ne.s32.totalorder %s86_s20, %s4658_s0  ;;  %p4664_p13 = scmp.lt.s32.totalorder %s4658_s0, %s4658_s0 }
  0x40   :  { %p4665_p0 = por %p4664_p13, %p4663_p12 }
  0x42   :  { %p4666_p1 = pnand %p4665_p0, %p4659_p11 }
  0x44   :  { %4669 = shalt.err (!%p4666_p1)
}
  0x45   :  { %91 = dma.hbm_to_vmem [thread:$0]  %s5539_s7, 1024, %s86_s20, [#allocation9], %s4746_s28, %s4746_s28, %s4747_s29  }
  0x46   :  { %s4754_s5 = smov [#allocation13]   ;;  %s4755_s26 = smov [#allocation14]  }
  0x47   :  { %s113_s25 = sshll.u32 %s4754_s5, 4  ;;  %s127_s27 = sshll.u32 %s4755_s26, 4  ;;  %s114_s25 = int_to_ptr.vmem [resolvable:$true] %s113_s25  ;;  %s128_s27 = int_to_ptr.vmem [resolvable:$true] %s127_s27 }
  0x48   :  { %s4678_s3 = scalar_lea.vmem %s114_s25, 4096  ;;  %p4683_p3 = scmp.lt.s32.totalorder %s114_s25, %s114_s25 }
  0x49   :  { %p4679_p2 = scmp.ne.s32.totalorder %s114_s25, %s4678_s3  ;;  %p4684_p4 = scmp.lt.s32.totalorder %s4678_s3, %s4678_s3 }
  0x4b   :  { %p4685_p5 = por %p4684_p4, %p4683_p3 }
  0x4d   :  { %p4686_p6 = pnand %p4685_p5, %p4679_p2 }
  0x4f   :  { %4689 = shalt.err (!%p4686_p6)
}
  0x50   :  { %119 = dma.hbm_to_vmem [thread:$0]  %s5543_s11, 4096, %s114_s25, [#allocation12], %s4743_s21, %s4743_s21, %s4744_s22  }
  0x51   :  { %s4698_s7 = scalar_lea.vmem %s128_s27, 2048  ;;  %p4703_p8 = scmp.lt.s32.totalorder %s128_s27, %s128_s27 }
  0x52   :  { %p4699_p7 = scmp.ne.s32.totalorder %s128_s27, %s4698_s7  ;;  %p4704_p9 = scmp.lt.s32.totalorder %s4698_s7, %s4698_s7 }
  0x54   :  { %p4705_p10 = por %p4704_p9, %p4703_p8 }
  0x56   :  { %p4706_p11 = pnand %p4705_p10, %p4699_p7 }
  0x58   :  { %4709 = shalt.err (!%p4706_p11)
}
  0x59   :  { %133 = dma.hbm_to_vmem [thread:$0]  %s5545_s13, 2048, %s128_s27, [#allocation15], %s4746_s28, %s4746_s28, %s4747_s29  }
  0x5a   :  { %4730 = dma.done.wait [#allocation3], 8192  }
  0x5b   :  { %4731 = vsyncadd [#allocation3], 4294959104 }
  0x5c   :  { %4732 = dma.done.wait [#allocation6], 12288  }
  0x5d   :  { %4733 = vsyncadd [#allocation6], 4294955008 }
  0x5e   :  { %4734 = dma.done.wait [#allocation9], 3072  }
  0x5f   :  { %4735 = vsyncadd [#allocation9], 4294964224 }
  0x60   :  { %4736 = dma.done.wait [#allocation12], 6144  }
  0x61   :  { %4737 = vsyncadd [#allocation12], 4294961152 }
  0x62   :  { %4738 = dma.done.wait [#allocation15], 2048  }
  0x63   :  { %4739 = vsyncadd [#allocation15], 4294965248  ;;  %v4198_v0 = vld [vmem:[#allocation5 + $0x74] ss:$8 sps:$4 sm:$0xff]   ;;  %v4202_v2 = vld [vmem:[#allocation5 + $0x70] ss:$8 sps:$4 sm:$0xff]  }
  0x64   :  { %v4200_v1 = vld [vmem:[#allocation5 + $0x174] ss:$8 sps:$4 sm:$0xff]   ;;  %941 = vmatprep.subr.bf16.mxu0 %v4198_v0  ;;  %v4203_v3 = vld [vmem:[#allocation5 + $0x170] ss:$8 sps:$4 sm:$0xff]   ;;  %v4204_v4 = vld [vmem:[#allocation5 + $0x64] ss:$8 sps:$4 sm:$0xff]  }
  0x65   :  { %1134 = vmatprep.subr.bf16.mxu1 %v4200_v1  ;;  %942 = vmatpush1.bf16.msra.mxu0 %v4202_v2  ;;  %v4206_v5 = vld [vmem:[#allocation5 + $0x164] ss:$8 sps:$4 sm:$0xff]   ;;  %v4208_v6 = vld [vmem:[#allocation5 + $0x60] ss:$8 sps:$4 sm:$0xff]   ;;  %v4210_v8 = vld [vmem:[#allocation5 + $0x54] ss:$8 sps:$4 sm:$0xff]  }
  0x66   :  { %1135 = vmatpush1.bf16.msra.mxu1 %v4203_v3  ;;  %943 = vmatprep.subr.bf16.mxu0 %v4204_v4  ;;  %v4209_v7 = vld [vmem:[#allocation5 + $0x160] ss:$8 sps:$4 sm:$0xff]   ;;  %v4212_v9 = vld [vmem:[#allocation5 + $0x154] ss:$8 sps:$4 sm:$0xff]   ;;  %v4214_v10 = vld [vmem:[#allocation5 + $0x50] ss:$8 sps:$4 sm:$0xff]  }
  0x67   :  { %1136 = vmatprep.subr.bf16.mxu1 %v4206_v5  ;;  %v4215_v11 = vld [vmem:[#allocation5 + $0x150] ss:$8 sps:$4 sm:$0xff]   ;;  %v4216_v12 = vld [vmem:[#allocation5 + $0x44] ss:$8 sps:$4 sm:$0xff]   ;;  %v4220_v14 = vld [vmem:[#allocation5 + $0x40] ss:$8 sps:$4 sm:$0xff]  }
  0x68   :  { %v4218_v13 = vld [vmem:[#allocation5 + $0x144] ss:$8 sps:$4 sm:$0xff]   ;;  %v4221_v15 = vld [vmem:[#allocation5 + $0x140] ss:$8 sps:$4 sm:$0xff]   ;;  %v4222_v16 = vld [vmem:[#allocation5 + $0x34] ss:$8 sps:$4 sm:$0xff]  }
  0x69   :  { %944 = vmatpush1.bf16.msra.mxu0 %v4208_v6  ;;  %v4224_v17 = vld [vmem:[#allocation5 + $0x134] ss:$8 sps:$4 sm:$0xff]   ;;  %v4226_v18 = vld [vmem:[#allocation5 + $0x30] ss:$8 sps:$4 sm:$0xff]   ;;  %v4228_v20 = vld [vmem:[#allocation5 + $0x24] ss:$8 sps:$4 sm:$0xff]  }
  0x6a   :  { %1137 = vmatpush1.bf16.msra.mxu1 %v4209_v7  ;;  %945 = vmatprep.subr.bf16.mxu0 %v4210_v8  ;;  %v4227_v19 = vld [vmem:[#allocation5 + $0x130] ss:$8 sps:$4 sm:$0xff]   ;;  %v4230_v21 = vld [vmem:[#allocation5 + $0x124] ss:$8 sps:$4 sm:$0xff]   ;;  %v4232_v22 = vld [vmem:[#allocation5 + $0x20] ss:$8 sps:$4 sm:$0xff]  }
  0x6b   :  { %1138 = vmatprep.subr.bf16.mxu1 %v4212_v9  ;;  %v4233_v23 = vld [vmem:[#allocation5 + $0x120] ss:$8 sps:$4 sm:$0xff]   ;;  %v4234_v24 = vld [vmem:[#allocation5 + $0x14] ss:$8 sps:$4 sm:$0xff]   ;;  %v4238_v26 = vld [vmem:[#allocation5 + $0x10] ss:$8 sps:$4 sm:$0xff]  }
  0x6c   :  { %v4236_v25 = vld [vmem:[#allocation5 + $0x114] ss:$8 sps:$4 sm:$0xff]   ;;  %v4239_v27 = vld [vmem:[#allocation5 + $0x110] ss:$8 sps:$4 sm:$0xff]   ;;  %v4240_v28 = vld [vmem:[#allocation5 + $0x4] ss:$8 sps:$4 sm:$0xff]  }
  0x6d   :  { %946 = vmatpush1.bf16.msra.mxu0 %v4214_v10  ;;  %v4242_v29 = vld [vmem:[#allocation5 + $0x104] ss:$8 sps:$4 sm:$0xff]   ;;  %v4244_v30 = vld [vmem:[#allocation5] ss:$8 sps:$4 sm:$0xff]   ;;  %v4246_v32 = vld [vmem:[#allocation5 + $0xf4] ss:$8 sps:$4 sm:$0xff]  }
  0x6e   :  { %1139 = vmatpush1.bf16.msra.mxu1 %v4215_v11  ;;  %947 = vmatprep.subr.bf16.mxu0 %v4216_v12  ;;  %v4245_v31 = vld [vmem:[#allocation5 + $0x100] ss:$8 sps:$4 sm:$0xff]   ;;  %v4248_v33 = vld [vmem:[#allocation5 + $0x1f4] ss:$8 sps:$4 sm:$0xff]   ;;  %v4250_v34 = vld [vmem:[#allocation5 + $0xf0] ss:$8 sps:$4 sm:$0xff]  }
  0x6f   :  { %1140 = vmatprep.subr.bf16.mxu1 %v4218_v13  ;;  %v4251_v35 = vld [vmem:[#allocation5 + $0x1f0] ss:$8 sps:$4 sm:$0xff]   ;;  %v4252_v36 = vld [vmem:[#allocation5 + $0xe4] ss:$8 sps:$4 sm:$0xff]   ;;  %v4256_v38 = vld [vmem:[#allocation5 + $0xe0] ss:$8 sps:$4 sm:$0xff]  }
  0x70   :  { %v4254_v37 = vld [vmem:[#allocation5 + $0x1e4] ss:$8 sps:$4 sm:$0xff]   ;;  %v4257_v39 = vld [vmem:[#allocation5 + $0x1e0] ss:$8 sps:$4 sm:$0xff]   ;;  %v4258_v40 = vld [vmem:[#allocation5 + $0xd4] ss:$8 sps:$4 sm:$0xff]  }
  0x71   :  { %948 = vmatpush1.bf16.msra.mxu0 %v4220_v14  ;;  %v4260_v41 = vld [vmem:[#allocation5 + $0x1d4] ss:$8 sps:$4 sm:$0xff]   ;;  %v4262_v42 = vld [vmem:[#allocation5 + $0xd0] ss:$8 sps:$4 sm:$0xff]   ;;  %v4264_v44 = vld [vmem:[#allocation5 + $0xc4] ss:$8 sps:$4 sm:$0xff]  }
  0x72   :  { %1141 = vmatpush1.bf16.msra.mxu1 %v4221_v15  ;;  %949 = vmatprep.subr.bf16.mxu0 %v4222_v16  ;;  %v4263_v43 = vld [vmem:[#allocation5 + $0x1d0] ss:$8 sps:$4 sm:$0xff]   ;;  %v4266_v45 = vld [vmem:[#allocation5 + $0x1c4] ss:$8 sps:$4 sm:$0xff]   ;;  %v4268_v46 = vld [vmem:[#allocation5 + $0xc0] ss:$8 sps:$4 sm:$0xff]  }
  0x73   :  { %1142 = vmatprep.subr.bf16.mxu1 %v4224_v17  ;;  %v4269_v47 = vld [vmem:[#allocation5 + $0x1c0] ss:$8 sps:$4 sm:$0xff]   ;;  %v4270_v48 = vld [vmem:[#allocation5 + $0xb4] ss:$8 sps:$4 sm:$0xff]   ;;  %v4274_v52 = vld [vmem:[#allocation5 + $0xb0] ss:$8 sps:$4 sm:$0xff]  }
  0x74   :  { %v4296_v49 = vld [vmem:[#allocation2 + $0x4] ss:$16 sps:$4 sm:$0xff]   ;;  %v4299_v51 = vld [vmem:[#allocation2 + $0xc] ss:$16 sps:$4 sm:$0xff]   ;;  %v4275_v53 = vld [vmem:[#allocation5 + $0x1b0] ss:$8 sps:$4 sm:$0xff]  }
  0x75   :  { %950 = vmatpush1.bf16.msra.mxu0 %v4226_v18  ;;  %v4272_v50 = vld [vmem:[#allocation5 + $0x1b4] ss:$8 sps:$4 sm:$0xff]   ;;  %973 = vmatprep.mubr.bf16.mxu0 %v4296_v49  ;;  %v4276_v54 = vld [vmem:[#allocation5 + $0xa4] ss:$8 sps:$4 sm:$0xff]   ;;  %v4280_v56 = vld [vmem:[#allocation5 + $0xa0] ss:$8 sps:$4 sm:$0xff]  }
  0x76   :  { %1143 = vmatpush1.bf16.msra.mxu1 %v4227_v19  ;;  %951 = vmatprep.subr.bf16.mxu0 %v4228_v20  ;;  %v4278_v55 = vld [vmem:[#allocation5 + $0x1a4] ss:$8 sps:$4 sm:$0xff]   ;;  %v4281_v57 = vld [vmem:[#allocation5 + $0x1a0] ss:$8 sps:$4 sm:$0xff]   ;;  %v4282_v58 = vld [vmem:[#allocation5 + $0x94] ss:$8 sps:$4 sm:$0xff]  }
  0x77   :  { %1144 = vmatprep.subr.bf16.mxu1 %v4230_v21  ;;  %1166 = vmatprep.mubr.bf16.mxu1 %v4299_v51  ;;  %v4284_v59 = vld [vmem:[#allocation5 + $0x194] ss:$8 sps:$4 sm:$0xff]   ;;  %v4286_v60 = vld [vmem:[#allocation5 + $0x90] ss:$8 sps:$4 sm:$0xff]   ;;  %v4288_v62 = vld [vmem:[#allocation5 + $0x84] ss:$8 sps:$4 sm:$0xff]  }
  0x78   :  { %v4287_v61 = vld [vmem:[#allocation5 + $0x190] ss:$8 sps:$4 sm:$0xff]   ;;  %v4290_v63 = vld [vmem:[#allocation5 + $0x184] ss:$8 sps:$4 sm:$0xff]   ;;  %v4292_v0 = vld [vmem:[#allocation5 + $0x80] ss:$8 sps:$4 sm:$0xff]  }
  0x79   :  { %952 = vmatpush1.bf16.msra.mxu0 %v4232_v22  ;;  %v4293_v1 = vld [vmem:[#allocation5 + $0x180] ss:$8 sps:$4 sm:$0xff]   ;;  %v4300_v4 = vld [vmem:[#allocation2 + $0x24] ss:$16 sps:$4 sm:$0xff]   ;;  %v4302_v5 = vld [vmem:[#allocation2 + $0x2c] ss:$16 sps:$4 sm:$0xff]  }
  0x7a   :  { %1145 = vmatpush1.bf16.msra.mxu1 %v4233_v23  ;;  %953 = vmatprep.subr.bf16.mxu0 %v4234_v24  ;;  %v4294_v2 = vld [vmem:[#allocation2] ss:$16 sps:$4 sm:$0xff]   ;;  %v4297_v3 = vld [vmem:[#allocation2 + $0x8] ss:$16 sps:$4 sm:$0xff]   ;;  %v4306_v8 = vld [vmem:[#allocation2 + $0x44] ss:$16 sps:$4 sm:$0xff]  }
  0x7b   :  { %1146 = vmatprep.subr.bf16.mxu1 %v4236_v25  ;;  %v4304_v6 = vld [vmem:[#allocation2 + $0x20] ss:$16 sps:$4 sm:$0xff]   ;;  %v4305_v7 = vld [vmem:[#allocation2 + $0x28] ss:$16 sps:$4 sm:$0xff]   ;;  %v4308_v9 = vld [vmem:[#allocation2 + $0x4c] ss:$16 sps:$4 sm:$0xff]  }
  0x7c   :  { %v4360_v10 = vld [vmem:[#allocation7 + $0x74] ss:$8 sps:$4 sm:$0xff]   ;;  %v4358_v11 = vld [vmem:[#allocation7 + $0x70] ss:$8 sps:$4 sm:$0xff]   ;;  %v4369_v12 = vld [vmem:[#allocation7 + $0x64] ss:$8 sps:$4 sm:$0xff]  }
  0x7d   :  { %954 = vmatpush1.bf16.msra.mxu0 %v4238_v26  ;;  %v4367_v13 = vld [vmem:[#allocation7 + $0x60] ss:$8 sps:$4 sm:$0xff]   ;;  %v4312_v16 = vld [vmem:[#allocation2 + $0x64] ss:$16 sps:$4 sm:$0xff]   ;;  %v4314_v17 = vld [vmem:[#allocation2 + $0x6c] ss:$16 sps:$4 sm:$0xff]  }
  0x7e   :  { %1147 = vmatpush1.bf16.msra.mxu1 %v4239_v27  ;;  %955 = vmatprep.subr.bf16.mxu0 %v4240_v28  ;;  %v4310_v14 = vld [vmem:[#allocation2 + $0x40] ss:$16 sps:$4 sm:$0xff]   ;;  %v4311_v15 = vld [vmem:[#allocation2 + $0x48] ss:$16 sps:$4 sm:$0xff]   ;;  %v4378_v18 = vld [vmem:[#allocation7 + $0x54] ss:$8 sps:$4 sm:$0xff]  }
  0x7f   :  { %1148 = vmatprep.subr.bf16.mxu1 %v4242_v29  ;;  %v4376_v19 = vld [vmem:[#allocation7 + $0x50] ss:$8 sps:$4 sm:$0xff]   ;;  %v4387_v20 = vld [vmem:[#allocation7 + $0x44] ss:$8 sps:$4 sm:$0xff]   ;;  %v4385_v21 = vld [vmem:[#allocation7 + $0x40] ss:$8 sps:$4 sm:$0xff]  }
  0x80   :  { %v4316_v22 = vld [vmem:[#allocation2 + $0x60] ss:$16 sps:$4 sm:$0xff]   ;;  %v4317_v23 = vld [vmem:[#allocation2 + $0x68] ss:$16 sps:$4 sm:$0xff]   ;;  %v4318_v24 = vld [vmem:[#allocation2 + $0x84] ss:$16 sps:$4 sm:$0xff]  }
  0x81   :  { %956 = vmatpush1.bf16.msra.mxu0 %v4244_v30  ;;  %v4320_v25 = vld [vmem:[#allocation2 + $0x8c] ss:$16 sps:$4 sm:$0xff]   ;;  %v4394_v27 = vld [vmem:[#allocation7 + $0x30] ss:$8 sps:$4 sm:$0xff]   ;;  %v4403_v29 = vld [vmem:[#allocation7 + $0x20] ss:$8 sps:$4 sm:$0xff]  }
  0x82   :  { %1149 = vmatpush1.bf16.msra.mxu1 %v4245_v31  ;;  %957 = vmatprep.subr.bf16.mxu0 %v4246_v32  ;;  %v4396_v26 = vld [vmem:[#allocation7 + $0x34] ss:$8 sps:$4 sm:$0xff]   ;;  %v4405_v28 = vld [vmem:[#allocation7 + $0x24] ss:$8 sps:$4 sm:$0xff]   ;;  %v4322_v30 = vld [vmem:[#allocation2 + $0x80] ss:$16 sps:$4 sm:$0xff]  }
  0x83   :  { %1150 = vmatprep.subr.bf16.mxu1 %v4248_v33  ;;  %v4410_v31 = vld [vmem:[#allocation7 + $0x14] ss:$8 sps:$4 sm:$0xff]   ;;  %v4323_v32 = vld [vmem:[#allocation2 + $0x88] ss:$16 sps:$4 sm:$0xff]  }
  0x84   :  { %v4324_v33 = vld [vmem:[#allocation2 + $0xa4] ss:$16 sps:$4 sm:$0xff]   ;;  %v4420_v51 = vld [vmem:[#allocation7 + $0xd0] ss:$8 sps:$4 sm:$0xff]  }
  0x85   :  { %958 = vmatpush2.bf16.msra.mxu0 %v4250_v34  ;;  %v4326_v34 = vld [vmem:[#allocation2 + $0xac] ss:$16 sps:$4 sm:$0xff]   ;;  %v4336_v49 = vld [vmem:[#allocation2 + $0xe4] ss:$16 sps:$4 sm:$0xff]  }
  0x86   :  { %1151 = vmatpush2.bf16.msra.mxu1 %v4251_v35  ;;  %959 = vmatprep.subr.bf16.mxu0 %v4252_v36  ;;  %v4408_v35 = vld [vmem:[#allocation7 + $0x10] ss:$8 sps:$4 sm:$0xff]   ;;  %v4413_v36 = vld [vmem:[#allocation7 + $0x4] ss:$8 sps:$4 sm:$0xff]  }
  0x87   :  { %1152 = vmatprep.subr.bf16.mxu1 %v4254_v37  ;;  %v4411_v37 = vld [vmem:[#allocation7] ss:$8 sps:$4 sm:$0xff]  }
  0x89   :  { %960 = vmatpush2.bf16.msra.mxu0 %v4256_v38  ;;  %v4328_v38 = vld [vmem:[#allocation2 + $0xa0] ss:$16 sps:$4 sm:$0xff]  }
  0x8a   :  { %1153 = vmatpush2.bf16.msra.mxu1 %v4257_v39  ;;  %961 = vmatprep.subr.bf16.mxu0 %v4258_v40  ;;  %v4416_v39 = vld [vmem:[#allocation7 + $0xf4] ss:$8 sps:$4 sm:$0xff]   ;;  %v4329_v40 = vld [vmem:[#allocation2 + $0xa8] ss:$16 sps:$4 sm:$0xff]  }
  0x8b   :  { %1154 = vmatprep.subr.bf16.mxu1 %v4260_v41  ;;  %v4330_v41 = vld [vmem:[#allocation2 + $0xc4] ss:$16 sps:$4 sm:$0xff]  }
  0x8d   :  { %962 = vmatpush2.bf16.msra.mxu0 %v4262_v42  ;;  %v4332_v42 = vld [vmem:[#allocation2 + $0xcc] ss:$16 sps:$4 sm:$0xff]  }
  0x8e   :  { %1155 = vmatpush2.bf16.msra.mxu1 %v4263_v43  ;;  %963 = vmatprep.subr.bf16.mxu0 %v4264_v44  ;;  %v4414_v43 = vld [vmem:[#allocation7 + $0xf0] ss:$8 sps:$4 sm:$0xff]   ;;  %v4419_v44 = vld [vmem:[#allocation7 + $0xe4] ss:$8 sps:$4 sm:$0xff]  }
  0x8f   :  { %1156 = vmatprep.subr.bf16.mxu1 %v4266_v45  ;;  %v4417_v45 = vld [vmem:[#allocation7 + $0xe0] ss:$8 sps:$4 sm:$0xff]  }
  0x91   :  { %964 = vmatpush2.bf16.msra.mxu0 %v4268_v46  ;;  %v4422_v46 = vld [vmem:[#allocation7 + $0xd4] ss:$8 sps:$4 sm:$0xff]  }
  0x92   :  { %1157 = vmatpush2.bf16.msra.mxu1 %v4269_v47  ;;  %965 = vmatprep.subr.bf16.mxu0 %v4270_v48  ;;  %v4334_v47 = vld [vmem:[#allocation2 + $0xc0] ss:$16 sps:$4 sm:$0xff]   ;;  %v4335_v48 = vld [vmem:[#allocation2 + $0xc8] ss:$16 sps:$4 sm:$0xff]  }
  0x93   :  { %1158 = vmatprep.subr.bf16.mxu1 %v4272_v50  ;;  %v4338_v50 = vld [vmem:[#allocation2 + $0xec] ss:$16 sps:$4 sm:$0xff]  }
  0x95   :  { %966 = vmatpush2.bf16.msra.mxu0 %v4274_v52  ;;  %v4425_v52 = vld [vmem:[#allocation7 + $0xc4] ss:$8 sps:$4 sm:$0xff]  }
  0x96   :  { %1159 = vmatpush2.bf16.msra.mxu1 %v4275_v53  ;;  %967 = vmatprep.subr.bf16.mxu0 %v4276_v54  ;;  %v4423_v53 = vld [vmem:[#allocation7 + $0xc0] ss:$8 sps:$4 sm:$0xff]   ;;  %v4428_v54 = vld [vmem:[#allocation7 + $0xb4] ss:$8 sps:$4 sm:$0xff]  }
  0x97   :  { %1160 = vmatprep.subr.bf16.mxu1 %v4278_v55  ;;  %v4340_v55 = vld [vmem:[#allocation2 + $0xe0] ss:$16 sps:$4 sm:$0xff]  }
  0x99   :  { %968 = vmatpush2.bf16.msra.mxu0 %v4280_v56  ;;  %v4341_v56 = vld [vmem:[#allocation2 + $0xe8] ss:$16 sps:$4 sm:$0xff]  }
  0x9a   :  { %1161 = vmatpush2.bf16.msra.mxu1 %v4281_v57  ;;  %969 = vmatprep.subr.bf16.mxu0 %v4282_v58  ;;  %v4342_v57 = vld [vmem:[#allocation2 + $0x104] ss:$16 sps:$4 sm:$0xff]   ;;  %v4344_v58 = vld [vmem:[#allocation2 + $0x10c] ss:$16 sps:$4 sm:$0xff]  }
  0x9b   :  { %1162 = vmatprep.subr.bf16.mxu1 %v4284_v59  ;;  %v4426_v59 = vld [vmem:[#allocation7 + $0xb0] ss:$8 sps:$4 sm:$0xff]  }
  0x9d   :  { %970 = vmatpush2.bf16.msra.mxu0 %v4286_v60  ;;  %v4431_v60 = vld [vmem:[#allocation7 + $0xa4] ss:$8 sps:$4 sm:$0xff]  }
  0x9e   :  { %1163 = vmatpush2.bf16.msra.mxu1 %v4287_v61  ;;  %971 = vmatprep.subr.bf16.mxu0 %v4288_v62  ;;  %v4429_v61 = vld [vmem:[#allocation7 + $0xa0] ss:$8 sps:$4 sm:$0xff]   ;;  %v4434_v62 = vld [vmem:[#allocation7 + $0x94] ss:$8 sps:$4 sm:$0xff]  }
  0x9f   :  { %1164 = vmatprep.subr.bf16.mxu1 %v4290_v63  ;;  %v4346_v63 = vld [vmem:[#allocation2 + $0x100] ss:$16 sps:$4 sm:$0xff]  }
  0xa1   :  { %972 = vmatpush2.bf16.msra.mxu0 %v4292_v0  ;;  %v4347_v0 = vld [vmem:[#allocation2 + $0x108] ss:$16 sps:$4 sm:$0xff]  }
  0xa2   :  { %1165 = vmatpush2.bf16.msra.mxu1 %v4293_v1  ;;  %1595 = vmatprep.subr.bf16.mxu0 %v4360_v10  ;;  %v4348_v1 = vld [vmem:[#allocation2 + $0x124] ss:$16 sps:$4 sm:$0xff]  }
  0xa3   :  { %v4437_v10 = vld [vmem:[#allocation7 + $0x84] ss:$8 sps:$4 sm:$0xff]  }
  0xa4   :  { %974 = vmatmul.mubr.bf16.vlgmr.msra.gmra.mxu0 %v4294_v2  ;;  %v4350_v2 = vld [vmem:[#allocation2 + $0x12c] ss:$16 sps:$4 sm:$0xff]  }
  0xa5   :  { %1167 = vmatmul.mubr.bf16.vlgmr.msra.gmra.mxu1 %v4297_v3  ;;  %983 = vmatprep.mubr.bf16.mxu0 %v4300_v4  ;;  %v4432_v3 = vld [vmem:[#allocation7 + $0x90] ss:$8 sps:$4 sm:$0xff]  }
  0xa6   :  { %1176 = vmatprep.mubr.bf16.mxu1 %v4302_v5  ;;  %1596 = vmatpush1.bf16.msra.mxu0 %v4358_v11  ;;  %v4352_v4 = vld [vmem:[#allocation2 + $0x120] ss:$16 sps:$4 sm:$0xff]   ;;  %v4353_v5 = vld [vmem:[#allocation2 + $0x128] ss:$16 sps:$4 sm:$0xff]   ;;  %v4363_v11 = vld [vmem:[#allocation2 + $0x164] ss:$16 sps:$4 sm:$0xff]  }
  0xa7   :  { %1597 = vmatprep.subr.bf16.mxu0 %v4369_v12  ;;  %v4365_v12 = vld [vmem:[#allocation2 + $0x16c] ss:$16 sps:$4 sm:$0xff]  }
  0xaa   :  { %1598 = vmatpush1.bf16.msra.mxu0 %v4367_v13  ;;  %v4435_v13 = vld [vmem:[#allocation7 + $0x80] ss:$8 sps:$4 sm:$0xff]  }
  0xab   :  { %1599 = vmatprep.subr.bf16.mxu0 %v4378_v18  ;;  %v4379_v18 = vld [vmem:[#allocation2 + $0x180] ss:$16 sps:$4 sm:$0xff]  }
  0xac   :  { %984 = vmatmul.mubr.bf16.gmra.mxu0 %v4304_v6  ;;  %v4354_v6 = vld [vmem:[#allocation2 + $0x144] ss:$16 sps:$4 sm:$0xff]  }
  0xad   :  { %1177 = vmatmul.mubr.bf16.gmra.mxu1 %v4305_v7  ;;  %993 = vmatprep.mubr.bf16.mxu0 %v4306_v8  ;;  %v4356_v7 = vld [vmem:[#allocation2 + $0x14c] ss:$16 sps:$4 sm:$0xff]   ;;  %v4361_v8 = vld [vmem:[#allocation2 + $0x140] ss:$16 sps:$4 sm:$0xff]  }
  0xae   :  { %1186 = vmatprep.mubr.bf16.mxu1 %v4308_v9  ;;  %1600 = vmatpush1.bf16.msra.mxu0 %v4376_v19  ;;  %v4362_v9 = vld [vmem:[#allocation2 + $0x148] ss:$16 sps:$4 sm:$0xff]  }
  0xaf   :  { %1601 = vmatprep.subr.bf16.mxu0 %v4387_v20  ;;  %v4380_v19 = vld [vmem:[#allocation2 + $0x188] ss:$16 sps:$4 sm:$0xff]   ;;  %v4381_v20 = vld [vmem:[#allocation2 + $0x1a4] ss:$16 sps:$4 sm:$0xff]  }
  0xb2   :  { %1602 = vmatpush1.bf16.msra.mxu0 %v4385_v21  ;;  %v4383_v21 = vld [vmem:[#allocation2 + $0x1ac] ss:$16 sps:$4 sm:$0xff]  }
  0xb3   :  { %1603 = vmatprep.subr.bf16.mxu0 %v4396_v26  ;;  %v4397_v26 = vld [vmem:[#allocation2 + $0x1c0] ss:$16 sps:$4 sm:$0xff]  }
  0xb4   :  { %994 = vmatmul.mubr.bf16.gmra.mxu0 %v4310_v14  ;;  %v4370_v14 = vld [vmem:[#allocation2 + $0x160] ss:$16 sps:$4 sm:$0xff]  }
  0xb5   :  { %1187 = vmatmul.mubr.bf16.gmra.mxu1 %v4311_v15  ;;  %1003 = vmatprep.mubr.bf16.mxu0 %v4312_v16  ;;  %v4371_v15 = vld [vmem:[#allocation2 + $0x168] ss:$16 sps:$4 sm:$0xff]   ;;  %v4372_v16 = vld [vmem:[#allocation2 + $0x184] ss:$16 sps:$4 sm:$0xff]  }
  0xb6   :  { %1196 = vmatprep.mubr.bf16.mxu1 %v4314_v17  ;;  %1604 = vmatpush1.bf16.msra.mxu0 %v4394_v27  ;;  %v4374_v17 = vld [vmem:[#allocation2 + $0x18c] ss:$16 sps:$4 sm:$0xff]   ;;  %v4398_v27 = vld [vmem:[#allocation2 + $0x1c8] ss:$16 sps:$4 sm:$0xff]  }
  0xb7   :  { %1605 = vmatprep.subr.bf16.mxu0 %v4405_v28  ;;  %v4399_v28 = vld [vmem:[#allocation2 + $0x1e4] ss:$16 sps:$4 sm:$0xff]  }
  0xba   :  { %1606 = vmatpush1.bf16.msra.mxu0 %v4403_v29  ;;  %v4401_v29 = vld [vmem:[#allocation2 + $0x1ec] ss:$16 sps:$4 sm:$0xff]  }
  0xbb   :  { %1607 = vmatprep.subr.bf16.mxu0 %v4410_v31  ;;  %v4407_v31 = vld [vmem:[#allocation2 + $0x1e8] ss:$16 sps:$4 sm:$0xff]  }
  0xbc   :  { %1004 = vmatmul.mubr.bf16.gmra.mxu0 %v4316_v22  ;;  %v4388_v22 = vld [vmem:[#allocation2 + $0x1a0] ss:$16 sps:$4 sm:$0xff]  }
  0xbd   :  { %1197 = vmatmul.mubr.bf16.gmra.mxu1 %v4317_v23  ;;  %1013 = vmatprep.mubr.bf16.mxu0 %v4318_v24  ;;  %v4389_v23 = vld [vmem:[#allocation2 + $0x1a8] ss:$16 sps:$4 sm:$0xff]   ;;  %v4390_v24 = vld [vmem:[#allocation2 + $0x1c4] ss:$16 sps:$4 sm:$0xff]  }
  0xbe   :  { %1206 = vmatprep.mubr.bf16.mxu1 %v4320_v25  ;;  %1608 = vmatpush1.bf16.msra.mxu0 %v4408_v35  ;;  %v4392_v25 = vld [vmem:[#allocation2 + $0x1cc] ss:$16 sps:$4 sm:$0xff]   ;;  %v291_v35 = vlaneseq }
  0xbf   :  { %1609 = vmatprep.subr.bf16.mxu0 %v4413_v36  ;;  %v4888_v36 = vld [vmem:[#allocation8 + $0x30] sm:$0xff]  }
  0xc2   :  { %1610 = vmatpush1.bf16.msra.mxu0 %v4411_v37  ;;  %v292_v37 = vshrl.u32 %v291_v35, 7 }
  0xc3   :  { %1611 = vmatprep.subr.bf16.mxu0 %v4416_v39  ;;  %v289_v39 = vld [vmem:[%s5534_s2] sm:$0x3] }
  0xc4   :  { %1014 = vmatmul.mubr.bf16.gmra.mxu0 %v4322_v30  ;;  %v4406_v30 = vld [vmem:[#allocation2 + $0x1e0] ss:$16 sps:$4 sm:$0xff]  }
  0xc5   :  { %1207 = vmatmul.mubr.bf16.gmra.mxu1 %v4323_v32  ;;  %1023 = vmatprep.mubr.bf16.mxu0 %v4324_v33  ;;  %v4438_v32 = vld [vmem:[#allocation8 + $0x78] sm:$0xff]  }
  0xc6   :  { %1216 = vmatprep.mubr.bf16.mxu1 %v4326_v34  ;;  %1612 = vmatpush2.bf16.msra.mxu0 %v4414_v43  ;;  %v4883_v33 = vld [vmem:[#allocation8 + $0x38] sm:$0xff]   ;;  %v4886_v34 = vld [vmem:[#allocation8 + $0x70] sm:$0xff]  }
  0xc7   :  { %1613 = vmatprep.subr.bf16.mxu0 %v4419_v44  ;;  %4166 = vmatprep.subr.bf16.mxu1 %v4438_v32 }
  0xc8   :  { %4174 = vmatpush3.bf16.msra.mxu1 %v4883_v33 }
  0xc9   :  { %4167 = vmatprep.subr.bf16.mxu1 %v4886_v34 }
  0xca   :  { %1614 = vmatpush2.bf16.msra.mxu0 %v4417_v45 }
  0xcb   :  { %1615 = vmatprep.subr.bf16.mxu0 %v4422_v46 }
  0xcc   :  { %1024 = vmatmul.mubr.bf16.gmra.mxu0 %v4328_v38  ;;  %4175 = vmatpush3.bf16.msra.mxu1 %v4888_v36  ;;  %v4892_v38 = vsub.s32 0, %v292_v37 }
  0xcd   :  { %1217 = vmatmul.mubr.bf16.gmra.mxu1 %v4329_v40  ;;  %1033 = vmatprep.mubr.bf16.mxu0 %v4330_v41  ;;  %v4897_v40 = vsub.s32 1, %v292_v37 }
  0xce   :  { %1226 = vmatprep.mubr.bf16.mxu1 %v4332_v42  ;;  %1616 = vmatpush2.bf16.msra.mxu0 %v4420_v51  ;;  %v4900_v41 = vrot.slane %v289_v39, %v4892_v38  ;;  %v4908_v51 = vld [vmem:[#allocation8 + $0x28] sm:$0xff]  }
  0xcf   :  { %1617 = vmatprep.subr.bf16.mxu0 %v4425_v52  ;;  %v4903_v44 = vrot.slane %v289_v39, %v4897_v40 }
  0xd2   :  { %1618 = vmatpush2.bf16.msra.mxu0 %v4423_v53 }
  0xd3   :  { %1619 = vmatprep.subr.bf16.mxu0 %v4428_v54 }
  0xd4   :  { %1034 = vmatmul.mubr.bf16.gmra.mxu0 %v4334_v47  ;;  %v4905_v47 = vld [vmem:[#allocation8 + $0x68] sm:$0xff]  }
  0xd5   :  { %1227 = vmatmul.mubr.bf16.gmra.mxu1 %v4335_v48  ;;  %1043 = vmatprep.mubr.bf16.mxu0 %v4336_v49 }
  0xd6   :  { %1236 = vmatprep.mubr.bf16.mxu1 %v4338_v50  ;;  %1620 = vmatpush2.bf16.msra.mxu0 %v4426_v59 }
  0xd7   :  { %1621 = vmatprep.subr.bf16.mxu0 %v4431_v60  ;;  %4168 = vmatprep.subr.bf16.mxu1 %v4905_v47 }
  0xd8   :  { %4176 = vmatpush3.bf16.msra.mxu1 %v4908_v51 }
  0xda   :  { %1622 = vmatpush2.bf16.msra.mxu0 %v4429_v61  ;;  %v4915_v61 = vld [vmem:[#allocation8 + $0x60] sm:$0xff]  }
  0xdb   :  { %1623 = vmatprep.subr.bf16.mxu0 %v4434_v62  ;;  %4169 = vmatprep.subr.bf16.mxu1 %v4915_v61 }
  0xdc   :  { %1044 = vmatmul.mubr.bf16.gmra.mxu0 %v4340_v55 }
  0xdd   :  { %1237 = vmatmul.mubr.bf16.gmra.mxu1 %v4341_v56  ;;  %1053 = vmatprep.mubr.bf16.mxu0 %v4342_v57 }
  0xde   :  { %1246 = vmatprep.mubr.bf16.mxu1 %v4344_v58  ;;  %1624 = vmatpush2.bf16.msra.mxu0 %v4432_v3 }
  0xdf   :  { %1625 = vmatprep.subr.bf16.mxu0 %v4437_v10 }
  0xe2   :  { %1626 = vmatpush2.bf16.msra.mxu0 %v4435_v13  ;;  %v4928_v13 = vld [vmem:[#allocation8 + $0x18] sm:$0xff]  }
  0xe3   :  { %3870 = vmatprep.subr.bf16.mxu0 %v4438_v32 }
  0xe4   :  { %1054 = vmatmul.mubr.bf16.gmra.mxu0 %v4346_v63 }
  0xe5   :  { %1247 = vmatmul.mubr.bf16.gmra.mxu1 %v4347_v0  ;;  %1063 = vmatprep.mubr.bf16.mxu0 %v4348_v1  ;;  %v4917_v0 = vld [vmem:[#allocation8 + $0x20] sm:$0xff]  }
  0xe6   :  { %1256 = vmatprep.mubr.bf16.mxu1 %v4350_v2  ;;  %4177 = vmatpush3.bf16.msra.mxu1 %v4917_v0 }
  0xec   :  { %1064 = vmatmul.mubr.bf16.gmra.mxu0 %v4352_v4  ;;  %v4919_v4 = vld [vmem:[#allocation8 + $0x58] sm:$0xff]  }
  0xed   :  { %1257 = vmatmul.mubr.bf16.gmra.mxu1 %v4353_v5  ;;  %1073 = vmatprep.mubr.bf16.mxu0 %v4354_v6 }
  0xee   :  { %1266 = vmatprep.mubr.bf16.mxu1 %v4356_v7  ;;  %4170 = vmatprep.subr.bf16.mxu1 %v4919_v4 }
  0xef   :  { %4178 = vmatpush3.bf16.msra.mxu1 %v4928_v13 }
  0xf4   :  { %1074 = vmatmul.mubr.bf16.gmra.mxu0 %v4361_v8 }
  0xf5   :  { %1267 = vmatmul.mubr.bf16.gmra.mxu1 %v4362_v9  ;;  %1083 = vmatprep.mubr.bf16.mxu0 %v4363_v11  ;;  %v4756_v11 = vmov 0  }
  0xf6   :  { %1276 = vmatprep.mubr.bf16.mxu1 %v4365_v12 }
  0xfc   :  { %1084 = vmatmul.mubr.bf16.gmra.mxu0 %v4370_v14 }
  0xfd   :  { %1277 = vmatmul.mubr.bf16.gmra.mxu1 %v4371_v15  ;;  %1093 = vmatprep.mubr.bf16.mxu0 %v4372_v16 }
  0xfe   :  { %1286 = vmatprep.mubr.bf16.mxu1 %v4374_v17  ;;  %v4931_v17 = vld [vmem:[#allocation8 + $0x50] sm:$0xff]  }
  0xff   :  { %4171 = vmatprep.subr.bf16.mxu1 %v4931_v17 }
 0x104   :  { %1094 = vmatmul.mubr.bf16.gmra.mxu0 %v4379_v18 }
 0x105   :  { %1287 = vmatmul.mubr.bf16.gmra.mxu1 %v4380_v19  ;;  %1103 = vmatprep.mubr.bf16.mxu0 %v4381_v20 }
 0x106   :  { %1296 = vmatprep.mubr.bf16.mxu1 %v4383_v21 }
 0x10c   :  { %1104 = vmatmul.mubr.bf16.gmra.mxu0 %v4388_v22 }
 0x10d   :  { %1297 = vmatmul.mubr.bf16.gmra.mxu1 %v4389_v23  ;;  %1113 = vmatprep.mubr.bf16.mxu0 %v4390_v24 }
 0x10e   :  { %1306 = vmatprep.mubr.bf16.mxu1 %v4392_v25  ;;  %v4937_v25 = vld [vmem:[#allocation8 + $0x10] sm:$0xff]  }
 0x10f   :  { %4179 = vmatpush3.bf16.msra.mxu1 %v4937_v25 }
 0x114   :  { %1114 = vmatmul.mubr.bf16.gmra.mxu0 %v4397_v26 }
 0x115   :  { %1307 = vmatmul.mubr.bf16.gmra.mxu1 %v4398_v27  ;;  %1123 = vmatprep.mubr.bf16.mxu0 %v4399_v28 }
 0x116   :  { %1316 = vmatprep.mubr.bf16.mxu1 %v4401_v29  ;;  %v4940_v29 = vld [vmem:[#allocation8 + $0x48] sm:$0xff]  }
 0x117   :  { %4172 = vmatprep.subr.bf16.mxu1 %v4940_v29 }
 0x11c   :  { %1124 = vmatmul.mubr.bf16.gmra.mxu0 %v4406_v30 }
 0x11d   :  { %1317 = vmatmul.mubr.bf16.gmra.mxu1 %v4407_v31 }
 0x164   :  { %v975_v42 = vpop.f32.mrf.mxu0 }
 0x165   :  { %v1168_v43 = vpop.f32.mrf.mxu1  ;;  %v976_v48 = vadd.f32 %v975_v42, %v4900_v41 }
 0x166   :  { %v977_v45 = vpop.f32.mrf.mxu0 }
 0x167   :  { %v1170_v46 = vpop.f32.mrf.mxu1  ;;  %v978_v52 = vadd.f32 %v977_v45, %v4903_v44  ;;  %v1169_v58 = vadd.f32 %v1168_v43, %v976_v48 }
 0x168   :  { %v979_v49 = vpop.f32.mrf.mxu0 }
 0x169   :  { %v1172_v50 = vpop.f32.mrf.mxu1  ;;  %v980_v53 = vadd.f32 %v979_v49, %v4900_v41  ;;  %v1171_v62 = vadd.f32 %v1170_v46, %v978_v52  ;;  %v4953_v46 = vld [vmem:[#allocation8 + $0x40] sm:$0xff]  }
 0x16a   :  { %v981_v54 = vpop.f32.mrf.mxu0 }
 0x16b   :  { %v1174_v55 = vpop.f32.mrf.mxu1  ;;  %v1173_v56 = vadd.f32 %v1172_v50, %v980_v53  ;;  %v982_v57 = vadd.f32 %v981_v54, %v4903_v44 }
 0x16c   :  { %v985_v59 = vpop.f32.mrf.mxu0 }
 0x16d   :  { %v1178_v60 = vpop.f32.mrf.mxu1  ;;  %v1175_v63 = vadd.f32 %v1174_v55, %v982_v57  ;;  %v1327_v1 = vpack.c.bf16 %v1173_v56, %v1169_v58  ;;  %v986_v6 = vadd.f32 %v985_v59, %v4900_v41  ;;  %v4959_v55 = vld [vmem:[#allocation8] sm:$0xff]  }
 0x16e   :  { %v987_v2 = vpop.f32.mrf.mxu0 }
 0x16f   :  { %v1180_v3 = vpop.f32.mrf.mxu1  ;;  %v1328_v5 = vpack.c.bf16 %v1175_v63, %v1171_v62  ;;  %v988_v9 = vadd.f32 %v987_v2, %v4903_v44  ;;  %v1359_v14 = vmax.bf16 %v4756_v11, %v1327_v1  ;;  %v1179_v20 = vadd.f32 %v1178_v60, %v986_v6 }
 0x170   :  { %v989_v7 = vpop.f32.mrf.mxu0 }
 0x171   :  { %v1182_v8 = vpop.f32.mrf.mxu1  ;;  %v990_v10 = vadd.f32 %v989_v7, %v4900_v41  ;;  %v1360_v12 = vmax.bf16 %v4756_v11, %v1328_v5  ;;  %v1181_v23 = vadd.f32 %v1180_v3, %v988_v9 }
 0x172   :  { %v991_v15 = vpop.f32.mrf.mxu0 }
 0x173   :  { %v1184_v16 = vpop.f32.mrf.mxu1  ;;  %v1183_v18 = vadd.f32 %v1182_v8, %v990_v10  ;;  %v992_v19 = vadd.f32 %v991_v15, %v4903_v44  ;;  %1627 = vmatprep.mubr.bf16.mxu0 %v1360_v12 }
 0x174   :  { %v995_v21 = vpop.f32.mrf.mxu0  ;;  %1628 = vmatmul.mubr.bf16.vlgmr.msra.gmra.mxu0 %v1359_v14 }
 0x175   :  { %v1188_v22 = vpop.f32.mrf.mxu1  ;;  %v1185_v24 = vadd.f32 %v1184_v16, %v992_v19  ;;  %3871 = vmatpush3.bf16.msra.mxu0 %v4883_v33  ;;  %v1329_v26 = vpack.c.bf16 %v1183_v18, %v1179_v20  ;;  %v996_v31 = vadd.f32 %v995_v21, %v4900_v41 }
 0x176   :  { %v997_v27 = vpop.f32.mrf.mxu0  ;;  %3872 = vmatprep.subr.bf16.mxu0 %v4886_v34  ;;  %v4949_v34 = vld [vmem:[#allocation8 + $0x8] sm:$0xff]  }
 0x177   :  { %v1190_v28 = vpop.f32.mrf.mxu1  ;;  %v1330_v30 = vpack.c.bf16 %v1185_v24, %v1181_v23  ;;  %v998_v33 = vadd.f32 %v997_v27, %v4903_v44  ;;  %v1361_v45 = vmax.bf16 %v4756_v11, %v1329_v26  ;;  %4180 = vmatpush3.bf16.msra.mxu1 %v4949_v34  ;;  %v1189_v50 = vadd.f32 %v1188_v22, %v996_v31 }
 0x178   :  { %v999_v32 = vpop.f32.mrf.mxu0  ;;  %4173 = vmatprep.subr.bf16.mxu1 %v4953_v46 }
 0x179   :  { %v1192_v35 = vpop.f32.mrf.mxu1  ;;  %v1000_v37 = vadd.f32 %v999_v32, %v4900_v41  ;;  %v1362_v39 = vmax.bf16 %v4756_v11, %v1330_v30  ;;  %3873 = vmatpush3.bf16.msra.mxu0 %v4888_v36  ;;  %v1191_v36 = vadd.f32 %v1190_v28, %v998_v33 }
 0x17a   :  { %v1001_v42 = vpop.f32.mrf.mxu0  ;;  %3874 = vmatprep.subr.bf16.mxu0 %v4905_v47 }
 0x17b   :  { %v1194_v43 = vpop.f32.mrf.mxu1  ;;  %v1193_v48 = vadd.f32 %v1192_v35, %v1000_v37  ;;  %v1002_v49 = vadd.f32 %v1001_v42, %v4903_v44  ;;  %1637 = vmatprep.mubr.bf16.mxu0 %v1362_v39  ;;  %4181 = vmatpush3.bf16.msra.mxu1 %v4959_v55 }
 0x17c   :  { %v1005_v52 = vpop.f32.mrf.mxu0  ;;  %1638 = vmatmul.mubr.bf16.gmra.mxu0 %v1361_v45 }
 0x17d   :  { %v1198_v53 = vpop.f32.mrf.mxu1  ;;  %v1195_v54 = vadd.f32 %v1194_v43, %v1002_v49  ;;  %3875 = vmatpush3.bf16.msra.mxu0 %v4908_v51  ;;  %v1331_v47 = vpack.c.bf16 %v1193_v48, %v1189_v50  ;;  %v1006_v59 = vadd.f32 %v1005_v52, %v4900_v41 }
 0x17e   :  { %v1007_v56 = vpop.f32.mrf.mxu0  ;;  %3876 = vmatprep.subr.bf16.mxu0 %v4915_v61 }
 0x17f   :  { %v1200_v57 = vpop.f32.mrf.mxu1  ;;  %v1332_v58 = vpack.c.bf16 %v1195_v54, %v1191_v36  ;;  %v1008_v63 = vadd.f32 %v1007_v56, %v4903_v44  ;;  %v1363_v5 = vmax.bf16 %v4756_v11, %v1331_v47  ;;  %v1199_v7 = vadd.f32 %v1198_v53, %v1006_v59 }
 0x180   :  { %v1009_v60 = vpop.f32.mrf.mxu0 }
 0x181   :  { %v1202_v62 = vpop.f32.mrf.mxu1  ;;  %v1010_v1 = vadd.f32 %v1009_v60, %v4900_v41  ;;  %v1364_v51 = vmax.bf16 %v4756_v11, %v1332_v58  ;;  %3877 = vmatpush3.bf16.msra.mxu0 %v4917_v0  ;;  %v1201_v10 = vadd.f32 %v1200_v57, %v1008_v63 }
 0x182   :  { %v1011_v2 = vpop.f32.mrf.mxu0  ;;  %3878 = vmatprep.subr.bf16.mxu0 %v4919_v4 }
 0x183   :  { %v1204_v3 = vpop.f32.mrf.mxu1  ;;  %v1203_v61 = vadd.f32 %v1202_v62, %v1010_v1  ;;  %v1012_v6 = vadd.f32 %v1011_v2, %v4903_v44  ;;  %1647 = vmatprep.mubr.bf16.mxu0 %v1364_v51 }
 0x184   :  { %v1015_v8 = vpop.f32.mrf.mxu0  ;;  %1648 = vmatmul.mubr.bf16.gmra.mxu0 %v1363_v5 }
 0x185   :  { %v1208_v9 = vpop.f32.mrf.mxu1  ;;  %v1205_v12 = vadd.f32 %v1204_v3, %v1012_v6  ;;  %3879 = vmatpush3.bf16.msra.mxu0 %v4928_v13  ;;  %v1333_v14 = vpack.c.bf16 %v1203_v61, %v1199_v7  ;;  %v1016_v4 = vadd.f32 %v1015_v8, %v4900_v41 }
 0x186   :  { %v1017_v0 = vpop.f32.mrf.mxu0  ;;  %3880 = vmatprep.subr.bf16.mxu0 %v4931_v17 }
 0x187   :  { %v1210_v15 = vpop.f32.mrf.mxu1  ;;  %v1334_v16 = vpack.c.bf16 %v1205_v12, %v1201_v10  ;;  %v1018_v20 = vadd.f32 %v1017_v0, %v4903_v44  ;;  %v1365_v24 = vmax.bf16 %v4756_v11, %v1333_v14  ;;  %v1209_v27 = vadd.f32 %v1208_v9, %v1016_v4 }
 0x188   :  { %v1019_v18 = vpop.f32.mrf.mxu0 }
 0x189   :  { %v1212_v19 = vpop.f32.mrf.mxu1  ;;  %v1020_v21 = vadd.f32 %v1019_v18, %v4900_v41  ;;  %v1366_v22 = vmax.bf16 %v4756_v11, %v1334_v16  ;;  %3881 = vmatpush3.bf16.msra.mxu0 %v4937_v25  ;;  %v1211_v31 = vadd.f32 %v1210_v15, %v1018_v20 }
 0x18a   :  { %v1021_v23 = vpop.f32.mrf.mxu0  ;;  %3882 = vmatprep.subr.bf16.mxu0 %v4940_v29 }
 0x18b   :  { %v1214_v13 = vpop.f32.mrf.mxu1  ;;  %v1213_v17 = vadd.f32 %v1212_v19, %v1020_v21  ;;  %v1022_v26 = vadd.f32 %v1021_v23, %v4903_v44  ;;  %1657 = vmatprep.mubr.bf16.mxu0 %v1366_v22 }
 0x18c   :  { %v1025_v28 = vpop.f32.mrf.mxu0  ;;  %1658 = vmatmul.mubr.bf16.gmra.mxu0 %v1365_v24 }
 0x18d   :  { %v1218_v30 = vpop.f32.mrf.mxu1  ;;  %v1215_v32 = vadd.f32 %v1214_v13, %v1022_v26  ;;  %3883 = vmatpush3.bf16.msra.mxu0 %v4949_v34  ;;  %v1335_v35 = vpack.c.bf16 %v1213_v17, %v1209_v27  ;;  %v1026_v29 = vadd.f32 %v1025_v28, %v4900_v41 }
 0x18e   :  { %v1027_v25 = vpop.f32.mrf.mxu0  ;;  %3884 = vmatprep.subr.bf16.mxu0 %v4953_v46 }
 0x18f   :  { %v1220_v33 = vpop.f32.mrf.mxu1  ;;  %v1336_v37 = vpack.c.bf16 %v1215_v32, %v1211_v31  ;;  %v1028_v43 = vadd.f32 %v1027_v25, %v4903_v44  ;;  %v1367_v50 = vmax.bf16 %v4756_v11, %v1335_v35  ;;  %v1219_v53 = vadd.f32 %v1218_v30, %v1026_v29 }
 0x190   :  { %v1029_v39 = vpop.f32.mrf.mxu0 }
 0x191   :  { %v1222_v42 = vpop.f32.mrf.mxu1  ;;  %v1030_v45 = vadd.f32 %v1029_v39, %v4900_v41  ;;  %v1368_v48 = vmax.bf16 %v4756_v11, %v1336_v37  ;;  %3885 = vmatpush3.bf16.msra.mxu0 %v4959_v55  ;;  %v1221_v47 = vadd.f32 %v1220_v33, %v1028_v43 }
 0x192   :  { %v1031_v49 = vpop.f32.mrf.mxu0 }
 0x193   :  { %v1224_v34 = vpop.f32.mrf.mxu1  ;;  %v1223_v52 = vadd.f32 %v1222_v42, %v1030_v45  ;;  %v1032_v46 = vadd.f32 %v1031_v49, %v4903_v44  ;;  %1667 = vmatprep.mubr.bf16.mxu0 %v1368_v48 }
 0x194   :  { %v1035_v36 = vpop.f32.mrf.mxu0  ;;  %1668 = vmatmul.mubr.bf16.gmra.mxu0 %v1367_v50 }
 0x195   :  { %v1228_v54 = vpop.f32.mrf.mxu1  ;;  %v1225_v56 = vadd.f32 %v1224_v34, %v1032_v46  ;;  %v1337_v57 = vpack.c.bf16 %v1223_v52, %v1219_v53  ;;  %v1036_v55 = vadd.f32 %v1035_v36, %v4900_v41 }
 0x196   :  { %v1037_v58 = vpop.f32.mrf.mxu0 }
 0x197   :  { %v1230_v59 = vpop.f32.mrf.mxu1  ;;  %v1338_v60 = vpack.c.bf16 %v1225_v56, %v1221_v47  ;;  %v1038_v1 = vadd.f32 %v1037_v58, %v4903_v44  ;;  %v1369_v61 = vmax.bf16 %v4756_v11, %v1337_v57  ;;  %v1229_v8 = vadd.f32 %v1228_v54, %v1036_v55 }
 0x198   :  { %v1039_v62 = vpop.f32.mrf.mxu0 }
 0x199   :  { %v1232_v63 = vpop.f32.mrf.mxu1  ;;  %v1040_v51 = vadd.f32 %v1039_v62, %v4900_v41  ;;  %v1370_v2 = vmax.bf16 %v4756_v11, %v1338_v60  ;;  %v1231_v12 = vadd.f32 %v1230_v59, %v1038_v1 }
 0x19a   :  { %v1041_v3 = vpop.f32.mrf.mxu0 }
 0x19b   :  { %v1234_v5 = vpop.f32.mrf.mxu1  ;;  %v1233_v6 = vadd.f32 %v1232_v63, %v1040_v51  ;;  %v1042_v7 = vadd.f32 %v1041_v3, %v4903_v44  ;;  %1677 = vmatprep.mubr.bf16.mxu0 %v1370_v2 }
 0x19c   :  { %v1045_v9 = vpop.f32.mrf.mxu0  ;;  %1678 = vmatmul.mubr.bf16.gmra.mxu0 %v1369_v61 }
 0x19d   :  { %v1238_v10 = vpop.f32.mrf.mxu1  ;;  %v1235_v14 = vadd.f32 %v1234_v5, %v1042_v7  ;;  %v1339_v0 = vpack.c.bf16 %v1233_v6, %v1229_v8  ;;  %v1046_v18 = vadd.f32 %v1045_v9, %v4900_v41 }
 0x19e   :  { %v1047_v15 = vpop.f32.mrf.mxu0 }
 0x19f   :  { %v1240_v16 = vpop.f32.mrf.mxu1  ;;  %v1340_v4 = vpack.c.bf16 %v1235_v14, %v1231_v12  ;;  %v1048_v21 = vadd.f32 %v1047_v15, %v4903_v44  ;;  %v1371_v17 = vmax.bf16 %v4756_v11, %v1339_v0  ;;  %v1239_v28 = vadd.f32 %v1238_v10, %v1046_v18 }
 0x1a0   :  { %v1049_v19 = vpop.f32.mrf.mxu0 }
 0x1a1   :  { %v1242_v20 = vpop.f32.mrf.mxu1  ;;  %v1050_v22 = vadd.f32 %v1049_v19, %v4900_v41  ;;  %v1372_v23 = vmax.bf16 %v4756_v11, %v1340_v4  ;;  %v1241_v32 = vadd.f32 %v1240_v16, %v1048_v21 }
 0x1a2   :  { %v1051_v13 = vpop.f32.mrf.mxu0 }
 0x1a3   :  { %v1244_v24 = vpop.f32.mrf.mxu1  ;;  %v1243_v26 = vadd.f32 %v1242_v20, %v1050_v22  ;;  %v1052_v27 = vadd.f32 %v1051_v13, %v4903_v44  ;;  %1687 = vmatprep.mubr.bf16.mxu0 %v1372_v23 }
 0x1a4   :  { %v1055_v30 = vpop.f32.mrf.mxu0  ;;  %1688 = vmatmul.mubr.bf16.gmra.mxu0 %v1371_v17 }
 0x1a5   :  { %v1248_v31 = vpop.f32.mrf.mxu1  ;;  %v1245_v35 = vadd.f32 %v1244_v24, %v1052_v27  ;;  %v1341_v25 = vpack.c.bf16 %v1243_v26, %v1239_v28  ;;  %v1056_v39 = vadd.f32 %v1055_v30, %v4900_v41 }
 0x1a6   :  { %v1057_v33 = vpop.f32.mrf.mxu0 }
 0x1a7   :  { %v1250_v37 = vpop.f32.mrf.mxu1  ;;  %v1342_v29 = vpack.c.bf16 %v1245_v35, %v1241_v32  ;;  %v1058_v45 = vadd.f32 %v1057_v33, %v4903_v44  ;;  %v1373_v52 = vmax.bf16 %v4756_v11, %v1341_v25  ;;  %v1249_v36 = vadd.f32 %v1248_v31, %v1056_v39 }
 0x1a8   :  { %v1059_v42 = vpop.f32.mrf.mxu0 }
 0x1a9   :  { %v1252_v43 = vpop.f32.mrf.mxu1  ;;  %v1060_v48 = vadd.f32 %v1059_v42, %v4900_v41  ;;  %v1374_v49 = vmax.bf16 %v4756_v11, %v1342_v29  ;;  %v1251_v56 = vadd.f32 %v1250_v37, %v1058_v45 }
 0x1aa   :  { %v1061_v34 = vpop.f32.mrf.mxu0 }
 0x1ab   :  { %v1254_v50 = vpop.f32.mrf.mxu1  ;;  %v1253_v46 = vadd.f32 %v1252_v43, %v1060_v48  ;;  %v1062_v53 = vadd.f32 %v1061_v34, %v4903_v44  ;;  %1697 = vmatprep.mubr.bf16.mxu0 %v1374_v49 }
 0x1ac   :  { %v1065_v54 = vpop.f32.mrf.mxu0  ;;  %1698 = vmatmul.mubr.bf16.gmra.mxu0 %v1373_v52 }
 0x1ad   :  { %v1258_v47 = vpop.f32.mrf.mxu1  ;;  %v1255_v57 = vadd.f32 %v1254_v50, %v1062_v53  ;;  %v1343_v58 = vpack.c.bf16 %v1253_v46, %v1249_v36  ;;  %v1066_v62 = vadd.f32 %v1065_v54, %v4900_v41 }
 0x1ae   :  { %v1067_v59 = vpop.f32.mrf.mxu0 }
 0x1af   :  { %v1260_v60 = vpop.f32.mrf.mxu1  ;;  %v1344_v55 = vpack.c.bf16 %v1255_v57, %v1251_v56  ;;  %v1068_v51 = vadd.f32 %v1067_v59, %v4903_v44  ;;  %v1375_v6 = vmax.bf16 %v4756_v11, %v1343_v58  ;;  %v1259_v9 = vadd.f32 %v1258_v47, %v1066_v62 }
 0x1b0   :  { %v1069_v63 = vpop.f32.mrf.mxu0 }
 0x1b1   :  { %v1262_v1 = vpop.f32.mrf.mxu1  ;;  %v1070_v2 = vadd.f32 %v1069_v63, %v4900_v41  ;;  %v1376_v3 = vmax.bf16 %v4756_v11, %v1344_v55  ;;  %v1261_v14 = vadd.f32 %v1260_v60, %v1068_v51 }
 0x1b2   :  { %v1071_v5 = vpop.f32.mrf.mxu0 }
 0x1b3   :  { %v1264_v61 = vpop.f32.mrf.mxu1  ;;  %v1263_v7 = vadd.f32 %v1262_v1, %v1070_v2  ;;  %v1072_v8 = vadd.f32 %v1071_v5, %v4903_v44  ;;  %1707 = vmatprep.mubr.bf16.mxu0 %v1376_v3 }
 0x1b4   :  { %v1075_v10 = vpop.f32.mrf.mxu0  ;;  %1708 = vmatmul.mubr.bf16.gmra.mxu0 %v1375_v6 }
 0x1b5   :  { %v1268_v12 = vpop.f32.mrf.mxu1  ;;  %v1265_v0 = vadd.f32 %v1264_v61, %v1072_v8  ;;  %v1345_v15 = vpack.c.bf16 %v1263_v7, %v1259_v9  ;;  %v1076_v19 = vadd.f32 %v1075_v10, %v4900_v41 }
 0x1b6   :  { %v1077_v16 = vpop.f32.mrf.mxu0 }
 0x1b7   :  { %v1270_v4 = vpop.f32.mrf.mxu1  ;;  %v1346_v18 = vpack.c.bf16 %v1265_v0, %v1261_v14  ;;  %v1078_v22 = vadd.f32 %v1077_v16, %v4903_v44  ;;  %v1377_v26 = vmax.bf16 %v4756_v11, %v1345_v15  ;;  %v1269_v30 = vadd.f32 %v1268_v12, %v1076_v19 }
 0x1b8   :  { %v1079_v20 = vpop.f32.mrf.mxu0 }
 0x1b9   :  { %v1272_v21 = vpop.f32.mrf.mxu1  ;;  %v1080_v23 = vadd.f32 %v1079_v20, %v4900_v41  ;;  %v1378_v13 = vmax.bf16 %v4756_v11, %v1346_v18  ;;  %v1271_v35 = vadd.f32 %v1270_v4, %v1078_v22 }
 0x1ba   :  { %v1081_v24 = vpop.f32.mrf.mxu0 }
 0x1bb   :  { %v1274_v17 = vpop.f32.mrf.mxu1  ;;  %v1273_v27 = vadd.f32 %v1272_v21, %v1080_v23  ;;  %v1082_v28 = vadd.f32 %v1081_v24, %v4903_v44  ;;  %1717 = vmatprep.mubr.bf16.mxu0 %v1378_v13 }
 0x1bc   :  { %v1085_v31 = vpop.f32.mrf.mxu0  ;;  %1718 = vmatmul.mubr.bf16.gmra.mxu0 %v1377_v26 }
 0x1bd   :  { %v1278_v32 = vpop.f32.mrf.mxu1  ;;  %v1275_v25 = vadd.f32 %v1274_v17, %v1082_v28  ;;  %v1347_v33 = vpack.c.bf16 %v1273_v27, %v1269_v30  ;;  %v1086_v42 = vadd.f32 %v1085_v31, %v4900_v41 }
 0x1be   :  { %v1087_v37 = vpop.f32.mrf.mxu0 }
 0x1bf   :  { %v1280_v29 = vpop.f32.mrf.mxu1  ;;  %v1348_v39 = vpack.c.bf16 %v1275_v25, %v1271_v35  ;;  %v1088_v48 = vadd.f32 %v1087_v37, %v4903_v44  ;;  %v1379_v46 = vmax.bf16 %v4756_v11, %v1347_v33  ;;  %v1279_v54 = vadd.f32 %v1278_v32, %v1086_v42 }
 0x1c0   :  { %v1089_v43 = vpop.f32.mrf.mxu0 }
 0x1c1   :  { %v1282_v45 = vpop.f32.mrf.mxu1  ;;  %v1090_v49 = vadd.f32 %v1089_v43, %v4900_v41  ;;  %v1380_v34 = vmax.bf16 %v4756_v11, %v1348_v39  ;;  %v1281_v57 = vadd.f32 %v1280_v29, %v1088_v48 }
 0x1c2   :  { %v1091_v50 = vpop.f32.mrf.mxu0 }
 0x1c3   :  { %v1284_v52 = vpop.f32.mrf.mxu1  ;;  %v1283_v53 = vadd.f32 %v1282_v45, %v1090_v49  ;;  %v1092_v36 = vadd.f32 %v1091_v50, %v4903_v44  ;;  %1727 = vmatprep.mubr.bf16.mxu0 %v1380_v34 }
 0x1c4   :  { %v1095_v47 = vpop.f32.mrf.mxu0  ;;  %1728 = vmatmul.mubr.bf16.gmra.mxu0 %v1379_v46 }
 0x1c5   :  { %v1288_v56 = vpop.f32.mrf.mxu1  ;;  %v1285_v58 = vadd.f32 %v1284_v52, %v1092_v36  ;;  %v1349_v59 = vpack.c.bf16 %v1283_v53, %v1279_v54  ;;  %v1096_v63 = vadd.f32 %v1095_v47, %v4900_v41 }
 0x1c6   :  { %v1097_v60 = vpop.f32.mrf.mxu0 }
 0x1c7   :  { %v1290_v55 = vpop.f32.mrf.mxu1  ;;  %v1350_v62 = vpack.c.bf16 %v1285_v58, %v1281_v57  ;;  %v1098_v2 = vadd.f32 %v1097_v60, %v4903_v44  ;;  %v1381_v7 = vmax.bf16 %v4756_v11, %v1349_v59  ;;  %v1289_v10 = vadd.f32 %v1288_v56, %v1096_v63 }
 0x1c8   :  { %v1099_v1 = vpop.f32.mrf.mxu0 }
 0x1c9   :  { %v1292_v51 = vpop.f32.mrf.mxu1  ;;  %v1100_v3 = vadd.f32 %v1099_v1, %v4900_v41  ;;  %v1382_v5 = vmax.bf16 %v4756_v11, %v1350_v62  ;;  %v1291_v0 = vadd.f32 %v1290_v55, %v1098_v2 }
 0x1ca   :  { %v1101_v61 = vpop.f32.mrf.mxu0 }
 0x1cb   :  { %v1294_v6 = vpop.f32.mrf.mxu1  ;;  %v1293_v8 = vadd.f32 %v1292_v51, %v1100_v3  ;;  %v1102_v9 = vadd.f32 %v1101_v61, %v4903_v44  ;;  %1737 = vmatprep.mubr.bf16.mxu0 %v1382_v5 }
 0x1cc   :  { %v1105_v12 = vpop.f32.mrf.mxu0  ;;  %1738 = vmatmul.mubr.bf16.gmra.mxu0 %v1381_v7 }
 0x1cd   :  { %v1298_v14 = vpop.f32.mrf.mxu1  ;;  %v1295_v15 = vadd.f32 %v1294_v6, %v1102_v9  ;;  %v1351_v16 = vpack.c.bf16 %v1293_v8, %v1289_v10  ;;  %v1106_v20 = vadd.f32 %v1105_v12, %v4900_v41 }
 0x1ce   :  { %v1107_v4 = vpop.f32.mrf.mxu0 }
 0x1cf   :  { %v1300_v18 = vpop.f32.mrf.mxu1  ;;  %v1352_v19 = vpack.c.bf16 %v1295_v15, %v1291_v0  ;;  %v1108_v23 = vadd.f32 %v1107_v4, %v4903_v44  ;;  %v1383_v17 = vmax.bf16 %v4756_v11, %v1351_v16  ;;  %v1299_v31 = vadd.f32 %v1298_v14, %v1106_v20 }
 0x1d0   :  { %v1109_v21 = vpop.f32.mrf.mxu0 }
 0x1d1   :  { %v1302_v22 = vpop.f32.mrf.mxu1  ;;  %v1110_v13 = vadd.f32 %v1109_v21, %v4900_v41  ;;  %v1384_v24 = vmax.bf16 %v4756_v11, %v1352_v19  ;;  %v1301_v25 = vadd.f32 %v1300_v18, %v1108_v23  ;;  %v1423_v18 = vld [vmem:[%s5536_s4] sm:$0x3] }
 0x1d2   :  { %v1111_v26 = vpop.f32.mrf.mxu0  ;;  %v5059_v21 = vrot.slane %v1423_v18, %v4897_v40 }
 0x1d3   :  { %v1304_v27 = vpop.f32.mrf.mxu1  ;;  %v1303_v28 = vadd.f32 %v1302_v22, %v1110_v13  ;;  %v1112_v30 = vadd.f32 %v1111_v26, %v4903_v44  ;;  %1747 = vmatprep.mubr.bf16.mxu0 %v1384_v24 }
 0x1d4   :  { %v1115_v32 = vpop.f32.mrf.mxu0  ;;  %1748 = vmatmul.mubr.bf16.gmra.mxu0 %v1383_v17  ;;  %v4454_v17 = vld [vmem:[#allocation10 + $0x38] sm:$0xff]  }
 0x1d5   :  { %v1308_v35 = vpop.f32.mrf.mxu1  ;;  %v1305_v33 = vadd.f32 %v1304_v27, %v1112_v30  ;;  %v1353_v37 = vpack.c.bf16 %v1303_v28, %v1299_v31  ;;  %v1116_v43 = vadd.f32 %v1115_v32, %v4900_v41  ;;  %4118 = vmatprep.subr.bf16.mxu0 %v4454_v17 }
 0x1d6   :  { %v1117_v29 = vpop.f32.mrf.mxu0 }
 0x1d7   :  { %v1310_v39 = vpop.f32.mrf.mxu1  ;;  %v1354_v42 = vpack.c.bf16 %v1305_v33, %v1301_v25  ;;  %v1118_v49 = vadd.f32 %v1117_v29, %v4903_v44  ;;  %v1385_v52 = vmax.bf16 %v4756_v11, %v1353_v37  ;;  %v1309_v47 = vadd.f32 %v1308_v35, %v1116_v43  ;;  %v4455_v37 = vld [vmem:[#allocation10 + $0x30] sm:$0xff]  }
 0x1d8   :  { %v1119_v45 = vpop.f32.mrf.mxu0 }
 0x1d9   :  { %v1312_v48 = vpop.f32.mrf.mxu1  ;;  %v1120_v34 = vadd.f32 %v1119_v45, %v4900_v41  ;;  %v1386_v50 = vmax.bf16 %v4756_v11, %v1354_v42  ;;  %v1311_v58 = vadd.f32 %v1310_v39, %v1118_v49 }
 0x1da   :  { %v1121_v46 = vpop.f32.mrf.mxu0 }
 0x1db   :  { %v1314_v53 = vpop.f32.mrf.mxu1  ;;  %v1313_v36 = vadd.f32 %v1312_v48, %v1120_v34  ;;  %v1122_v54 = vadd.f32 %v1121_v46, %v4903_v44  ;;  %1757 = vmatprep.mubr.bf16.mxu0 %v1386_v50  ;;  %v4456_v34 = vld [vmem:[#allocation10 + $0x28] sm:$0xff]  }
 0x1dc   :  { %v1125_v56 = vpop.f32.mrf.mxu0  ;;  %1758 = vmatmul.mubr.bf16.gmra.mxu0 %v1385_v52 }
 0x1dd   :  { %v1318_v57 = vpop.f32.mrf.mxu1  ;;  %v1315_v59 = vadd.f32 %v1314_v53, %v1122_v54  ;;  %v1355_v60 = vpack.c.bf16 %v1313_v36, %v1309_v47  ;;  %v1126_v1 = vadd.f32 %v1125_v56, %v4900_v41 }
 0x1de   :  { %v1127_v55 = vpop.f32.mrf.mxu0 }
 0x1df   :  { %v1320_v62 = vpop.f32.mrf.mxu1  ;;  %v1356_v63 = vpack.c.bf16 %v1315_v59, %v1311_v58  ;;  %v1128_v3 = vadd.f32 %v1127_v55, %v4903_v44  ;;  %v1387_v6 = vmax.bf16 %v4756_v11, %v1355_v60  ;;  %v1319_v10 = vadd.f32 %v1318_v57, %v1126_v1 }
 0x1e0   :  { %v1129_v51 = vpop.f32.mrf.mxu0 }
 0x1e1   :  { %v1322_v2 = vpop.f32.mrf.mxu1  ;;  %v1130_v5 = vadd.f32 %v1129_v51, %v4900_v41  ;;  %v1388_v61 = vmax.bf16 %v4756_v11, %v1356_v63  ;;  %v1321_v14 = vadd.f32 %v1320_v62, %v1128_v3 }
 0x1e2   :  { %v1131_v7 = vpop.f32.mrf.mxu0 }
 0x1e3   :  { %v1323_v8 = vadd.f32 %v1322_v2, %v1130_v5  ;;  %v1132_v9 = vadd.f32 %v1131_v7, %v4903_v44  ;;  %1767 = vmatprep.mubr.bf16.mxu0 %v1388_v61  ;;  %v1324_v12 = vpop.f32.mrf.mxu1  ;;  %v5056_v44 = vrot.slane %v1423_v18, %v4892_v38 }
 0x1e4   :  { %1768 = vmatmul.mubr.bf16.gmra.mxu0 %v1387_v6 }
 0x1e5   :  { %v1325_v0 = vadd.f32 %v1324_v12, %v1132_v9  ;;  %v1357_v15 = vpack.c.bf16 %v1323_v8, %v1319_v10 }
 0x1e7   :  { %v1358_v16 = vpack.c.bf16 %v1325_v0, %v1321_v14  ;;  %v1389_v41 = vmax.bf16 %v4756_v11, %v1357_v15 }
 0x1e9   :  { %v1390_v4 = vmax.bf16 %v4756_v11, %v1358_v16 }
 0x1eb   :  { %1777 = vmatprep.mubr.bf16.mxu0 %v1390_v4 }
 0x1ec   :  { %1778 = vmatmul.mubr.bf16.gmra.mxu0 %v1389_v41 }
 0x234   :  { %v1629_v19 = vpop.f32.mrf.mxu0 }
 0x235   :  { %v1630_v13 = vadd.f32 %v1629_v19, %v5056_v44 }
 0x236   :  { %v1631_v20 = vpop.f32.mrf.mxu0 }
 0x237   :  { %v1632_v26 = vadd.f32 %v1631_v20, %v5059_v21 }
 0x238   :  { %v1633_v22 = vpop.f32.mrf.mxu0 }
 0x239   :  { %v1634_v23 = vadd.f32 %v1633_v22, %v5056_v44 }
 0x23a   :  { %v1635_v24 = vpop.f32.mrf.mxu0 }
 0x23b   :  { %v1636_v27 = vadd.f32 %v1635_v24, %v5059_v21  ;;  %v1788_v28 = vpack.c.bf16 %v1634_v23, %v1630_v13 }
 0x23c   :  { %v1639_v30 = vpop.f32.mrf.mxu0 }
 0x23d   :  { %v1789_v31 = vpack.c.bf16 %v1636_v27, %v1632_v26  ;;  %v1820_v25 = vmax.bf16 %v4756_v11, %v1788_v28  ;;  %v1640_v39 = vadd.f32 %v1639_v30, %v5056_v44 }
 0x23e   :  { %v1641_v32 = vpop.f32.mrf.mxu0 }
 0x23f   :  { %v1821_v35 = vmax.bf16 %v4756_v11, %v1789_v31  ;;  %v1642_v43 = vadd.f32 %v1641_v32, %v5059_v21 }
 0x240   :  { %v1643_v33 = vpop.f32.mrf.mxu0 }
 0x241   :  { %v1644_v29 = vadd.f32 %v1643_v33, %v5056_v44  ;;  %2019 = vmatprep.mubr.bf16.mxu0 %v1821_v35 }
 0x242   :  { %v1645_v42 = vpop.f32.mrf.mxu0  ;;  %2020 = vmatmul.mubr.bf16.vlgmr.msra.gmra.mxu0 %v1820_v25 }
 0x243   :  { %v1646_v45 = vadd.f32 %v1645_v42, %v5059_v21  ;;  %4119 = vmatpush3.bf16.msra.mxu0 %v4454_v17  ;;  %v1790_v48 = vpack.c.bf16 %v1644_v29, %v1640_v39 }
 0x244   :  { %v1649_v49 = vpop.f32.mrf.mxu0  ;;  %4120 = vmatprep.subr.bf16.mxu0 %v4455_v37 }
 0x245   :  { %v1791_v50 = vpack.c.bf16 %v1646_v45, %v1642_v43  ;;  %v1822_v53 = vmax.bf16 %v4756_v11, %v1790_v48  ;;  %v1650_v47 = vadd.f32 %v1649_v49, %v5056_v44 }
 0x246   :  { %v1651_v52 = vpop.f32.mrf.mxu0 }
 0x247   :  { %v1823_v46 = vmax.bf16 %v4756_v11, %v1791_v50  ;;  %4121 = vmatpush3.bf16.msra.mxu0 %v4455_v37  ;;  %v1652_v57 = vadd.f32 %v1651_v52, %v5059_v21 }
 0x248   :  { %v1653_v36 = vpop.f32.mrf.mxu0  ;;  %4122 = vmatprep.subr.bf16.mxu0 %v4456_v34 }
 0x249   :  { %v1654_v54 = vadd.f32 %v1653_v36, %v5056_v44  ;;  %2027 = vmatprep.mubr.bf16.mxu0 %v1823_v46 }
 0x24a   :  { %v1655_v56 = vpop.f32.mrf.mxu0  ;;  %2028 = vmatmul.mubr.bf16.gmra.mxu0 %v1822_v53 }
 0x24b   :  { %v1656_v58 = vadd.f32 %v1655_v56, %v5059_v21  ;;  %4123 = vmatpush3.bf16.msra.mxu0 %v4456_v34  ;;  %v1792_v59 = vpack.c.bf16 %v1654_v54, %v1650_v47 }
 0x24c   :  { %v1659_v60 = vpop.f32.mrf.mxu0 }
 0x24d   :  { %v1793_v55 = vpack.c.bf16 %v1656_v58, %v1652_v57  ;;  %v1824_v1 = vmax.bf16 %v4756_v11, %v1792_v59  ;;  %v1660_v3 = vadd.f32 %v1659_v60, %v5056_v44 }
 0x24e   :  { %v1661_v62 = vpop.f32.mrf.mxu0 }
 0x24f   :  { %v1825_v63 = vmax.bf16 %v4756_v11, %v1793_v55  ;;  %v1662_v61 = vadd.f32 %v1661_v62, %v5059_v21 }
 0x250   :  { %v1663_v51 = vpop.f32.mrf.mxu0 }
 0x251   :  { %v1664_v2 = vadd.f32 %v1663_v51, %v5056_v44  ;;  %2035 = vmatprep.mubr.bf16.mxu0 %v1825_v63 }
 0x252   :  { %v1665_v5 = vpop.f32.mrf.mxu0  ;;  %2036 = vmatmul.mubr.bf16.gmra.mxu0 %v1824_v1 }
 0x253   :  { %v1666_v6 = vadd.f32 %v1665_v5, %v5059_v21  ;;  %v1794_v7 = vpack.c.bf16 %v1664_v2, %v1660_v3 }
 0x254   :  { %v1669_v8 = vpop.f32.mrf.mxu0 }
 0x255   :  { %v1795_v9 = vpack.c.bf16 %v1666_v6, %v1662_v61  ;;  %v1826_v14 = vmax.bf16 %v4756_v11, %v1794_v7  ;;  %v1670_v16 = vadd.f32 %v1669_v8, %v5056_v44 }
 0x256   :  { %v1671_v10 = vpop.f32.mrf.mxu0 }
 0x257   :  { %v1827_v12 = vmax.bf16 %v4756_v11, %v1795_v9  ;;  %v1672_v41 = vadd.f32 %v1671_v10, %v5059_v21 }
 0x258   :  { %v1673_v0 = vpop.f32.mrf.mxu0 }
 0x259   :  { %v1674_v15 = vadd.f32 %v1673_v0, %v5056_v44  ;;  %2043 = vmatprep.mubr.bf16.mxu0 %v1827_v12 }
 0x25a   :  { %v1675_v4 = vpop.f32.mrf.mxu0  ;;  %2044 = vmatmul.mubr.bf16.gmra.mxu0 %v1826_v14 }
 0x25b   :  { %v1676_v18 = vadd.f32 %v1675_v4, %v5059_v21  ;;  %v1796_v19 = vpack.c.bf16 %v1674_v15, %v1670_v16 }
 0x25c   :  { %v1679_v20 = vpop.f32.mrf.mxu0 }
 0x25d   :  { %v1797_v22 = vpack.c.bf16 %v1676_v18, %v1672_v41  ;;  %v1828_v24 = vmax.bf16 %v4756_v11, %v1796_v19  ;;  %v1680_v27 = vadd.f32 %v1679_v20, %v5056_v44  ;;  %v4457_v20 = vld [vmem:[#allocation10 + $0x20] sm:$0xff]  }
 0x25e   :  { %v1681_v23 = vpop.f32.mrf.mxu0  ;;  %4124 = vmatprep.subr.bf16.mxu0 %v4457_v20 }
 0x25f   :  { %v1829_v13 = vmax.bf16 %v4756_v11, %v1797_v22  ;;  %v1682_v30 = vadd.f32 %v1681_v23, %v5059_v21  ;;  %4125 = vmatpush3.bf16.msra.mxu0 %v4457_v20 }
 0x260   :  { %v1683_v17 = vpop.f32.mrf.mxu0 }
 0x261   :  { %v1684_v26 = vadd.f32 %v1683_v17, %v5056_v44  ;;  %2051 = vmatprep.mubr.bf16.mxu1 %v1829_v13 }
 0x262   :  { %v1685_v28 = vpop.f32.mrf.mxu0  ;;  %2052 = vmatmul.mubr.bf16.vlgmr.msra.gmra.mxu1 %v1828_v24 }
 0x263   :  { %v1686_v31 = vadd.f32 %v1685_v28, %v5059_v21  ;;  %v1798_v32 = vpack.c.bf16 %v1684_v26, %v1680_v27  ;;  %v4458_v26 = vld [vmem:[#allocation10 + $0x18] sm:$0xff]  }
 0x264   :  { %v1689_v35 = vpop.f32.mrf.mxu0  ;;  %4126 = vmatprep.subr.bf16.mxu0 %v4458_v26 }
 0x265   :  { %v1799_v25 = vpack.c.bf16 %v1686_v31, %v1682_v30  ;;  %v1830_v39 = vmax.bf16 %v4756_v11, %v1798_v32  ;;  %v1690_v43 = vadd.f32 %v1689_v35, %v5056_v44  ;;  %4127 = vmatpush3.bf16.msra.mxu0 %v4458_v26 }
 0x266   :  { %v1691_v33 = vpop.f32.mrf.mxu0 }
 0x267   :  { %v1831_v37 = vmax.bf16 %v4756_v11, %v1799_v25  ;;  %v1692_v48 = vadd.f32 %v1691_v33, %v5059_v21  ;;  %v4459_v33 = vld [vmem:[#allocation10 + $0x10] sm:$0xff]  }
 0x268   :  { %v1693_v29 = vpop.f32.mrf.mxu0  ;;  %4128 = vmatprep.subr.bf16.mxu0 %v4459_v33 }
 0x269   :  { %v1694_v42 = vadd.f32 %v1693_v29, %v5056_v44  ;;  %2059 = vmatprep.mubr.bf16.mxu1 %v1831_v37  ;;  %4129 = vmatpush3.bf16.msra.mxu0 %v4459_v33 }
 0x26a   :  { %v1695_v45 = vpop.f32.mrf.mxu0  ;;  %2060 = vmatmul.mubr.bf16.gmra.mxu1 %v1830_v39 }
 0x26b   :  { %v1696_v49 = vadd.f32 %v1695_v45, %v5059_v21  ;;  %v1800_v34 = vpack.c.bf16 %v1694_v42, %v1690_v43  ;;  %v4460_v45 = vld [vmem:[#allocation10 + $0x8] sm:$0xff]  }
 0x26c   :  { %v1699_v50 = vpop.f32.mrf.mxu0  ;;  %4130 = vmatprep.subr.bf16.mxu0 %v4460_v45 }
 0x26d   :  { %v1801_v52 = vpack.c.bf16 %v1696_v49, %v1692_v48  ;;  %v1832_v54 = vmax.bf16 %v4756_v11, %v1800_v34  ;;  %v1700_v56 = vadd.f32 %v1699_v50, %v5056_v44  ;;  %4131 = vmatpush3.bf16.msra.mxu0 %v4460_v45 }
 0x26e   :  { %v1701_v46 = vpop.f32.mrf.mxu0 }
 0x26f   :  { %v1833_v53 = vmax.bf16 %v4756_v11, %v1801_v52  ;;  %v1702_v58 = vadd.f32 %v1701_v46, %v5059_v21 }
 0x270   :  { %v1703_v36 = vpop.f32.mrf.mxu0 }
 0x271   :  { %v1704_v47 = vadd.f32 %v1703_v36, %v5056_v44  ;;  %2067 = vmatprep.mubr.bf16.mxu1 %v1833_v53  ;;  %v4461_v36 = vld [vmem:[#allocation10] sm:$0xff]  }
 0x272   :  { %v1705_v57 = vpop.f32.mrf.mxu0  ;;  %2068 = vmatmul.mubr.bf16.gmra.mxu1 %v1832_v54  ;;  %4132 = vmatprep.subr.bf16.mxu0 %v4461_v36 }
 0x273   :  { %v1706_v59 = vadd.f32 %v1705_v57, %v5059_v21  ;;  %v1802_v60 = vpack.c.bf16 %v1704_v47, %v1700_v56  ;;  %4133 = vmatpush3.bf16.msra.mxu0 %v4461_v36 }
 0x274   :  { %v1709_v55 = vpop.f32.mrf.mxu0 }
 0x275   :  { %v1803_v62 = vpack.c.bf16 %v1706_v59, %v1702_v58  ;;  %v1834_v2 = vmax.bf16 %v4756_v11, %v1802_v60  ;;  %v1710_v5 = vadd.f32 %v1709_v55, %v5056_v44 }
 0x276   :  { %v1711_v63 = vpop.f32.mrf.mxu0 }
 0x277   :  { %v1835_v1 = vmax.bf16 %v4756_v11, %v1803_v62  ;;  %v1712_v6 = vadd.f32 %v1711_v63, %v5059_v21 }
 0x278   :  { %v1713_v51 = vpop.f32.mrf.mxu0 }
 0x279   :  { %v1714_v3 = vadd.f32 %v1713_v51, %v5056_v44  ;;  %2075 = vmatprep.mubr.bf16.mxu1 %v1835_v1 }
 0x27a   :  { %v1715_v61 = vpop.f32.mrf.mxu0  ;;  %2076 = vmatmul.mubr.bf16.gmra.mxu1 %v1834_v2 }
 0x27b   :  { %v1716_v7 = vadd.f32 %v1715_v61, %v5059_v21  ;;  %v1804_v8 = vpack.c.bf16 %v1714_v3, %v1710_v5 }
 0x27c   :  { %v1719_v9 = vpop.f32.mrf.mxu0 }
 0x27d   :  { %v1805_v10 = vpack.c.bf16 %v1716_v7, %v1712_v6  ;;  %v1836_v15 = vmax.bf16 %v4756_v11, %v1804_v8  ;;  %v1720_v4 = vadd.f32 %v1719_v9, %v5056_v44 }
 0x27e   :  { %v1721_v12 = vpop.f32.mrf.mxu0 }
 0x27f   :  { %v1837_v14 = vmax.bf16 %v4756_v11, %v1805_v10  ;;  %v1722_v18 = vadd.f32 %v1721_v12, %v5059_v21 }
 0x280   :  { %v1723_v0 = vpop.f32.mrf.mxu0 }
 0x281   :  { %v1724_v16 = vadd.f32 %v1723_v0, %v5056_v44  ;;  %2083 = vmatprep.mubr.bf16.mxu1 %v1837_v14 }
 0x282   :  { %v1725_v41 = vpop.f32.mrf.mxu0  ;;  %2084 = vmatmul.mubr.bf16.gmra.mxu1 %v1836_v15 }
 0x283   :  { %v1726_v19 = vadd.f32 %v1725_v41, %v5059_v21  ;;  %v1806_v22 = vpack.c.bf16 %v1724_v16, %v1720_v4 }
 0x284   :  { %v1729_v23 = vpop.f32.mrf.mxu0 }
 0x285   :  { %v1807_v13 = vpack.c.bf16 %v1726_v19, %v1722_v18  ;;  %v1838_v28 = vmax.bf16 %v4756_v11, %v1806_v22  ;;  %v1730_v31 = vadd.f32 %v1729_v23, %v5056_v44 }
 0x286   :  { %v1731_v24 = vpop.f32.mrf.mxu0 }
 0x287   :  { %v1839_v17 = vmax.bf16 %v4756_v11, %v1807_v13  ;;  %v1732_v35 = vadd.f32 %v1731_v24, %v5059_v21 }
 0x288   :  { %v1733_v27 = vpop.f32.mrf.mxu0 }
 0x289   :  { %v1734_v30 = vadd.f32 %v1733_v27, %v5056_v44  ;;  %2091 = vmatprep.mubr.bf16.mxu1 %v1839_v17 }
 0x28a   :  { %v1735_v32 = vpop.f32.mrf.mxu0  ;;  %2092 = vmatmul.mubr.bf16.gmra.mxu1 %v1838_v28 }
 0x28b   :  { %v1736_v25 = vadd.f32 %v1735_v32, %v5059_v21  ;;  %v1808_v37 = vpack.c.bf16 %v1734_v30, %v1730_v31 }
 0x28c   :  { %v1739_v29 = vpop.f32.mrf.mxu0 }
 0x28d   :  { %v1809_v39 = vpack.c.bf16 %v1736_v25, %v1732_v35  ;;  %v1840_v49 = vmax.bf16 %v4756_v11, %v1808_v37  ;;  %v1740_v50 = vadd.f32 %v1739_v29, %v5056_v44 }
 0x28e   :  { %v1741_v42 = vpop.f32.mrf.mxu0 }
 0x28f   :  { %v1841_v43 = vmax.bf16 %v4756_v11, %v1809_v39  ;;  %v1742_v46 = vadd.f32 %v1741_v42, %v5059_v21 }
 0x290   :  { %v1743_v48 = vpop.f32.mrf.mxu0 }
 0x291   :  { %v1744_v34 = vadd.f32 %v1743_v48, %v5056_v44  ;;  %2099 = vmatprep.mubr.bf16.mxu1 %v1841_v43 }
 0x292   :  { %v1745_v52 = vpop.f32.mrf.mxu0  ;;  %2100 = vmatmul.mubr.bf16.gmra.mxu1 %v1840_v49 }
 0x293   :  { %v1746_v53 = vadd.f32 %v1745_v52, %v5059_v21  ;;  %v1810_v54 = vpack.c.bf16 %v1744_v34, %v1740_v50  ;;  %v4462_v50 = vld [vmem:[#allocation11 + $0x70] ss:$8 sps:$4 sm:$0xff]  }
 0x294   :  { %v1749_v47 = vpop.f32.mrf.mxu0 }
 0x295   :  { %v1811_v56 = vpack.c.bf16 %v1746_v53, %v1742_v46  ;;  %v1842_v60 = vmax.bf16 %v4756_v11, %v1810_v54  ;;  %v1750_v62 = vadd.f32 %v1749_v47, %v5056_v44  ;;  %v4465_v54 = vld [vmem:[#allocation11 + $0x60] ss:$8 sps:$4 sm:$0xff]   ;;  %v4467_v47 = vld [vmem:[#allocation11 + $0x64] ss:$8 sps:$4 sm:$0xff]  }
 0x296   :  { %v1751_v57 = vpop.f32.mrf.mxu0 }
 0x297   :  { %v1843_v58 = vmax.bf16 %v4756_v11, %v1811_v56  ;;  %v1752_v1 = vadd.f32 %v1751_v57, %v5059_v21  ;;  %v4470_v57 = vld [vmem:[#allocation11 + $0x54] ss:$8 sps:$4 sm:$0xff]  }
 0x298   :  { %v1753_v59 = vpop.f32.mrf.mxu0 }
 0x299   :  { %v1754_v55 = vadd.f32 %v1753_v59, %v5056_v44  ;;  %2107 = vmatprep.mubr.bf16.mxu1 %v1843_v58 }
 0x29a   :  { %v1755_v63 = vpop.f32.mrf.mxu0  ;;  %2108 = vmatmul.mubr.bf16.gmra.mxu1 %v1842_v60 }
 0x29b   :  { %v1756_v51 = vadd.f32 %v1755_v63, %v5059_v21  ;;  %v1812_v2 = vpack.c.bf16 %v1754_v55, %v1750_v62  ;;  %v4468_v55 = vld [vmem:[#allocation11 + $0x50] ss:$8 sps:$4 sm:$0xff]   ;;  %v4473_v63 = vld [vmem:[#allocation11 + $0x44] ss:$8 sps:$4 sm:$0xff]  }
 0x29c   :  { %v1759_v3 = vpop.f32.mrf.mxu0 }
 0x29d   :  { %v1813_v5 = vpack.c.bf16 %v1756_v51, %v1752_v1  ;;  %v1844_v8 = vmax.bf16 %v4756_v11, %v1812_v2  ;;  %v1760_v10 = vadd.f32 %v1759_v3, %v5056_v44 }
 0x29e   :  { %v1761_v61 = vpop.f32.mrf.mxu0 }
 0x29f   :  { %v1845_v6 = vmax.bf16 %v4756_v11, %v1813_v5  ;;  %v1762_v14 = vadd.f32 %v1761_v61, %v5059_v21  ;;  %v4471_v5 = vld [vmem:[#allocation11 + $0x40] ss:$8 sps:$4 sm:$0xff]  }
 0x2a0   :  { %v1763_v7 = vpop.f32.mrf.mxu0 }
 0x2a1   :  { %v1764_v9 = vadd.f32 %v1763_v7, %v5056_v44  ;;  %2115 = vmatprep.mubr.bf16.mxu1 %v1845_v6  ;;  %v4476_v6 = vld [vmem:[#allocation11 + $0x34] ss:$8 sps:$4 sm:$0xff]  }
 0x2a2   :  { %v1765_v12 = vpop.f32.mrf.mxu0  ;;  %2116 = vmatmul.mubr.bf16.gmra.mxu1 %v1844_v8 }
 0x2a3   :  { %v1766_v0 = vadd.f32 %v1765_v12, %v5059_v21  ;;  %v1814_v15 = vpack.c.bf16 %v1764_v9, %v1760_v10  ;;  %v4474_v12 = vld [vmem:[#allocation11 + $0x30] ss:$8 sps:$4 sm:$0xff]  }
 0x2a4   :  { %v1769_v16 = vpop.f32.mrf.mxu0 }
 0x2a5   :  { %v1815_v4 = vpack.c.bf16 %v1766_v0, %v1762_v14  ;;  %v1846_v20 = vmax.bf16 %v4756_v11, %v1814_v15  ;;  %v1770_v23 = vadd.f32 %v1769_v16, %v5056_v44  ;;  %v4479_v0 = vld [vmem:[#allocation11 + $0x24] ss:$8 sps:$4 sm:$0xff]  }
 0x2a6   :  { %v1771_v41 = vpop.f32.mrf.mxu0 }
 0x2a7   :  { %v1847_v18 = vmax.bf16 %v4756_v11, %v1815_v4  ;;  %v1772_v24 = vadd.f32 %v1771_v41, %v5059_v21 }
 0x2a8   :  { %v1773_v19 = vpop.f32.mrf.mxu0 }
 0x2a9   :  { %v1774_v22 = vadd.f32 %v1773_v19, %v5056_v44  ;;  %2123 = vmatprep.mubr.bf16.mxu1 %v1847_v18  ;;  %v4477_v18 = vld [vmem:[#allocation11 + $0x20] ss:$8 sps:$4 sm:$0xff]  }
 0x2aa   :  { %v1775_v13 = vpop.f32.mrf.mxu0  ;;  %2124 = vmatmul.mubr.bf16.gmra.mxu1 %v1846_v20  ;;  %v4482_v20 = vld [vmem:[#allocation11 + $0x14] ss:$8 sps:$4 sm:$0xff]  }
 0x2ab   :  { %v1776_v17 = vadd.f32 %v1775_v13, %v5059_v21  ;;  %v1816_v26 = vpack.c.bf16 %v1774_v22, %v1770_v23 }
 0x2ac   :  { %v1779_v27 = vpop.f32.mrf.mxu0 }
 0x2ad   :  { %v1817_v28 = vpack.c.bf16 %v1776_v17, %v1772_v24  ;;  %v1848_v35 = vmax.bf16 %v4756_v11, %v1816_v26  ;;  %v1780_v33 = vadd.f32 %v1779_v27, %v5056_v44  ;;  %v4480_v17 = vld [vmem:[#allocation11 + $0x10] ss:$8 sps:$4 sm:$0xff]  }
 0x2ae   :  { %v1781_v30 = vpop.f32.mrf.mxu0 }
 0x2af   :  { %v1849_v31 = vmax.bf16 %v4756_v11, %v1817_v28  ;;  %v1782_v29 = vadd.f32 %v1781_v30, %v5059_v21 }
 0x2b0   :  { %v1783_v32 = vpop.f32.mrf.mxu0 }
 0x2b1   :  { %v1784_v25 = vadd.f32 %v1783_v32, %v5056_v44  ;;  %2131 = vmatprep.mubr.bf16.mxu1 %v1849_v31  ;;  %v4464_v44 = vld [vmem:[#allocation11 + $0x74] ss:$8 sps:$4 sm:$0xff]  }
 0x2b2   :  { %v1785_v37 = vpop.f32.mrf.mxu0  ;;  %2132 = vmatmul.mubr.bf16.gmra.mxu1 %v1848_v35  ;;  %2552 = vmatprep.subr.bf16.mxu1 %v4464_v44 }
 0x2b3   :  { %v1786_v39 = vadd.f32 %v1785_v37, %v5059_v21  ;;  %v1818_v42 = vpack.c.bf16 %v1784_v25, %v1780_v33  ;;  %v5161_v21 = vld [vmem:[%s5538_s6] ss:$0 sm:$0xff]  ;;  %2553 = vmatpush1.bf16.msra.mxu1 %v4462_v50 }
 0x2b4   :  { %2554 = vmatprep.subr.bf16.mxu1 %v4467_v47 }
 0x2b5   :  { %v1819_v43 = vpack.c.bf16 %v1786_v39, %v1782_v29  ;;  %v1850_v48 = vmax.bf16 %v4756_v11, %v1818_v42 }
 0x2b7   :  { %v1851_v45 = vmax.bf16 %v4756_v11, %v1819_v43  ;;  %2555 = vmatpush1.bf16.msra.mxu1 %v4465_v54 }
 0x2b8   :  { %2556 = vmatprep.subr.bf16.mxu1 %v4470_v57 }
 0x2b9   :  { %2139 = vmatprep.mubr.bf16.mxu1 %v1851_v45 }
 0x2ba   :  { %2140 = vmatmul.mubr.bf16.gmra.mxu1 %v1850_v48 }
 0x2bb   :  { %2584 = vmatprep.mubr.bf16.mxu1 %v4756_v11  ;;  %2557 = vmatpush1.bf16.msra.mxu1 %v4468_v55 }
 0x2bc   :  { %2558 = vmatprep.subr.bf16.mxu1 %v4473_v63 }
 0x2bf   :  { %2559 = vmatpush1.bf16.msra.mxu1 %v4471_v5 }
 0x2c0   :  { %2560 = vmatprep.subr.bf16.mxu1 %v4476_v6 }
 0x2c3   :  { %2561 = vmatpush1.bf16.msra.mxu1 %v4474_v12 }
 0x2c4   :  { %2562 = vmatprep.subr.bf16.mxu1 %v4479_v0 }
 0x2c7   :  { %2563 = vmatpush1.bf16.msra.mxu1 %v4477_v18 }
 0x2c8   :  { %2564 = vmatprep.subr.bf16.mxu1 %v4482_v20 }
 0x2cb   :  { %2565 = vmatpush1.bf16.msra.mxu1 %v4480_v17 }
 0x302   :  { %v3886_v49 = vpop.f32.mrf.mxu0 }
 0x304   :  { %v3887_v34 = vpop.f32.mrf.mxu0 }
 0x305   :  { %v3888_v46 = vadd.f32 %v3887_v34, %v3886_v49 }
 0x306   :  { %v3889_v52 = vpop.f32.mrf.mxu0 }
 0x307   :  { %v2022_v58 = vadd.f32 %v3888_v46, %v5161_v21 }
 0x308   :  { %v3890_v53 = vpop.f32.mrf.mxu0 }
 0x309   :  { %v3891_v36 = vadd.f32 %v3890_v53, %v3889_v52 }
 0x30a   :  { %v3892_v56 = vpop.f32.mrf.mxu0 }
 0x30b   :  { %v2025_v59 = vadd.f32 %v3891_v36, %v5161_v21 }
 0x30c   :  { %v3893_v60 = vpop.f32.mrf.mxu0 }
 0x30d   :  { %v2148_v62 = vpack.c.bf16 %v2025_v59, %v2022_v58  ;;  %v3894_v51 = vadd.f32 %v3893_v60, %v3892_v56 }
 0x30e   :  { %v3895_v1 = vpop.f32.mrf.mxu0 }
 0x30f   :  { %v2164_v2 = vmax.bf16 %v4756_v11, %v2148_v62  ;;  %v2030_v8 = vadd.f32 %v3894_v51, %v5161_v21 }
 0x310   :  { %v3896_v3 = vpop.f32.mrf.mxu0 }
 0x311   :  { %v3897_v61 = vadd.f32 %v3896_v3, %v3895_v1  ;;  %4134 = vmatprep.mubr.bf16.mxu0 %v2164_v2 }
 0x312   :  { %v3898_v7 = vpop.f32.mrf.mxu0 }
 0x313   :  { %v2033_v9 = vadd.f32 %v3897_v61, %v5161_v21 }
 0x314   :  { %v3899_v10 = vpop.f32.mrf.mxu0 }
 0x315   :  { %v2149_v14 = vpack.c.bf16 %v2033_v9, %v2030_v8  ;;  %v3900_v4 = vadd.f32 %v3899_v10, %v3898_v7 }
 0x316   :  { %v3901_v15 = vpop.f32.mrf.mxu0 }
 0x317   :  { %v2165_v16 = vmax.bf16 %v4756_v11, %v2149_v14  ;;  %v2038_v23 = vadd.f32 %v3900_v4, %v5161_v21 }
 0x318   :  { %v3902_v41 = vpop.f32.mrf.mxu0 }
 0x319   :  { %v3903_v19 = vadd.f32 %v3902_v41, %v3901_v15  ;;  %4135 = vmatmul.mubr.bf16.vlgmr.msra.gmra.mxu0 %v2165_v16 }
 0x31a   :  { %v3904_v22 = vpop.f32.mrf.mxu0 }
 0x31b   :  { %v2041_v13 = vadd.f32 %v3903_v19, %v5161_v21 }
 0x31c   :  { %v3905_v24 = vpop.f32.mrf.mxu0 }
 0x31d   :  { %v2150_v26 = vpack.c.bf16 %v2041_v13, %v2038_v23  ;;  %v3906_v28 = vadd.f32 %v3905_v24, %v3904_v22 }
 0x31e   :  { %v3907_v27 = vpop.f32.mrf.mxu0 }
 0x31f   :  { %v2166_v30 = vmax.bf16 %v4756_v11, %v2150_v26  ;;  %v2046_v25 = vadd.f32 %v3906_v28, %v5161_v21 }
 0x320   :  { %v3908_v31 = vpop.f32.mrf.mxu0 }
 0x321   :  { %v3909_v32 = vadd.f32 %v3908_v31, %v3907_v27  ;;  %4138 = vmatprep.mubr.bf16.mxu0 %v2166_v30 }
 0x322   :  { %v3910_v35 = vpop.f32.mrf.mxu1 }
 0x323   :  { %v2049_v33 = vadd.f32 %v3909_v32, %v5161_v21 }
 0x324   :  { %v3911_v37 = vpop.f32.mrf.mxu1 }
 0x325   :  { %v2151_v29 = vpack.c.bf16 %v2049_v33, %v2046_v25  ;;  %v3912_v43 = vadd.f32 %v3911_v37, %v3910_v35 }
 0x326   :  { %v3913_v39 = vpop.f32.mrf.mxu1 }
 0x327   :  { %v2167_v42 = vmax.bf16 %v4756_v11, %v2151_v29  ;;  %v2054_v34 = vadd.f32 %v3912_v43, %v5161_v21 }
 0x328   :  { %v3914_v45 = vpop.f32.mrf.mxu1 }
 0x329   :  { %v3915_v48 = vadd.f32 %v3914_v45, %v3913_v39  ;;  %4139 = vmatmul.mubr.bf16.gmra.mxu0 %v2167_v42 }
 0x32a   :  { %v3916_v49 = vpop.f32.mrf.mxu1 }
 0x32b   :  { %v2057_v50 = vadd.f32 %v3915_v48, %v5161_v21 }
 0x32c   :  { %v3917_v44 = vpop.f32.mrf.mxu1 }
 0x32d   :  { %v2152_v52 = vpack.c.bf16 %v2057_v50, %v2054_v34  ;;  %v3918_v53 = vadd.f32 %v3917_v44, %v3916_v49  ;;  %v4483_v34 = vld [vmem:[#allocation11] ss:$8 sps:$4 sm:$0xff]   ;;  %v4485_v50 = vld [vmem:[#allocation11 + $0x4] ss:$8 sps:$4 sm:$0xff]  }
 0x32e   :  { %v3919_v46 = vpop.f32.mrf.mxu1  ;;  %2566 = vmatprep.subr.bf16.mxu1 %v4485_v50 }
 0x32f   :  { %v2168_v36 = vmax.bf16 %v4756_v11, %v2152_v52  ;;  %v2062_v57 = vadd.f32 %v3918_v53, %v5161_v21  ;;  %2567 = vmatpush1.bf16.msra.mxu1 %v4483_v34  ;;  %v5214_v34 = vld [vmem:[%s5540_s8] ss:$0 sm:$0xff] }
 0x330   :  { %v3920_v54 = vpop.f32.mrf.mxu1 }
 0x331   :  { %v3921_v47 = vadd.f32 %v3920_v54, %v3919_v46  ;;  %4142 = vmatprep.mubr.bf16.mxu0 %v2168_v36 }
 0x332   :  { %v3922_v56 = vpop.f32.mrf.mxu1 }
 0x333   :  { %v2065_v58 = vadd.f32 %v3921_v47, %v5161_v21 }
 0x334   :  { %v3923_v59 = vpop.f32.mrf.mxu1 }
 0x335   :  { %v2153_v60 = vpack.c.bf16 %v2065_v58, %v2062_v57  ;;  %v3924_v62 = vadd.f32 %v3923_v59, %v3922_v56 }
 0x336   :  { %v3925_v55 = vpop.f32.mrf.mxu1 }
 0x337   :  { %v2169_v63 = vmax.bf16 %v4756_v11, %v2153_v60  ;;  %v2070_v3 = vadd.f32 %v3924_v62, %v5161_v21 }
 0x338   :  { %v3926_v1 = vpop.f32.mrf.mxu1 }
 0x339   :  { %v3927_v51 = vadd.f32 %v3926_v1, %v3925_v55  ;;  %4143 = vmatmul.mubr.bf16.gmra.mxu0 %v2169_v63 }
 0x33a   :  { %v3928_v2 = vpop.f32.mrf.mxu1 }
 0x33b   :  { %v2073_v5 = vadd.f32 %v3927_v51, %v5161_v21 }
 0x33c   :  { %v3929_v61 = vpop.f32.mrf.mxu1 }
 0x33d   :  { %v2154_v6 = vpack.c.bf16 %v2073_v5, %v2070_v3  ;;  %v3930_v8 = vadd.f32 %v3929_v61, %v3928_v2 }
 0x33e   :  { %v3931_v7 = vpop.f32.mrf.mxu1 }
 0x33f   :  { %v2170_v9 = vmax.bf16 %v4756_v11, %v2154_v6  ;;  %v2078_v0 = vadd.f32 %v3930_v8, %v5161_v21 }
 0x340   :  { %v3932_v10 = vpop.f32.mrf.mxu1 }
 0x341   :  { %v3933_v12 = vadd.f32 %v3932_v10, %v3931_v7  ;;  %4146 = vmatprep.mubr.bf16.mxu0 %v2170_v9 }
 0x342   :  { %v3934_v14 = vpop.f32.mrf.mxu1 }
 0x343   :  { %v2081_v15 = vadd.f32 %v3933_v12, %v5161_v21 }
 0x344   :  { %v3935_v16 = vpop.f32.mrf.mxu1 }
 0x345   :  { %v2155_v4 = vpack.c.bf16 %v2081_v15, %v2078_v0  ;;  %v3936_v18 = vadd.f32 %v3935_v16, %v3934_v14 }
 0x346   :  { %v3937_v41 = vpop.f32.mrf.mxu1 }
 0x347   :  { %v2171_v19 = vmax.bf16 %v4756_v11, %v2155_v4  ;;  %v2086_v13 = vadd.f32 %v3936_v18, %v5161_v21 }
 0x348   :  { %v3938_v20 = vpop.f32.mrf.mxu1 }
 0x349   :  { %v3939_v22 = vadd.f32 %v3938_v20, %v3937_v41  ;;  %4147 = vmatmul.mubr.bf16.gmra.mxu0 %v2171_v19 }
 0x34a   :  { %v3940_v23 = vpop.f32.mrf.mxu1 }
 0x34b   :  { %v2089_v24 = vadd.f32 %v3939_v22, %v5161_v21 }
 0x34c   :  { %v3941_v17 = vpop.f32.mrf.mxu1 }
 0x34d   :  { %v2156_v26 = vpack.c.bf16 %v2089_v24, %v2086_v13  ;;  %v3942_v28 = vadd.f32 %v3941_v17, %v3940_v23 }
 0x34e   :  { %v3943_v27 = vpop.f32.mrf.mxu1 }
 0x34f   :  { %v2172_v30 = vmax.bf16 %v4756_v11, %v2156_v26  ;;  %v2094_v25 = vadd.f32 %v3942_v28, %v5161_v21 }
 0x350   :  { %v3944_v31 = vpop.f32.mrf.mxu1 }
 0x351   :  { %v3945_v32 = vadd.f32 %v3944_v31, %v3943_v27  ;;  %4150 = vmatprep.mubr.bf16.mxu0 %v2172_v30 }
 0x352   :  { %v3946_v35 = vpop.f32.mrf.mxu1 }
 0x353   :  { %v2097_v33 = vadd.f32 %v3945_v32, %v5161_v21 }
 0x354   :  { %v3947_v37 = vpop.f32.mrf.mxu1 }
 0x355   :  { %v2157_v29 = vpack.c.bf16 %v2097_v33, %v2094_v25  ;;  %v3948_v42 = vadd.f32 %v3947_v37, %v3946_v35 }
 0x356   :  { %v3949_v39 = vpop.f32.mrf.mxu1 }
 0x357   :  { %v2173_v43 = vmax.bf16 %v4756_v11, %v2157_v29  ;;  %v2102_v44 = vadd.f32 %v3948_v42, %v5161_v21 }
 0x358   :  { %v3950_v45 = vpop.f32.mrf.mxu1 }
 0x359   :  { %v3951_v48 = vadd.f32 %v3950_v45, %v3949_v39  ;;  %4151 = vmatmul.mubr.bf16.gmra.mxu0 %v2173_v43 }
 0x35a   :  { %v3952_v49 = vpop.f32.mrf.mxu1 }
 0x35b   :  { %v2105_v52 = vadd.f32 %v3951_v48, %v5161_v21  ;;  %v4486_v48 = vld [vmem:[#allocation13 + $0x70] ss:$8 sps:$4 sm:$0xff]  }
 0x35c   :  { %v3953_v46 = vpop.f32.mrf.mxu1 }
 0x35d   :  { %v2158_v53 = vpack.c.bf16 %v2105_v52, %v2102_v44  ;;  %v3954_v54 = vadd.f32 %v3953_v46, %v3952_v49  ;;  %v4488_v49 = vld [vmem:[#allocation13 + $0x74] ss:$8 sps:$4 sm:$0xff]   ;;  %v4491_v44 = vld [vmem:[#allocation13 + $0x64] ss:$8 sps:$4 sm:$0xff]   ;;  %v4489_v46 = vld [vmem:[#allocation13 + $0x60] ss:$8 sps:$4 sm:$0xff]  }
 0x35e   :  { %v3955_v36 = vpop.f32.mrf.mxu1  ;;  %3013 = vmatprep.subr.bf16.mxu0 %v4488_v49  ;;  %v4522_v49 = vld [vmem:[#allocation13 + $0xb0] ss:$8 sps:$4 sm:$0xff]  }
 0x35f   :  { %v2174_v47 = vmax.bf16 %v4756_v11, %v2158_v53  ;;  %v2110_v59 = vadd.f32 %v3954_v54, %v5161_v21  ;;  %3014 = vmatpush1.bf16.msra.mxu0 %v4486_v48 }
 0x360   :  { %v3956_v56 = vpop.f32.mrf.mxu1  ;;  %3015 = vmatprep.subr.bf16.mxu0 %v4491_v44 }
 0x361   :  { %v3957_v57 = vadd.f32 %v3956_v56, %v3955_v36  ;;  %4154 = vmatprep.mubr.bf16.mxu0 %v2174_v47  ;;  %v4494_v36 = vld [vmem:[#allocation13 + $0x54] ss:$8 sps:$4 sm:$0xff]   ;;  %v4492_v56 = vld [vmem:[#allocation13 + $0x50] ss:$8 sps:$4 sm:$0xff]  }
 0x362   :  { %v3958_v58 = vpop.f32.mrf.mxu1 }
 0x363   :  { %v2113_v60 = vadd.f32 %v3957_v57, %v5161_v21  ;;  %3016 = vmatpush1.bf16.msra.mxu0 %v4489_v46 }
 0x364   :  { %v3959_v55 = vpop.f32.mrf.mxu1  ;;  %3017 = vmatprep.subr.bf16.mxu0 %v4494_v36 }
 0x365   :  { %v2159_v62 = vpack.c.bf16 %v2113_v60, %v2110_v59  ;;  %v3960_v1 = vadd.f32 %v3959_v55, %v3958_v58  ;;  %v4497_v58 = vld [vmem:[#allocation13 + $0x44] ss:$8 sps:$4 sm:$0xff]   ;;  %v4495_v55 = vld [vmem:[#allocation13 + $0x40] ss:$8 sps:$4 sm:$0xff]  }
 0x366   :  { %v3961_v63 = vpop.f32.mrf.mxu1 }
 0x367   :  { %v2175_v51 = vmax.bf16 %v4756_v11, %v2159_v62  ;;  %v2118_v61 = vadd.f32 %v3960_v1, %v5161_v21  ;;  %3018 = vmatpush1.bf16.msra.mxu0 %v4492_v56  ;;  %v4500_v62 = vld [vmem:[#allocation13 + $0x34] ss:$8 sps:$4 sm:$0xff]  }
 0x368   :  { %v3962_v2 = vpop.f32.mrf.mxu1  ;;  %3019 = vmatprep.subr.bf16.mxu0 %v4497_v58 }
 0x369   :  { %v3963_v3 = vadd.f32 %v3962_v2, %v3961_v63  ;;  %4155 = vmatmul.mubr.bf16.gmra.mxu0 %v2175_v51  ;;  %v4498_v2 = vld [vmem:[#allocation13 + $0x30] ss:$8 sps:$4 sm:$0xff]  }
 0x36a   :  { %v3964_v5 = vpop.f32.mrf.mxu1 }
 0x36b   :  { %v2121_v6 = vadd.f32 %v3963_v3, %v5161_v21  ;;  %3020 = vmatpush1.bf16.msra.mxu0 %v4495_v55  ;;  %v4503_v3 = vld [vmem:[#allocation13 + $0x24] ss:$8 sps:$4 sm:$0xff]  }
 0x36c   :  { %v3965_v7 = vpop.f32.mrf.mxu1  ;;  %3021 = vmatprep.subr.bf16.mxu0 %v4500_v62 }
 0x36d   :  { %v2160_v8 = vpack.c.bf16 %v2121_v6, %v2118_v61  ;;  %v3966_v10 = vadd.f32 %v3965_v7, %v3964_v5  ;;  %v4501_v7 = vld [vmem:[#allocation13 + $0x20] ss:$8 sps:$4 sm:$0xff]  }
 0x36e   :  { %v3967_v9 = vpop.f32.mrf.mxu1 }
 0x36f   :  { %v2176_v12 = vmax.bf16 %v4756_v11, %v2160_v8  ;;  %v2126_v16 = vadd.f32 %v3966_v10, %v5161_v21  ;;  %3022 = vmatpush1.bf16.msra.mxu0 %v4498_v2  ;;  %v4527_v2 = vld [vmem:[#allocation13 + $0xa4] ss:$8 sps:$4 sm:$0xff]  }
 0x370   :  { %v3968_v14 = vpop.f32.mrf.mxu1  ;;  %3023 = vmatprep.subr.bf16.mxu0 %v4503_v3  ;;  %v4525_v3 = vld [vmem:[#allocation13 + $0xa0] ss:$8 sps:$4 sm:$0xff]  }
 0x371   :  { %v3969_v0 = vadd.f32 %v3968_v14, %v3967_v9  ;;  %4158 = vmatprep.mubr.bf16.mxu0 %v2176_v12  ;;  %v4506_v9 = vld [vmem:[#allocation13 + $0x14] ss:$8 sps:$4 sm:$0xff]   ;;  %v4504_v14 = vld [vmem:[#allocation13 + $0x10] ss:$8 sps:$4 sm:$0xff]  }
 0x372   :  { %v3970_v15 = vpop.f32.mrf.mxu1 }
 0x373   :  { %v2129_v4 = vadd.f32 %v3969_v0, %v5161_v21  ;;  %3024 = vmatpush1.bf16.msra.mxu0 %v4501_v7 }
 0x374   :  { %v3971_v41 = vpop.f32.mrf.mxu1  ;;  %3025 = vmatprep.subr.bf16.mxu0 %v4506_v9 }
 0x375   :  { %v2161_v18 = vpack.c.bf16 %v2129_v4, %v2126_v16  ;;  %v3972_v20 = vadd.f32 %v3971_v41, %v3970_v15  ;;  %v4509_v15 = vld [vmem:[#allocation13 + $0x4] ss:$8 sps:$4 sm:$0xff]   ;;  %v4507_v41 = vld [vmem:[#allocation13] ss:$8 sps:$4 sm:$0xff]  }
 0x376   :  { %v3973_v19 = vpop.f32.mrf.mxu1 }
 0x377   :  { %v2177_v22 = vmax.bf16 %v4756_v11, %v2161_v18  ;;  %v2134_v17 = vadd.f32 %v3972_v20, %v5161_v21  ;;  %3026 = vmatpush1.bf16.msra.mxu0 %v4504_v14  ;;  %v4512_v18 = vld [vmem:[#allocation13 + $0xf4] ss:$8 sps:$4 sm:$0xff]  }
 0x378   :  { %v3974_v23 = vpop.f32.mrf.mxu1  ;;  %3027 = vmatprep.subr.bf16.mxu0 %v4509_v15 }
 0x379   :  { %v3975_v13 = vadd.f32 %v3974_v23, %v3973_v19  ;;  %4159 = vmatmul.mubr.bf16.gmra.mxu0 %v2177_v22  ;;  %v4510_v23 = vld [vmem:[#allocation13 + $0xf0] ss:$8 sps:$4 sm:$0xff]  }
 0x37a   :  { %v3976_v24 = vpop.f32.mrf.mxu1 }
 0x37b   :  { %v2137_v26 = vadd.f32 %v3975_v13, %v5161_v21  ;;  %3028 = vmatpush1.bf16.msra.mxu0 %v4507_v41  ;;  %v4515_v13 = vld [vmem:[#allocation13 + $0xe4] ss:$8 sps:$4 sm:$0xff]  }
 0x37c   :  { %v3977_v27 = vpop.f32.mrf.mxu1  ;;  %3029 = vmatprep.subr.bf16.mxu0 %v4512_v18 }
 0x37d   :  { %v2162_v28 = vpack.c.bf16 %v2137_v26, %v2134_v17  ;;  %v3978_v31 = vadd.f32 %v3977_v27, %v3976_v24  ;;  %v4513_v27 = vld [vmem:[#allocation13 + $0xe0] ss:$8 sps:$4 sm:$0xff]  }
 0x37e   :  { %v3979_v30 = vpop.f32.mrf.mxu1 }
 0x37f   :  { %v2178_v32 = vmax.bf16 %v4756_v11, %v2162_v28  ;;  %v2142_v33 = vadd.f32 %v3978_v31, %v5161_v21  ;;  %3030 = vmatpush2.bf16.msra.mxu0 %v4510_v23 }
 0x380   :  { %v3980_v35 = vpop.f32.mrf.mxu1  ;;  %3031 = vmatprep.subr.bf16.mxu0 %v4515_v13 }
 0x381   :  { %v3981_v25 = vadd.f32 %v3980_v35, %v3979_v30  ;;  %4162 = vmatprep.mubr.bf16.mxu0 %v2178_v32  ;;  %v4518_v30 = vld [vmem:[#allocation13 + $0xd4] ss:$8 sps:$4 sm:$0xff]   ;;  %v4516_v35 = vld [vmem:[#allocation13 + $0xd0] ss:$8 sps:$4 sm:$0xff]  }
 0x383   :  { %v2145_v37 = vadd.f32 %v3981_v25, %v5161_v21  ;;  %3032 = vmatpush2.bf16.msra.mxu0 %v4513_v27 }
 0x384   :  { %3033 = vmatprep.subr.bf16.mxu0 %v4518_v30 }
 0x385   :  { %v2163_v29 = vpack.c.bf16 %v2145_v37, %v2142_v33  ;;  %v4521_v33 = vld [vmem:[#allocation13 + $0xc4] ss:$8 sps:$4 sm:$0xff]  }
 0x387   :  { %v2179_v39 = vmax.bf16 %v4756_v11, %v2163_v29  ;;  %3034 = vmatpush2.bf16.msra.mxu0 %v4516_v35 }
 0x388   :  { %3035 = vmatprep.subr.bf16.mxu0 %v4521_v33 }
 0x389   :  { %4163 = vmatmul.mubr.bf16.gmra.mxu0 %v2179_v39  ;;  %v4519_v39 = vld [vmem:[#allocation13 + $0xc0] ss:$8 sps:$4 sm:$0xff]  }
 0x38b   :  { %3036 = vmatpush2.bf16.msra.mxu0 %v4519_v39 }
 0x3d9   :  { %v4136_v42 = vpop.f32.mrf.mxu0 }
 0x3da   :  { %v2294_v57 = vadd.f32 %v4136_v42, %v5214_v34  ;;  %v4524_v42 = vld [vmem:[#allocation13 + $0xb4] ss:$8 sps:$4 sm:$0xff]  }
 0x3db   :  { %v2285_v43 = vpop.f32.mrf.mxu0  ;;  %3037 = vmatprep.subr.bf16.mxu0 %v4524_v42 }
 0x3dc   :  { %v2286_v52 = vadd.f32 %v5214_v34, %v2285_v43  ;;  %3038 = vmatpush2.bf16.msra.mxu0 %v4522_v49 }
 0x3dd   :  { %v4137_v45 = vpop.f32.mrf.mxu0  ;;  %3039 = vmatprep.subr.bf16.mxu0 %v4527_v2  ;;  %v4542_v2 = vld [vmem:[#allocation14 + $0x58] sm:$0xff]  }
 0x3de   :  { %v2297_v54 = vadd.f32 %v4137_v45, %v5214_v34 }
 0x3df   :  { %v2288_v50 = vpop.f32.mrf.mxu0 }
 0x3e0   :  { %v2289_v21 = vadd.f32 %v5214_v34, %v2288_v50  ;;  %v2413_v59 = vpack.c.bf16 %v2297_v54, %v2294_v57  ;;  %3040 = vmatpush2.bf16.msra.mxu0 %v4525_v3 }
 0x3e2   :  { %v2412_v53 = vpack.c.bf16 %v2289_v21, %v2286_v52  ;;  %v2429_v1 = vmax.bf16 %v4756_v11, %v2413_v59 }
 0x3e4   :  { %v2428_v47 = vmax.bf16 %v4756_v11, %v2412_v53 }
 0x3e6   :  { %2585 = vmatmul.mubr.bf16.vlgmr.msra.gmra.mxu1 %v2428_v47 }
 0x3e7   :  { %2594 = vmatprep.mubr.bf16.mxu1 %v4756_v11 }
 0x3e9   :  { %v4140_v60 = vpop.f32.mrf.mxu0 }
 0x3ea   :  { %v2310_v0 = vadd.f32 %v4140_v60, %v5214_v34 }
 0x3eb   :  { %v2301_v63 = vpop.f32.mrf.mxu0 }
 0x3ec   :  { %v2302_v61 = vadd.f32 %v5214_v34, %v2301_v63 }
 0x3ed   :  { %v4141_v51 = vpop.f32.mrf.mxu0 }
 0x3ee   :  { %2595 = vmatmul.mubr.bf16.gmra.mxu1 %v2429_v1  ;;  %v2313_v10 = vadd.f32 %v4141_v51, %v5214_v34 }
 0x3ef   :  { %v2304_v5 = vpop.f32.mrf.mxu0  ;;  %2604 = vmatprep.mubr.bf16.mxu1 %v4756_v11 }
 0x3f0   :  { %v2305_v6 = vadd.f32 %v5214_v34, %v2304_v5  ;;  %v2415_v16 = vpack.c.bf16 %v2313_v10, %v2310_v0  ;;  %v4531_v0 = vld [vmem:[#allocation13 + $0x80] ss:$8 sps:$4 sm:$0xff]  }
 0x3f2   :  { %v2414_v8 = vpack.c.bf16 %v2305_v6, %v2302_v61  ;;  %v2431_v20 = vmax.bf16 %v4756_v11, %v2415_v16  ;;  %v4530_v6 = vld [vmem:[#allocation13 + $0x94] ss:$8 sps:$4 sm:$0xff]  }
 0x3f3   :  { %3041 = vmatprep.subr.bf16.mxu0 %v4530_v6 }
 0x3f4   :  { %v2430_v12 = vmax.bf16 %v4756_v11, %v2414_v8  ;;  %v4528_v8 = vld [vmem:[#allocation13 + $0x90] ss:$8 sps:$4 sm:$0xff]  }
 0x3f5   :  { %3042 = vmatpush2.bf16.msra.mxu0 %v4528_v8  ;;  %v4543_v8 = vld [vmem:[#allocation14 + $0x18] sm:$0xff]  }
 0x3f6   :  { %2605 = vmatmul.mubr.bf16.gmra.mxu1 %v2430_v12  ;;  %v4533_v12 = vld [vmem:[#allocation13 + $0x84] ss:$8 sps:$4 sm:$0xff]  }
 0x3f7   :  { %2614 = vmatprep.mubr.bf16.mxu1 %v4756_v11  ;;  %3043 = vmatprep.subr.bf16.mxu0 %v4533_v12 }
 0x3f9   :  { %v4144_v4 = vpop.f32.mrf.mxu0  ;;  %3044 = vmatpush2.bf16.msra.mxu0 %v4531_v0 }
 0x3fa   :  { %v2326_v25 = vadd.f32 %v4144_v4, %v5214_v34 }
 0x3fb   :  { %v2317_v19 = vpop.f32.mrf.mxu0 }
 0x3fc   :  { %v2318_v17 = vadd.f32 %v5214_v34, %v2317_v19 }
 0x3fd   :  { %v4145_v22 = vpop.f32.mrf.mxu0 }
 0x3fe   :  { %2615 = vmatmul.mubr.bf16.gmra.mxu1 %v2431_v20  ;;  %v2329_v31 = vadd.f32 %v4145_v22, %v5214_v34 }
 0x3ff   :  { %v2320_v24 = vpop.f32.mrf.mxu0  ;;  %2624 = vmatprep.mubr.bf16.mxu1 %v4756_v11 }
 0x400   :  { %v2321_v26 = vadd.f32 %v5214_v34, %v2320_v24  ;;  %v2417_v37 = vpack.c.bf16 %v2329_v31, %v2326_v25 }
 0x402   :  { %v2416_v28 = vpack.c.bf16 %v2321_v26, %v2318_v17  ;;  %v2433_v45 = vmax.bf16 %v4756_v11, %v2417_v37 }
 0x404   :  { %v2432_v32 = vmax.bf16 %v4756_v11, %v2416_v28 }
 0x406   :  { %2625 = vmatmul.mubr.bf16.gmra.mxu1 %v2432_v32 }
 0x407   :  { %2634 = vmatprep.mubr.bf16.mxu1 %v4756_v11 }
 0x409   :  { %v4148_v29 = vpop.f32.mrf.mxu0 }
 0x40a   :  { %v2342_v36 = vadd.f32 %v4148_v29, %v5214_v34 }
 0x40b   :  { %v2333_v43 = vpop.f32.mrf.mxu0 }
 0x40c   :  { %v2334_v44 = vadd.f32 %v5214_v34, %v2333_v43 }
 0x40d   :  { %v4149_v48 = vpop.f32.mrf.mxu0 }
 0x40e   :  { %2635 = vmatmul.mubr.bf16.gmra.mxu1 %v2433_v45  ;;  %v2345_v46 = vadd.f32 %v4149_v48, %v5214_v34 }
 0x40f   :  { %v2336_v50 = vpop.f32.mrf.mxu0  ;;  %2644 = vmatprep.mubr.bf16.mxu1 %v4756_v11 }
 0x410   :  { %v2337_v52 = vadd.f32 %v5214_v34, %v2336_v50  ;;  %v2419_v54 = vpack.c.bf16 %v2345_v46, %v2342_v36  ;;  %v4535_v46 = vld [vmem:[#allocation14 + $0x38] sm:$0xff]   ;;  %v4537_v36 = vld [vmem:[#allocation14 + $0x30] sm:$0xff]  }
 0x412   :  { %v2418_v21 = vpack.c.bf16 %v2337_v52, %v2334_v44  ;;  %v2435_v57 = vmax.bf16 %v4756_v11, %v2419_v54  ;;  %v4538_v54 = vld [vmem:[#allocation14 + $0x68] sm:$0xff]  }
 0x414   :  { %v2434_v53 = vmax.bf16 %v4756_v11, %v2418_v21  ;;  %v4534_v21 = vld [vmem:[#allocation14 + $0x78] sm:$0xff]  }
 0x415   :  { %4006 = vmatprep.subr.bf16.mxu1 %v4534_v21 }
 0x416   :  { %2645 = vmatmul.mubr.bf16.gmra.mxu1 %v2434_v53  ;;  %v4536_v53 = vld [vmem:[#allocation14 + $0x70] sm:$0xff]  }
 0x417   :  { %2654 = vmatprep.mubr.bf16.mxu1 %v4756_v11  ;;  %4007 = vmatpush3.bf16.msra.mxu1 %v4535_v46 }
 0x418   :  { %4008 = vmatprep.subr.bf16.mxu1 %v4536_v53 }
 0x419   :  { %v4152_v47 = vpop.f32.mrf.mxu0 }
 0x41a   :  { %v2358_v51 = vadd.f32 %v4152_v47, %v5214_v34 }
 0x41b   :  { %v2349_v56 = vpop.f32.mrf.mxu0  ;;  %4009 = vmatpush3.bf16.msra.mxu1 %v4537_v36 }
 0x41c   :  { %v2350_v60 = vadd.f32 %v5214_v34, %v2349_v56  ;;  %4010 = vmatprep.subr.bf16.mxu1 %v4538_v54  ;;  %v4539_v56 = vld [vmem:[#allocation14 + $0x28] sm:$0xff]  }
 0x41d   :  { %v4153_v58 = vpop.f32.mrf.mxu0 }
 0x41e   :  { %2655 = vmatmul.mubr.bf16.gmra.mxu1 %v2435_v57  ;;  %v2361_v63 = vadd.f32 %v4153_v58, %v5214_v34 }
 0x41f   :  { %v2352_v59 = vpop.f32.mrf.mxu0  ;;  %2664 = vmatprep.mubr.bf16.mxu1 %v4756_v11  ;;  %4011 = vmatpush3.bf16.msra.mxu1 %v4539_v56 }
 0x420   :  { %v2353_v55 = vadd.f32 %v5214_v34, %v2352_v59  ;;  %v2421_v5 = vpack.c.bf16 %v2361_v63, %v2358_v51  ;;  %v4541_v51 = vld [vmem:[#allocation14 + $0x20] sm:$0xff]  }
 0x422   :  { %v2420_v62 = vpack.c.bf16 %v2353_v55, %v2350_v60  ;;  %v2437_v9 = vmax.bf16 %v4756_v11, %v2421_v5 }
 0x424   :  { %v2436_v1 = vmax.bf16 %v4756_v11, %v2420_v62 }
 0x426   :  { %2665 = vmatmul.mubr.bf16.gmra.mxu1 %v2436_v1  ;;  %v4540_v1 = vld [vmem:[#allocation14 + $0x60] sm:$0xff]  }
 0x427   :  { %2674 = vmatprep.mubr.bf16.mxu1 %v4756_v11  ;;  %4012 = vmatprep.subr.bf16.mxu1 %v4540_v1 }
 0x428   :  { %4013 = vmatpush3.bf16.msra.mxu1 %v4541_v51 }
 0x429   :  { %v4156_v61 = vpop.f32.mrf.mxu0  ;;  %4014 = vmatprep.subr.bf16.mxu1 %v4542_v2 }
 0x42a   :  { %v2374_v19 = vadd.f32 %v4156_v61, %v5214_v34 }
 0x42b   :  { %v2365_v7 = vpop.f32.mrf.mxu0 }
 0x42c   :  { %v2366_v15 = vadd.f32 %v5214_v34, %v2365_v7  ;;  %4015 = vmatpush3.bf16.msra.mxu1 %v4543_v8 }
 0x42d   :  { %v4157_v10 = vpop.f32.mrf.mxu0 }
 0x42e   :  { %2675 = vmatmul.mubr.bf16.gmra.mxu1 %v2437_v9  ;;  %v2377_v41 = vadd.f32 %v4157_v10, %v5214_v34  ;;  %v4544_v10 = vld [vmem:[#allocation14 + $0x50] sm:$0xff]  }
 0x42f   :  { %v2368_v14 = vpop.f32.mrf.mxu0  ;;  %2684 = vmatprep.mubr.bf16.mxu1 %v4756_v11  ;;  %4016 = vmatprep.subr.bf16.mxu1 %v4544_v10 }
 0x430   :  { %v2369_v16 = vadd.f32 %v5214_v34, %v2368_v14  ;;  %v2423_v20 = vpack.c.bf16 %v2377_v41, %v2374_v19 }
 0x432   :  { %v2422_v4 = vpack.c.bf16 %v2369_v16, %v2366_v15  ;;  %v2439_v13 = vmax.bf16 %v4756_v11, %v2423_v20  ;;  %v4545_v16 = vld [vmem:[#allocation14 + $0x10] sm:$0xff]  }
 0x433   :  { %4017 = vmatpush3.bf16.msra.mxu1 %v4545_v16 }
 0x434   :  { %v2438_v18 = vmax.bf16 %v4756_v11, %v2422_v4 }
 0x436   :  { %2685 = vmatmul.mubr.bf16.gmra.mxu1 %v2438_v18  ;;  %v4546_v18 = vld [vmem:[#allocation14 + $0x48] sm:$0xff]  }
 0x437   :  { %2694 = vmatprep.mubr.bf16.mxu1 %v4756_v11  ;;  %4018 = vmatprep.subr.bf16.mxu1 %v4546_v18 }
 0x439   :  { %v4160_v22 = vpop.f32.mrf.mxu0 }
 0x43a   :  { %v2390_v32 = vadd.f32 %v4160_v22, %v5214_v34 }
 0x43b   :  { %v2381_v23 = vpop.f32.mrf.mxu0 }
 0x43c   :  { %v2382_v26 = vadd.f32 %v5214_v34, %v2381_v23 }
 0x43d   :  { %v4161_v24 = vpop.f32.mrf.mxu0 }
 0x43e   :  { %2695 = vmatmul.mubr.bf16.gmra.mxu1 %v2439_v13  ;;  %v2393_v30 = vadd.f32 %v4161_v24, %v5214_v34  ;;  %v4547_v24 = vld [vmem:[#allocation14 + $0x8] sm:$0xff]  }
 0x43f   :  { %v2384_v17 = vpop.f32.mrf.mxu0  ;;  %2704 = vmatprep.mubr.bf16.mxu1 %v4756_v11  ;;  %4019 = vmatpush3.bf16.msra.mxu1 %v4547_v24 }
 0x440   :  { %v2385_v27 = vadd.f32 %v5214_v34, %v2384_v17  ;;  %v2425_v35 = vpack.c.bf16 %v2393_v30, %v2390_v32  ;;  %v4549_v32 = vld [vmem:[#allocation14] sm:$0xff]  }
 0x442   :  { %v2424_v28 = vpack.c.bf16 %v2385_v27, %v2382_v26  ;;  %v2441_v37 = vmax.bf16 %v4756_v11, %v2425_v35  ;;  %v4548_v26 = vld [vmem:[#allocation14 + $0x40] sm:$0xff]  }
 0x443   :  { %4020 = vmatprep.subr.bf16.mxu1 %v4548_v26 }
 0x444   :  { %v2440_v31 = vmax.bf16 %v4756_v11, %v2424_v28  ;;  %4021 = vmatpush3.bf16.msra.mxu1 %v4549_v32 }
 0x446   :  { %2705 = vmatmul.mubr.bf16.gmra.mxu1 %v2440_v31 }
 0x447   :  { %2714 = vmatprep.mubr.bf16.mxu1 %v4756_v11 }
 0x449   :  { %v4164_v25 = vpop.f32.mrf.mxu0 }
 0x44a   :  { %v2406_v50 = vadd.f32 %v4164_v25, %v5214_v34 }
 0x44b   :  { %v2397_v33 = vpop.f32.mrf.mxu0 }
 0x44c   :  { %v2398_v42 = vadd.f32 %v5214_v34, %v2397_v33 }
 0x44d   :  { %v4165_v29 = vpop.f32.mrf.mxu0 }
 0x44e   :  { %2715 = vmatmul.mubr.bf16.gmra.mxu1 %v2441_v37  ;;  %v2409_v48 = vadd.f32 %v4165_v29, %v5214_v34 }
 0x44f   :  { %v2400_v39 = vpop.f32.mrf.mxu0  ;;  %2724 = vmatprep.mubr.bf16.mxu1 %v4756_v11 }
 0x450   :  { %v2401_v43 = vadd.f32 %v5214_v34, %v2400_v39  ;;  %v2427_v44 = vpack.c.bf16 %v2409_v48, %v2406_v50  ;;  %v2460_v34 = vld [vmem:[%s5542_s10] sm:$0x3] }
 0x451   :  { %v5283_v57 = vrot.slane %v2460_v34, %v4892_v38  ;;  %v5286_v59 = vrot.slane %v2460_v34, %v4897_v40 }
 0x452   :  { %v2426_v45 = vpack.c.bf16 %v2401_v43, %v2398_v42  ;;  %v2443_v52 = vmax.bf16 %v4756_v11, %v2427_v44 }
 0x454   :  { %v2442_v49 = vmax.bf16 %v4756_v11, %v2426_v45 }
 0x456   :  { %2725 = vmatmul.mubr.bf16.gmra.mxu1 %v2442_v49 }
 0x457   :  { %2734 = vmatprep.mubr.bf16.mxu1 %v4756_v11 }
 0x45e   :  { %2735 = vmatmul.mubr.bf16.gmra.mxu1 %v2443_v52 }
 0x4a6   :  { %v2586_v47 = vpop.f32.mrf.mxu1 }
 0x4a7   :  { %v2587_v62 = vadd.f32 %v2586_v47, %v5283_v57 }
 0x4a8   :  { %v2588_v58 = vpop.f32.mrf.mxu1 }
 0x4a9   :  { %v2589_v3 = vadd.f32 %v2588_v58, %v5286_v59 }
 0x4aa   :  { %v2590_v60 = vpop.f32.mrf.mxu1 }
 0x4ab   :  { %v2591_v55 = vadd.f32 %v2590_v60, %v5283_v57 }
 0x4ac   :  { %v2592_v63 = vpop.f32.mrf.mxu1 }
 0x4ad   :  { %v2593_v5 = vadd.f32 %v2592_v63, %v5286_v59  ;;  %v2745_v61 = vpack.c.bf16 %v2591_v55, %v2587_v62 }
 0x4ae   :  { %v2596_v6 = vpop.f32.mrf.mxu1 }
 0x4af   :  { %v2746_v7 = vpack.c.bf16 %v2593_v5, %v2589_v3  ;;  %v2777_v14 = vmax.bf16 %v4756_v11, %v2745_v61  ;;  %v2597_v4 = vadd.f32 %v2596_v6, %v5283_v57 }
 0x4b0   :  { %v2598_v9 = vpop.f32.mrf.mxu1 }
 0x4b1   :  { %v2778_v12 = vmax.bf16 %v4756_v11, %v2746_v7  ;;  %v2599_v19 = vadd.f32 %v2598_v9, %v5286_v59 }
 0x4b2   :  { %v2600_v0 = vpop.f32.mrf.mxu1 }
 0x4b3   :  { %v2601_v15 = vadd.f32 %v2600_v0, %v5283_v57  ;;  %3045 = vmatprep.mubr.bf16.mxu0 %v2778_v12 }
 0x4b4   :  { %v2602_v41 = vpop.f32.mrf.mxu1  ;;  %3046 = vmatmul.mubr.bf16.vlgmr.msra.gmra.mxu0 %v2777_v14 }
 0x4b5   :  { %v2603_v20 = vadd.f32 %v2602_v41, %v5286_v59  ;;  %v2747_v22 = vpack.c.bf16 %v2601_v15, %v2597_v4 }
 0x4b6   :  { %v2606_v23 = vpop.f32.mrf.mxu1 }
 0x4b7   :  { %v2748_v13 = vpack.c.bf16 %v2603_v20, %v2599_v19  ;;  %v2779_v28 = vmax.bf16 %v4756_v11, %v2747_v22  ;;  %v2607_v35 = vadd.f32 %v2606_v23, %v5283_v57 }
 0x4b8   :  { %v2608_v17 = vpop.f32.mrf.mxu1 }
 0x4b9   :  { %v2780_v27 = vmax.bf16 %v4756_v11, %v2748_v13  ;;  %v2609_v33 = vadd.f32 %v2608_v17, %v5286_v59 }
 0x4ba   :  { %v2610_v30 = vpop.f32.mrf.mxu1 }
 0x4bb   :  { %v2611_v31 = vadd.f32 %v2610_v30, %v5283_v57  ;;  %3055 = vmatprep.mubr.bf16.mxu0 %v2780_v27 }
 0x4bc   :  { %v2612_v25 = vpop.f32.mrf.mxu1  ;;  %3056 = vmatmul.mubr.bf16.gmra.mxu0 %v2779_v28 }
 0x4bd   :  { %v2613_v37 = vadd.f32 %v2612_v25, %v5286_v59  ;;  %v2749_v29 = vpack.c.bf16 %v2611_v31, %v2607_v35 }
 0x4be   :  { %v2616_v39 = vpop.f32.mrf.mxu1 }
 0x4bf   :  { %v2750_v42 = vpack.c.bf16 %v2613_v37, %v2609_v33  ;;  %v2781_v48 = vmax.bf16 %v4756_v11, %v2749_v29  ;;  %v2617_v44 = vadd.f32 %v2616_v39, %v5283_v57 }
 0x4c0   :  { %v2618_v43 = vpop.f32.mrf.mxu1 }
 0x4c1   :  { %v2782_v45 = vmax.bf16 %v4756_v11, %v2750_v42  ;;  %v2619_v21 = vadd.f32 %v2618_v43, %v5286_v59 }
 0x4c2   :  { %v2620_v49 = vpop.f32.mrf.mxu1 }
 0x4c3   :  { %v2621_v50 = vadd.f32 %v2620_v49, %v5283_v57  ;;  %3065 = vmatprep.mubr.bf16.mxu0 %v2782_v45 }
 0x4c4   :  { %v2622_v52 = vpop.f32.mrf.mxu1  ;;  %3066 = vmatmul.mubr.bf16.gmra.mxu0 %v2781_v48 }
 0x4c5   :  { %v2623_v46 = vadd.f32 %v2622_v52, %v5286_v59  ;;  %v2751_v53 = vpack.c.bf16 %v2621_v50, %v2617_v44 }
 0x4c6   :  { %v2626_v36 = vpop.f32.mrf.mxu1 }
 0x4c7   :  { %v2752_v54 = vpack.c.bf16 %v2623_v46, %v2619_v21  ;;  %v2783_v56 = vmax.bf16 %v4756_v11, %v2751_v53  ;;  %v2627_v55 = vadd.f32 %v2626_v36, %v5283_v57 }
 0x4c8   :  { %v2628_v34 = vpop.f32.mrf.mxu1 }
 0x4c9   :  { %v2784_v47 = vmax.bf16 %v4756_v11, %v2752_v54  ;;  %v2629_v63 = vadd.f32 %v2628_v34, %v5286_v59 }
 0x4ca   :  { %v2630_v58 = vpop.f32.mrf.mxu1 }
 0x4cb   :  { %v2631_v60 = vadd.f32 %v2630_v58, %v5283_v57  ;;  %3075 = vmatprep.mubr.bf16.mxu0 %v2784_v47 }
 0x4cc   :  { %v2632_v62 = vpop.f32.mrf.mxu1  ;;  %3076 = vmatmul.mubr.bf16.gmra.mxu0 %v2783_v56 }
 0x4cd   :  { %v2633_v1 = vadd.f32 %v2632_v62, %v5286_v59  ;;  %v2753_v51 = vpack.c.bf16 %v2631_v60, %v2627_v55 }
 0x4ce   :  { %v2636_v2 = vpop.f32.mrf.mxu1 }
 0x4cf   :  { %v2754_v3 = vpack.c.bf16 %v2633_v1, %v2629_v63  ;;  %v2785_v6 = vmax.bf16 %v4756_v11, %v2753_v51  ;;  %v2637_v9 = vadd.f32 %v2636_v2, %v5283_v57 }
 0x4d0   :  { %v2638_v5 = vpop.f32.mrf.mxu1 }
 0x4d1   :  { %v2786_v61 = vmax.bf16 %v4756_v11, %v2754_v3  ;;  %v2639_v12 = vadd.f32 %v2638_v5, %v5286_v59 }
 0x4d2   :  { %v2640_v7 = vpop.f32.mrf.mxu1 }
 0x4d3   :  { %v2641_v8 = vadd.f32 %v2640_v7, %v5283_v57  ;;  %3085 = vmatprep.mubr.bf16.mxu0 %v2786_v61 }
 0x4d4   :  { %v2642_v10 = vpop.f32.mrf.mxu1  ;;  %3086 = vmatmul.mubr.bf16.gmra.mxu0 %v2785_v6 }
 0x4d5   :  { %v2643_v14 = vadd.f32 %v2642_v10, %v5286_v59  ;;  %v2755_v0 = vpack.c.bf16 %v2641_v8, %v2637_v9 }
 0x4d6   :  { %v2646_v15 = vpop.f32.mrf.mxu1 }
 0x4d7   :  { %v2756_v16 = vpack.c.bf16 %v2643_v14, %v2639_v12  ;;  %v2787_v18 = vmax.bf16 %v4756_v11, %v2755_v0  ;;  %v2647_v22 = vadd.f32 %v2646_v15, %v5283_v57 }
 0x4d8   :  { %v2648_v4 = vpop.f32.mrf.mxu1 }
 0x4d9   :  { %v2788_v41 = vmax.bf16 %v4756_v11, %v2756_v16  ;;  %v2649_v13 = vadd.f32 %v2648_v4, %v5286_v59 }
 0x4da   :  { %v2650_v19 = vpop.f32.mrf.mxu1 }
 0x4db   :  { %v2651_v20 = vadd.f32 %v2650_v19, %v5283_v57  ;;  %3095 = vmatprep.mubr.bf16.mxu0 %v2788_v41 }
 0x4dc   :  { %v2652_v23 = vpop.f32.mrf.mxu1  ;;  %3096 = vmatmul.mubr.bf16.gmra.mxu0 %v2787_v18 }
 0x4dd   :  { %v2653_v24 = vadd.f32 %v2652_v23, %v5286_v59  ;;  %v2757_v17 = vpack.c.bf16 %v2651_v20, %v2647_v22 }
 0x4de   :  { %v2656_v26 = vpop.f32.mrf.mxu1 }
 0x4df   :  { %v2758_v27 = vpack.c.bf16 %v2653_v24, %v2649_v13  ;;  %v2789_v31 = vmax.bf16 %v4756_v11, %v2757_v17  ;;  %v2657_v25 = vadd.f32 %v2656_v26, %v5283_v57 }
 0x4e0   :  { %v2658_v28 = vpop.f32.mrf.mxu1 }
 0x4e1   :  { %v2790_v30 = vmax.bf16 %v4756_v11, %v2758_v27  ;;  %v2659_v37 = vadd.f32 %v2658_v28, %v5286_v59 }
 0x4e2   :  { %v2660_v32 = vpop.f32.mrf.mxu1 }
 0x4e3   :  { %v2661_v35 = vadd.f32 %v2660_v32, %v5283_v57  ;;  %3105 = vmatprep.mubr.bf16.mxu0 %v2790_v30 }
 0x4e4   :  { %v2662_v33 = vpop.f32.mrf.mxu1  ;;  %3106 = vmatmul.mubr.bf16.gmra.mxu0 %v2789_v31 }
 0x4e5   :  { %v2663_v29 = vadd.f32 %v2662_v33, %v5286_v59  ;;  %v2759_v39 = vpack.c.bf16 %v2661_v35, %v2657_v25 }
 0x4e6   :  { %v2666_v42 = vpop.f32.mrf.mxu1 }
 0x4e7   :  { %v2760_v43 = vpack.c.bf16 %v2663_v29, %v2659_v37  ;;  %v2791_v49 = vmax.bf16 %v4756_v11, %v2759_v39  ;;  %v2667_v52 = vadd.f32 %v2666_v42, %v5283_v57 }
 0x4e8   :  { %v2668_v45 = vpop.f32.mrf.mxu1 }
 0x4e9   :  { %v2792_v48 = vmax.bf16 %v4756_v11, %v2760_v43  ;;  %v2669_v46 = vadd.f32 %v2668_v45, %v5286_v59 }
 0x4ea   :  { %v2670_v50 = vpop.f32.mrf.mxu1 }
 0x4eb   :  { %v2671_v44 = vadd.f32 %v2670_v50, %v5283_v57  ;;  %3115 = vmatprep.mubr.bf16.mxu0 %v2792_v48 }
 0x4ec   :  { %v2672_v21 = vpop.f32.mrf.mxu1  ;;  %3116 = vmatmul.mubr.bf16.gmra.mxu0 %v2791_v49 }
 0x4ed   :  { %v2673_v53 = vadd.f32 %v2672_v21, %v5286_v59  ;;  %v2761_v36 = vpack.c.bf16 %v2671_v44, %v2667_v52 }
 0x4ee   :  { %v2676_v54 = vpop.f32.mrf.mxu1 }
 0x4ef   :  { %v2762_v34 = vpack.c.bf16 %v2673_v53, %v2669_v46  ;;  %v2793_v58 = vmax.bf16 %v4756_v11, %v2761_v36  ;;  %v2677_v62 = vadd.f32 %v2676_v54, %v5283_v57 }
 0x4f0   :  { %v2678_v47 = vpop.f32.mrf.mxu1 }
 0x4f1   :  { %v2794_v56 = vmax.bf16 %v4756_v11, %v2762_v34  ;;  %v2679_v1 = vadd.f32 %v2678_v47, %v5286_v59 }
 0x4f2   :  { %v2680_v60 = vpop.f32.mrf.mxu1 }
 0x4f3   :  { %v2681_v55 = vadd.f32 %v2680_v60, %v5283_v57  ;;  %3125 = vmatprep.mubr.bf16.mxu0 %v2794_v56 }
 0x4f4   :  { %v2682_v63 = vpop.f32.mrf.mxu1  ;;  %3126 = vmatmul.mubr.bf16.gmra.mxu0 %v2793_v58 }
 0x4f5   :  { %v2683_v51 = vadd.f32 %v2682_v63, %v5286_v59  ;;  %v2763_v2 = vpack.c.bf16 %v2681_v55, %v2677_v62 }
 0x4f6   :  { %v2686_v3 = vpop.f32.mrf.mxu1 }
 0x4f7   :  { %v2764_v5 = vpack.c.bf16 %v2683_v51, %v2679_v1  ;;  %v2795_v7 = vmax.bf16 %v4756_v11, %v2763_v2  ;;  %v2687_v10 = vadd.f32 %v2686_v3, %v5283_v57 }
 0x4f8   :  { %v2688_v61 = vpop.f32.mrf.mxu1 }
 0x4f9   :  { %v2796_v6 = vmax.bf16 %v4756_v11, %v2764_v5  ;;  %v2689_v14 = vadd.f32 %v2688_v61, %v5286_v59 }
 0x4fa   :  { %v2690_v8 = vpop.f32.mrf.mxu1 }
 0x4fb   :  { %v2691_v9 = vadd.f32 %v2690_v8, %v5283_v57  ;;  %3135 = vmatprep.mubr.bf16.mxu0 %v2796_v6 }
 0x4fc   :  { %v2692_v12 = vpop.f32.mrf.mxu1  ;;  %3136 = vmatmul.mubr.bf16.gmra.mxu0 %v2795_v7 }
 0x4fd   :  { %v2693_v0 = vadd.f32 %v2692_v12, %v5286_v59  ;;  %v2765_v15 = vpack.c.bf16 %v2691_v9, %v2687_v10 }
 0x4fe   :  { %v2696_v16 = vpop.f32.mrf.mxu1 }
 0x4ff   :  { %v2766_v4 = vpack.c.bf16 %v2693_v0, %v2689_v14  ;;  %v2797_v19 = vmax.bf16 %v4756_v11, %v2765_v15  ;;  %v2697_v23 = vadd.f32 %v2696_v16, %v5283_v57 }
 0x500   :  { %v2698_v41 = vpop.f32.mrf.mxu1 }
 0x501   :  { %v2798_v18 = vmax.bf16 %v4756_v11, %v2766_v4  ;;  %v2699_v24 = vadd.f32 %v2698_v41, %v5286_v59 }
 0x502   :  { %v2700_v20 = vpop.f32.mrf.mxu1 }
 0x503   :  { %v2701_v22 = vadd.f32 %v2700_v20, %v5283_v57  ;;  %3145 = vmatprep.mubr.bf16.mxu0 %v2798_v18 }
 0x504   :  { %v2702_v13 = vpop.f32.mrf.mxu1  ;;  %3146 = vmatmul.mubr.bf16.gmra.mxu0 %v2797_v19  ;;  %v2841_v19 = vld [vmem:[%s5544_s12] sm:$0x3] }
 0x505   :  { %v2703_v17 = vadd.f32 %v2702_v13, %v5286_v59  ;;  %v2767_v26 = vpack.c.bf16 %v2701_v22, %v2697_v23  ;;  %v5391_v23 = vrot.slane %v2841_v19, %v4897_v40 }
 0x506   :  { %v2706_v27 = vpop.f32.mrf.mxu1 }
 0x507   :  { %v2768_v28 = vpack.c.bf16 %v2703_v17, %v2699_v24  ;;  %v2799_v32 = vmax.bf16 %v4756_v11, %v2767_v26  ;;  %v2707_v33 = vadd.f32 %v2706_v27, %v5283_v57 }
 0x508   :  { %v2708_v30 = vpop.f32.mrf.mxu1 }
 0x509   :  { %v2800_v31 = vmax.bf16 %v4756_v11, %v2768_v28  ;;  %v2709_v29 = vadd.f32 %v2708_v30, %v5286_v59 }
 0x50a   :  { %v2710_v35 = vpop.f32.mrf.mxu1 }
 0x50b   :  { %v2711_v25 = vadd.f32 %v2710_v35, %v5283_v57  ;;  %3155 = vmatprep.mubr.bf16.mxu0 %v2800_v31 }
 0x50c   :  { %v2712_v37 = vpop.f32.mrf.mxu1  ;;  %3156 = vmatmul.mubr.bf16.gmra.mxu0 %v2799_v32 }
 0x50d   :  { %v2713_v39 = vadd.f32 %v2712_v37, %v5286_v59  ;;  %v2769_v42 = vpack.c.bf16 %v2711_v25, %v2707_v33 }
 0x50e   :  { %v2716_v43 = vpop.f32.mrf.mxu1 }
 0x50f   :  { %v2770_v45 = vpack.c.bf16 %v2713_v39, %v2709_v29  ;;  %v2801_v50 = vmax.bf16 %v4756_v11, %v2769_v42  ;;  %v2717_v21 = vadd.f32 %v2716_v43, %v5283_v57 }
 0x510   :  { %v2718_v48 = vpop.f32.mrf.mxu1 }
 0x511   :  { %v2802_v49 = vmax.bf16 %v4756_v11, %v2770_v45  ;;  %v2719_v53 = vadd.f32 %v2718_v48, %v5286_v59 }
 0x512   :  { %v2720_v44 = vpop.f32.mrf.mxu1 }
 0x513   :  { %v2721_v52 = vadd.f32 %v2720_v44, %v5283_v57  ;;  %3165 = vmatprep.mubr.bf16.mxu0 %v2802_v49 }
 0x514   :  { %v2722_v46 = vpop.f32.mrf.mxu1  ;;  %3166 = vmatmul.mubr.bf16.gmra.mxu0 %v2801_v50 }
 0x515   :  { %v2723_v36 = vadd.f32 %v2722_v46, %v5286_v59  ;;  %v2771_v54 = vpack.c.bf16 %v2721_v52, %v2717_v21 }
 0x516   :  { %v2726_v34 = vpop.f32.mrf.mxu1 }
 0x517   :  { %v2772_v47 = vpack.c.bf16 %v2723_v36, %v2719_v53  ;;  %v2803_v60 = vmax.bf16 %v4756_v11, %v2771_v54  ;;  %v2727_v63 = vadd.f32 %v2726_v34, %v5283_v57 }
 0x518   :  { %v2728_v56 = vpop.f32.mrf.mxu1 }
 0x519   :  { %v2804_v58 = vmax.bf16 %v4756_v11, %v2772_v47  ;;  %v2729_v51 = vadd.f32 %v2728_v56, %v5286_v59 }
 0x51a   :  { %v2730_v55 = vpop.f32.mrf.mxu1 }
 0x51b   :  { %v2731_v62 = vadd.f32 %v2730_v55, %v5283_v57  ;;  %3175 = vmatprep.mubr.bf16.mxu0 %v2804_v58 }
 0x51c   :  { %v2732_v1 = vpop.f32.mrf.mxu1  ;;  %3176 = vmatmul.mubr.bf16.gmra.mxu0 %v2803_v60 }
 0x51d   :  { %v2733_v2 = vadd.f32 %v2732_v1, %v5286_v59  ;;  %v2773_v3 = vpack.c.bf16 %v2731_v62, %v2727_v63 }
 0x51e   :  { %v2736_v5 = vpop.f32.mrf.mxu1 }
 0x51f   :  { %v2774_v61 = vpack.c.bf16 %v2733_v2, %v2729_v51  ;;  %v2805_v8 = vmax.bf16 %v4756_v11, %v2773_v3  ;;  %v2737_v12 = vadd.f32 %v2736_v5, %v5283_v57 }
 0x520   :  { %v2738_v6 = vpop.f32.mrf.mxu1 }
 0x521   :  { %v2806_v7 = vmax.bf16 %v4756_v11, %v2774_v61  ;;  %v2739_v0 = vadd.f32 %v2738_v6, %v5286_v59 }
 0x522   :  { %v2740_v9 = vpop.f32.mrf.mxu1 }
 0x523   :  { %v2741_v10 = vadd.f32 %v2740_v9, %v5283_v57  ;;  %3185 = vmatprep.mubr.bf16.mxu0 %v2806_v7  ;;  %v5388_v57 = vrot.slane %v2841_v19, %v4892_v38 }
 0x524   :  { %v2742_v14 = vpop.f32.mrf.mxu1  ;;  %3186 = vmatmul.mubr.bf16.gmra.mxu0 %v2805_v8 }
 0x525   :  { %v2743_v15 = vadd.f32 %v2742_v14, %v5286_v59  ;;  %v2775_v16 = vpack.c.bf16 %v2741_v10, %v2737_v12 }
 0x527   :  { %v2776_v4 = vpack.c.bf16 %v2743_v15, %v2739_v0  ;;  %v2807_v18 = vmax.bf16 %v4756_v11, %v2775_v16 }
 0x529   :  { %v2808_v41 = vmax.bf16 %v4756_v11, %v2776_v4 }
 0x52b   :  { %3195 = vmatprep.mubr.bf16.mxu0 %v2808_v41 }
 0x52c   :  { %3196 = vmatmul.mubr.bf16.gmra.mxu0 %v2807_v18 }
 0x574   :  { %v3047_v20 = vpop.f32.mrf.mxu0 }
 0x575   :  { %v3048_v24 = vadd.f32 %v3047_v20, %v5388_v57 }
 0x576   :  { %v3049_v22 = vpop.f32.mrf.mxu0 }
 0x577   :  { %v3050_v26 = vadd.f32 %v3049_v22, %v5391_v23 }
 0x578   :  { %v3051_v59 = vpop.f32.mrf.mxu0 }
 0x579   :  { %v3052_v13 = vadd.f32 %v3051_v59, %v5388_v57 }
 0x57a   :  { %v3053_v17 = vpop.f32.mrf.mxu0 }
 0x57b   :  { %v3054_v27 = vadd.f32 %v3053_v17, %v5391_v23  ;;  %v3206_v28 = vpack.c.bf16 %v3052_v13, %v3048_v24 }
 0x57c   :  { %v3057_v30 = vpop.f32.mrf.mxu0 }
 0x57d   :  { %v3207_v31 = vpack.c.bf16 %v3054_v27, %v3050_v26  ;;  %v3238_v35 = vmax.bf16 %v4756_v11, %v3206_v28  ;;  %v3058_v33 = vadd.f32 %v3057_v30, %v5388_v57 }
 0x57e   :  { %v3059_v32 = vpop.f32.mrf.mxu0 }
 0x57f   :  { %v3239_v38 = vmax.bf16 %v4756_v11, %v3207_v31  ;;  %v3060_v29 = vadd.f32 %v3059_v32, %v5391_v23 }
 0x580   :  { %v3061_v40 = vpop.f32.mrf.mxu0 }
 0x581   :  { %v3062_v25 = vadd.f32 %v3061_v40, %v5388_v57  ;;  %3437 = vmatprep.mubr.bf16.mxu1 %v3239_v38 }
 0x582   :  { %v3063_v37 = vpop.f32.mrf.mxu0  ;;  %3438 = vmatmul.mubr.bf16.vlgmr.msra.gmra.mxu1 %v3238_v35 }
 0x583   :  { %v3064_v39 = vadd.f32 %v3063_v37, %v5391_v23  ;;  %v3208_v42 = vpack.c.bf16 %v3062_v25, %v3058_v33 }
 0x584   :  { %v3067_v43 = vpop.f32.mrf.mxu0 }
 0x585   :  { %v3209_v45 = vpack.c.bf16 %v3064_v39, %v3060_v29  ;;  %v3240_v50 = vmax.bf16 %v4756_v11, %v3208_v42  ;;  %v3068_v21 = vadd.f32 %v3067_v43, %v5388_v57 }
 0x586   :  { %v3069_v48 = vpop.f32.mrf.mxu0 }
 0x587   :  { %v3241_v49 = vmax.bf16 %v4756_v11, %v3209_v45  ;;  %v3070_v53 = vadd.f32 %v3069_v48, %v5391_v23 }
 0x588   :  { %v3071_v44 = vpop.f32.mrf.mxu0 }
 0x589   :  { %v3072_v52 = vadd.f32 %v3071_v44, %v5388_v57  ;;  %3445 = vmatprep.mubr.bf16.mxu1 %v3241_v49 }
 0x58a   :  { %v3073_v46 = vpop.f32.mrf.mxu0  ;;  %3446 = vmatmul.mubr.bf16.gmra.mxu1 %v3240_v50 }
 0x58b   :  { %v3074_v36 = vadd.f32 %v3073_v46, %v5391_v23  ;;  %v3210_v54 = vpack.c.bf16 %v3072_v52, %v3068_v21 }
 0x58c   :  { %v3077_v34 = vpop.f32.mrf.mxu0 }
 0x58d   :  { %v3211_v47 = vpack.c.bf16 %v3074_v36, %v3070_v53  ;;  %v3242_v60 = vmax.bf16 %v4756_v11, %v3210_v54  ;;  %v3078_v63 = vadd.f32 %v3077_v34, %v5388_v57 }
 0x58e   :  { %v3079_v56 = vpop.f32.mrf.mxu0 }
 0x58f   :  { %v3243_v58 = vmax.bf16 %v4756_v11, %v3211_v47  ;;  %v3080_v51 = vadd.f32 %v3079_v56, %v5391_v23 }
 0x590   :  { %v3081_v55 = vpop.f32.mrf.mxu0 }
 0x591   :  { %v3082_v62 = vadd.f32 %v3081_v55, %v5388_v57  ;;  %3453 = vmatprep.mubr.bf16.mxu1 %v3243_v58 }
 0x592   :  { %v3083_v1 = vpop.f32.mrf.mxu0  ;;  %3454 = vmatmul.mubr.bf16.gmra.mxu1 %v3242_v60 }
 0x593   :  { %v3084_v2 = vadd.f32 %v3083_v1, %v5391_v23  ;;  %v3212_v3 = vpack.c.bf16 %v3082_v62, %v3078_v63 }
 0x594   :  { %v3087_v5 = vpop.f32.mrf.mxu0 }
 0x595   :  { %v3213_v61 = vpack.c.bf16 %v3084_v2, %v3080_v51  ;;  %v3244_v8 = vmax.bf16 %v4756_v11, %v3212_v3  ;;  %v3088_v12 = vadd.f32 %v3087_v5, %v5388_v57 }
 0x596   :  { %v3089_v6 = vpop.f32.mrf.mxu0 }
 0x597   :  { %v3245_v7 = vmax.bf16 %v4756_v11, %v3213_v61  ;;  %v3090_v0 = vadd.f32 %v3089_v6, %v5391_v23 }
 0x598   :  { %v3091_v9 = vpop.f32.mrf.mxu0 }
 0x599   :  { %v3092_v10 = vadd.f32 %v3091_v9, %v5388_v57  ;;  %3461 = vmatprep.mubr.bf16.mxu1 %v3245_v7 }
 0x59a   :  { %v3093_v14 = vpop.f32.mrf.mxu0  ;;  %3462 = vmatmul.mubr.bf16.gmra.mxu1 %v3244_v8 }
 0x59b   :  { %v3094_v15 = vadd.f32 %v3093_v14, %v5391_v23  ;;  %v3214_v16 = vpack.c.bf16 %v3092_v10, %v3088_v12 }
 0x59c   :  { %v3097_v4 = vpop.f32.mrf.mxu0 }
 0x59d   :  { %v3215_v41 = vpack.c.bf16 %v3094_v15, %v3090_v0  ;;  %v3246_v20 = vmax.bf16 %v4756_v11, %v3214_v16  ;;  %v3098_v13 = vadd.f32 %v3097_v4, %v5388_v57 }
 0x59e   :  { %v3099_v18 = vpop.f32.mrf.mxu0 }
 0x59f   :  { %v3247_v19 = vmax.bf16 %v4756_v11, %v3215_v41  ;;  %v3100_v17 = vadd.f32 %v3099_v18, %v5391_v23 }
 0x5a0   :  { %v3101_v22 = vpop.f32.mrf.mxu0 }
 0x5a1   :  { %v3102_v59 = vadd.f32 %v3101_v22, %v5388_v57  ;;  %3469 = vmatprep.mubr.bf16.mxu1 %v3247_v19 }
 0x5a2   :  { %v3103_v24 = vpop.f32.mrf.mxu0  ;;  %3470 = vmatmul.mubr.bf16.gmra.mxu1 %v3246_v20 }
 0x5a3   :  { %v3104_v26 = vadd.f32 %v3103_v24, %v5391_v23  ;;  %v3216_v27 = vpack.c.bf16 %v3102_v59, %v3098_v13 }
 0x5a4   :  { %v3107_v28 = vpop.f32.mrf.mxu0 }
 0x5a5   :  { %v3217_v30 = vpack.c.bf16 %v3104_v26, %v3100_v17  ;;  %v3248_v38 = vmax.bf16 %v4756_v11, %v3216_v27  ;;  %v3108_v25 = vadd.f32 %v3107_v28, %v5388_v57 }
 0x5a6   :  { %v3109_v31 = vpop.f32.mrf.mxu0 }
 0x5a7   :  { %v3249_v32 = vmax.bf16 %v4756_v11, %v3217_v30  ;;  %v3110_v37 = vadd.f32 %v3109_v31, %v5391_v23 }
 0x5a8   :  { %v3111_v35 = vpop.f32.mrf.mxu0 }
 0x5a9   :  { %v3112_v40 = vadd.f32 %v3111_v35, %v5388_v57  ;;  %3477 = vmatprep.mubr.bf16.mxu1 %v3249_v32 }
 0x5aa   :  { %v3113_v33 = vpop.f32.mrf.mxu0  ;;  %3478 = vmatmul.mubr.bf16.gmra.mxu1 %v3248_v38 }
 0x5ab   :  { %v3114_v29 = vadd.f32 %v3113_v33, %v5391_v23  ;;  %v3218_v39 = vpack.c.bf16 %v3112_v40, %v3108_v25 }
 0x5ac   :  { %v3117_v42 = vpop.f32.mrf.mxu0 }
 0x5ad   :  { %v3219_v43 = vpack.c.bf16 %v3114_v29, %v3110_v37  ;;  %v3250_v49 = vmax.bf16 %v4756_v11, %v3218_v39  ;;  %v3118_v52 = vadd.f32 %v3117_v42, %v5388_v57 }
 0x5ae   :  { %v3119_v45 = vpop.f32.mrf.mxu0 }
 0x5af   :  { %v3251_v48 = vmax.bf16 %v4756_v11, %v3219_v43  ;;  %v3120_v46 = vadd.f32 %v3119_v45, %v5391_v23 }
 0x5b0   :  { %v3121_v50 = vpop.f32.mrf.mxu0 }
 0x5b1   :  { %v3122_v44 = vadd.f32 %v3121_v50, %v5388_v57  ;;  %3485 = vmatprep.mubr.bf16.mxu1 %v3251_v48 }
 0x5b2   :  { %v3123_v21 = vpop.f32.mrf.mxu0  ;;  %3486 = vmatmul.mubr.bf16.gmra.mxu1 %v3250_v49 }
 0x5b3   :  { %v3124_v53 = vadd.f32 %v3123_v21, %v5391_v23  ;;  %v3220_v36 = vpack.c.bf16 %v3122_v44, %v3118_v52 }
 0x5b4   :  { %v3127_v54 = vpop.f32.mrf.mxu0 }
 0x5b5   :  { %v3221_v34 = vpack.c.bf16 %v3124_v53, %v3120_v46  ;;  %v3252_v58 = vmax.bf16 %v4756_v11, %v3220_v36  ;;  %v3128_v62 = vadd.f32 %v3127_v54, %v5388_v57 }
 0x5b6   :  { %v3129_v47 = vpop.f32.mrf.mxu0 }
 0x5b7   :  { %v3253_v56 = vmax.bf16 %v4756_v11, %v3221_v34  ;;  %v3130_v1 = vadd.f32 %v3129_v47, %v5391_v23 }
 0x5b8   :  { %v3131_v60 = vpop.f32.mrf.mxu0 }
 0x5b9   :  { %v3132_v55 = vadd.f32 %v3131_v60, %v5388_v57  ;;  %3493 = vmatprep.mubr.bf16.mxu1 %v3253_v56 }
 0x5ba   :  { %v3133_v63 = vpop.f32.mrf.mxu0  ;;  %3494 = vmatmul.mubr.bf16.gmra.mxu1 %v3252_v58 }
 0x5bb   :  { %v3134_v51 = vadd.f32 %v3133_v63, %v5391_v23  ;;  %v3222_v2 = vpack.c.bf16 %v3132_v55, %v3128_v62 }
 0x5bc   :  { %v3137_v3 = vpop.f32.mrf.mxu0 }
 0x5bd   :  { %v3223_v5 = vpack.c.bf16 %v3134_v51, %v3130_v1  ;;  %v3254_v7 = vmax.bf16 %v4756_v11, %v3222_v2  ;;  %v3138_v10 = vadd.f32 %v3137_v3, %v5388_v57 }
 0x5be   :  { %v3139_v61 = vpop.f32.mrf.mxu0 }
 0x5bf   :  { %v3255_v6 = vmax.bf16 %v4756_v11, %v3223_v5  ;;  %v3140_v14 = vadd.f32 %v3139_v61, %v5391_v23 }
 0x5c0   :  { %v3141_v8 = vpop.f32.mrf.mxu0 }
 0x5c1   :  { %v3142_v9 = vadd.f32 %v3141_v8, %v5388_v57  ;;  %3501 = vmatprep.mubr.bf16.mxu1 %v3255_v6 }
 0x5c2   :  { %v3143_v12 = vpop.f32.mrf.mxu0  ;;  %3502 = vmatmul.mubr.bf16.gmra.mxu1 %v3254_v7 }
 0x5c3   :  { %v3144_v0 = vadd.f32 %v3143_v12, %v5391_v23  ;;  %v3224_v15 = vpack.c.bf16 %v3142_v9, %v3138_v10 }
 0x5c4   :  { %v3147_v16 = vpop.f32.mrf.mxu0 }
 0x5c5   :  { %v3225_v4 = vpack.c.bf16 %v3144_v0, %v3140_v14  ;;  %v3256_v19 = vmax.bf16 %v4756_v11, %v3224_v15  ;;  %v3148_v59 = vadd.f32 %v3147_v16, %v5388_v57 }
 0x5c6   :  { %v3149_v41 = vpop.f32.mrf.mxu0 }
 0x5c7   :  { %v3257_v18 = vmax.bf16 %v4756_v11, %v3225_v4  ;;  %v3150_v24 = vadd.f32 %v3149_v41, %v5391_v23 }
 0x5c8   :  { %v3151_v20 = vpop.f32.mrf.mxu0 }
 0x5c9   :  { %v3152_v22 = vadd.f32 %v3151_v20, %v5388_v57  ;;  %3509 = vmatprep.mubr.bf16.mxu1 %v3257_v18 }
 0x5ca   :  { %v3153_v13 = vpop.f32.mrf.mxu0  ;;  %3510 = vmatmul.mubr.bf16.gmra.mxu1 %v3256_v19 }
 0x5cb   :  { %v3154_v17 = vadd.f32 %v3153_v13, %v5391_v23  ;;  %v3226_v26 = vpack.c.bf16 %v3152_v22, %v3148_v59 }
 0x5cc   :  { %v3157_v27 = vpop.f32.mrf.mxu0 }
 0x5cd   :  { %v3227_v28 = vpack.c.bf16 %v3154_v17, %v3150_v24  ;;  %v3258_v32 = vmax.bf16 %v4756_v11, %v3226_v26  ;;  %v3158_v40 = vadd.f32 %v3157_v27, %v5388_v57 }
 0x5ce   :  { %v3159_v30 = vpop.f32.mrf.mxu0 }
 0x5cf   :  { %v3259_v31 = vmax.bf16 %v4756_v11, %v3227_v28  ;;  %v3160_v33 = vadd.f32 %v3159_v30, %v5391_v23 }
 0x5d0   :  { %v3161_v38 = vpop.f32.mrf.mxu0 }
 0x5d1   :  { %v3162_v35 = vadd.f32 %v3161_v38, %v5388_v57  ;;  %3517 = vmatprep.mubr.bf16.mxu1 %v3259_v31  ;;  %v5492_v31 = vld [vmem:[%s5546_s14] ss:$0 sm:$0xff]  ;;  %s4757_s14 = smov [#allocation16]  }
 0x5d2   :  { %v3163_v25 = vpop.f32.mrf.mxu0  ;;  %3518 = vmatmul.mubr.bf16.gmra.mxu1 %v3258_v32  ;;  %s3603_s0 = sshll.u32 %s4757_s14, 4  ;;  %s3604_s0 = int_to_ptr.vmem [resolvable:$true] %s3603_s0 }
 0x5d3   :  { %v3164_v37 = vadd.f32 %v3163_v25, %v5391_v23  ;;  %v3228_v29 = vpack.c.bf16 %v3162_v35, %v3158_v40  ;;  %s4710_s19 = scalar_lea.vmem %s3604_s0, 4096  ;;  %p4715_p13 = scmp.lt.s32.totalorder %s3604_s0, %s3604_s0 }
 0x5d4   :  { %v3167_v39 = vpop.f32.mrf.mxu0  ;;  %p4711_p12 = scmp.ne.s32.totalorder %s3604_s0, %s4710_s19  ;;  %p4716_p0 = scmp.lt.s32.totalorder %s4710_s19, %s4710_s19 }
 0x5d5   :  { %v3229_v42 = vpack.c.bf16 %v3164_v37, %v3160_v33  ;;  %v3260_v48 = vmax.bf16 %v4756_v11, %v3228_v29  ;;  %v3168_v44 = vadd.f32 %v3167_v39, %v5388_v57 }
 0x5d6   :  { %v3169_v43 = vpop.f32.mrf.mxu0  ;;  %p4717_p1 = por %p4716_p0, %p4715_p13 }
 0x5d7   :  { %v3261_v45 = vmax.bf16 %v4756_v11, %v3229_v42  ;;  %v3170_v21 = vadd.f32 %v3169_v43, %v5391_v23 }
 0x5d8   :  { %v3171_v49 = vpop.f32.mrf.mxu0  ;;  %p4718_p2 = pnand %p4717_p1, %p4711_p12 }
 0x5d9   :  { %v3172_v50 = vadd.f32 %v3171_v49, %v5388_v57  ;;  %3525 = vmatprep.mubr.bf16.mxu1 %v3261_v45 }
 0x5da   :  { %v3173_v52 = vpop.f32.mrf.mxu0  ;;  %3526 = vmatmul.mubr.bf16.gmra.mxu1 %v3260_v48 }
 0x5db   :  { %v3174_v46 = vadd.f32 %v3173_v52, %v5391_v23  ;;  %v3230_v53 = vpack.c.bf16 %v3172_v50, %v3168_v44 }
 0x5dc   :  { %v3177_v36 = vpop.f32.mrf.mxu0 }
 0x5dd   :  { %v3231_v54 = vpack.c.bf16 %v3174_v46, %v3170_v21  ;;  %v3262_v56 = vmax.bf16 %v4756_v11, %v3230_v53  ;;  %v3178_v55 = vadd.f32 %v3177_v36, %v5388_v57 }
 0x5de   :  { %v3179_v34 = vpop.f32.mrf.mxu0 }
 0x5df   :  { %v3263_v47 = vmax.bf16 %v4756_v11, %v3231_v54  ;;  %v3180_v63 = vadd.f32 %v3179_v34, %v5391_v23 }
 0x5e0   :  { %v3181_v58 = vpop.f32.mrf.mxu0 }
 0x5e1   :  { %v3182_v60 = vadd.f32 %v3181_v58, %v5388_v57  ;;  %3533 = vmatprep.mubr.bf16.mxu1 %v3263_v47 }
 0x5e2   :  { %v3183_v62 = vpop.f32.mrf.mxu0  ;;  %3534 = vmatmul.mubr.bf16.gmra.mxu1 %v3262_v56 }
 0x5e3   :  { %v3184_v1 = vadd.f32 %v3183_v62, %v5391_v23  ;;  %v3232_v51 = vpack.c.bf16 %v3182_v60, %v3178_v55 }
 0x5e4   :  { %v3187_v2 = vpop.f32.mrf.mxu0 }
 0x5e5   :  { %v3233_v3 = vpack.c.bf16 %v3184_v1, %v3180_v63  ;;  %v3264_v6 = vmax.bf16 %v4756_v11, %v3232_v51  ;;  %v3188_v9 = vadd.f32 %v3187_v2, %v5388_v57 }
 0x5e6   :  { %v3189_v5 = vpop.f32.mrf.mxu0 }
 0x5e7   :  { %v3265_v61 = vmax.bf16 %v4756_v11, %v3233_v3  ;;  %v3190_v12 = vadd.f32 %v3189_v5, %v5391_v23 }
 0x5e8   :  { %v3191_v7 = vpop.f32.mrf.mxu0 }
 0x5e9   :  { %v3192_v8 = vadd.f32 %v3191_v7, %v5388_v57  ;;  %3541 = vmatprep.mubr.bf16.mxu1 %v3265_v61 }
 0x5ea   :  { %v3193_v10 = vpop.f32.mrf.mxu0  ;;  %3542 = vmatmul.mubr.bf16.gmra.mxu1 %v3264_v6 }
 0x5eb   :  { %v3194_v14 = vadd.f32 %v3193_v10, %v5391_v23  ;;  %v3234_v0 = vpack.c.bf16 %v3192_v8, %v3188_v9 }
 0x5ec   :  { %v3197_v15 = vpop.f32.mrf.mxu0 }
 0x5ed   :  { %v3235_v16 = vpack.c.bf16 %v3194_v14, %v3190_v12  ;;  %v3266_v18 = vmax.bf16 %v4756_v11, %v3234_v0  ;;  %v3198_v22 = vadd.f32 %v3197_v15, %v5388_v57 }
 0x5ee   :  { %v3199_v4 = vpop.f32.mrf.mxu0 }
 0x5ef   :  { %v3267_v41 = vmax.bf16 %v4756_v11, %v3235_v16  ;;  %v3200_v13 = vadd.f32 %v3199_v4, %v5391_v23 }
 0x5f0   :  { %v3201_v19 = vpop.f32.mrf.mxu0 }
 0x5f1   :  { %v3202_v20 = vadd.f32 %v3201_v19, %v5388_v57  ;;  %3549 = vmatprep.mubr.bf16.mxu1 %v3267_v41 }
 0x5f2   :  { %v3203_v59 = vpop.f32.mrf.mxu0  ;;  %3550 = vmatmul.mubr.bf16.gmra.mxu1 %v3266_v18 }
 0x5f3   :  { %v3204_v24 = vadd.f32 %v3203_v59, %v5391_v23  ;;  %v3236_v17 = vpack.c.bf16 %v3202_v20, %v3198_v22 }
 0x5f5   :  { %v3237_v26 = vpack.c.bf16 %v3204_v24, %v3200_v13  ;;  %v3268_v28 = vmax.bf16 %v4756_v11, %v3236_v17 }
 0x5f7   :  { %v3269_v27 = vmax.bf16 %v4756_v11, %v3237_v26 }
 0x5f9   :  { %3557 = vmatprep.mubr.bf16.mxu1 %v3269_v27 }
 0x5fa   :  { %3558 = vmatmul.mubr.bf16.gmra.mxu1 %v3268_v28 }
 0x642   :  { %v4022_v30 = vpop.f32.mrf.mxu1 }
 0x644   :  { %v4023_v57 = vpop.f32.mrf.mxu1 }
 0x645   :  { %v4024_v32 = vadd.f32 %v4023_v57, %v4022_v30 }
 0x646   :  { %v4025_v38 = vpop.f32.mrf.mxu1 }
 0x647   :  { %v3440_v35 = vadd.f32 %v4024_v32, %v5492_v31 }
 0x648   :  { %v4026_v23 = vpop.f32.mrf.mxu1 }
 0x649   :  { %3566 = vst [vmem:[#allocation16] sm:$0xff] %v3440_v35  ;;  %v4027_v40 = vadd.f32 %v4026_v23, %v4025_v38 }
 0x64a   :  { %v4028_v25 = vpop.f32.mrf.mxu1 }
 0x64b   :  { %v3443_v33 = vadd.f32 %v4027_v40, %v5492_v31 }
 0x64c   :  { %v4029_v11 = vpop.f32.mrf.mxu1 }
 0x64d   :  { %3567 = vst [vmem:[#allocation16 + $0x8] sm:$0xff] %v3443_v33  ;;  %v4030_v37 = vadd.f32 %v4029_v11, %v4028_v25 }
 0x64e   :  { %v4031_v29 = vpop.f32.mrf.mxu1 }
 0x64f   :  { %v3448_v39 = vadd.f32 %v4030_v37, %v5492_v31 }
 0x650   :  { %v4032_v42 = vpop.f32.mrf.mxu1 }
 0x651   :  { %3568 = vst [vmem:[#allocation16 + $0x10] sm:$0xff] %v3448_v39  ;;  %v4033_v43 = vadd.f32 %v4032_v42, %v4031_v29 }
 0x652   :  { %v4034_v45 = vpop.f32.mrf.mxu1 }
 0x653   :  { %v3451_v48 = vadd.f32 %v4033_v43, %v5492_v31 }
 0x654   :  { %v4035_v49 = vpop.f32.mrf.mxu1 }
 0x655   :  { %3569 = vst [vmem:[#allocation16 + $0x18] sm:$0xff] %v3451_v48  ;;  %v4036_v50 = vadd.f32 %v4035_v49, %v4034_v45 }
 0x656   :  { %v4037_v44 = vpop.f32.mrf.mxu1 }
 0x657   :  { %v3456_v52 = vadd.f32 %v4036_v50, %v5492_v31 }
 0x658   :  { %v4038_v21 = vpop.f32.mrf.mxu1 }
 0x659   :  { %3570 = vst [vmem:[#allocation16 + $0x20] sm:$0xff] %v3456_v52  ;;  %v4039_v46 = vadd.f32 %v4038_v21, %v4037_v44 }
 0x65a   :  { %v4040_v53 = vpop.f32.mrf.mxu1 }
 0x65b   :  { %v3459_v36 = vadd.f32 %v4039_v46, %v5492_v31 }
 0x65c   :  { %v4041_v54 = vpop.f32.mrf.mxu1 }
 0x65d   :  { %3571 = vst [vmem:[#allocation16 + $0x28] sm:$0xff] %v3459_v36  ;;  %v4042_v34 = vadd.f32 %v4041_v54, %v4040_v53 }
 0x65e   :  { %v4043_v47 = vpop.f32.mrf.mxu1 }
 0x65f   :  { %v3464_v56 = vadd.f32 %v4042_v34, %v5492_v31 }
 0x660   :  { %v4044_v58 = vpop.f32.mrf.mxu1 }
 0x661   :  { %3572 = vst [vmem:[#allocation16 + $0x30] sm:$0xff] %v3464_v56  ;;  %v4045_v60 = vadd.f32 %v4044_v58, %v4043_v47 }
 0x662   :  { %v4046_v55 = vpop.f32.mrf.mxu1 }
 0x663   :  { %v3467_v62 = vadd.f32 %v4045_v60, %v5492_v31 }
 0x664   :  { %v4047_v63 = vpop.f32.mrf.mxu1 }
 0x665   :  { %3573 = vst [vmem:[#allocation16 + $0x38] sm:$0xff] %v3467_v62  ;;  %v4048_v1 = vadd.f32 %v4047_v63, %v4046_v55 }
 0x666   :  { %v4049_v51 = vpop.f32.mrf.mxu1 }
 0x667   :  { %v3472_v2 = vadd.f32 %v4048_v1, %v5492_v31 }
 0x668   :  { %v4050_v3 = vpop.f32.mrf.mxu1 }
 0x669   :  { %3574 = vst [vmem:[#allocation16 + $0x40] sm:$0xff] %v3472_v2  ;;  %v4051_v5 = vadd.f32 %v4050_v3, %v4049_v51 }
 0x66a   :  { %v4052_v61 = vpop.f32.mrf.mxu1 }
 0x66b   :  { %v3475_v6 = vadd.f32 %v4051_v5, %v5492_v31 }
 0x66c   :  { %v4053_v7 = vpop.f32.mrf.mxu1 }
 0x66d   :  { %3575 = vst [vmem:[#allocation16 + $0x48] sm:$0xff] %v3475_v6  ;;  %v4054_v8 = vadd.f32 %v4053_v7, %v4052_v61 }
 0x66e   :  { %v4055_v9 = vpop.f32.mrf.mxu1 }
 0x66f   :  { %v3480_v10 = vadd.f32 %v4054_v8, %v5492_v31 }
 0x670   :  { %v4056_v12 = vpop.f32.mrf.mxu1 }
 0x671   :  { %3576 = vst [vmem:[#allocation16 + $0x50] sm:$0xff] %v3480_v10  ;;  %v4057_v14 = vadd.f32 %v4056_v12, %v4055_v9 }
 0x672   :  { %v4058_v0 = vpop.f32.mrf.mxu1 }
 0x673   :  { %v3483_v15 = vadd.f32 %v4057_v14, %v5492_v31 }
 0x674   :  { %v4059_v16 = vpop.f32.mrf.mxu1 }
 0x675   :  { %3577 = vst [vmem:[#allocation16 + $0x58] sm:$0xff] %v3483_v15  ;;  %v4060_v4 = vadd.f32 %v4059_v16, %v4058_v0 }
 0x676   :  { %v4061_v41 = vpop.f32.mrf.mxu1 }
 0x677   :  { %v3488_v18 = vadd.f32 %v4060_v4, %v5492_v31 }
 0x678   :  { %v4062_v19 = vpop.f32.mrf.mxu1 }
 0x679   :  { %3578 = vst [vmem:[#allocation16 + $0x60] sm:$0xff] %v3488_v18  ;;  %v4063_v20 = vadd.f32 %v4062_v19, %v4061_v41 }
 0x67a   :  { %v4064_v22 = vpop.f32.mrf.mxu1 }
 0x67b   :  { %v3491_v59 = vadd.f32 %v4063_v20, %v5492_v31 }
 0x67c   :  { %v4065_v13 = vpop.f32.mrf.mxu1 }
 0x67d   :  { %3579 = vst [vmem:[#allocation16 + $0x68] sm:$0xff] %v3491_v59  ;;  %v4066_v24 = vadd.f32 %v4065_v13, %v4064_v22 }
 0x67e   :  { %v4067_v17 = vpop.f32.mrf.mxu1 }
 0x67f   :  { %v3496_v26 = vadd.f32 %v4066_v24, %v5492_v31 }
 0x680   :  { %v4068_v27 = vpop.f32.mrf.mxu1 }
 0x681   :  { %3580 = vst [vmem:[#allocation16 + $0x70] sm:$0xff] %v3496_v26  ;;  %v4069_v28 = vadd.f32 %v4068_v27, %v4067_v17 }
 0x682   :  { %v4070_v30 = vpop.f32.mrf.mxu1 }
 0x683   :  { %v3499_v57 = vadd.f32 %v4069_v28, %v5492_v31 }
 0x684   :  { %v4071_v32 = vpop.f32.mrf.mxu1 }
 0x685   :  { %3581 = vst [vmem:[#allocation16 + $0x78] sm:$0xff] %v3499_v57  ;;  %v4072_v38 = vadd.f32 %v4071_v32, %v4070_v30 }
 0x686   :  { %v4073_v35 = vpop.f32.mrf.mxu1 }
 0x687   :  { %v3504_v23 = vadd.f32 %v4072_v38, %v5492_v31 }
 0x688   :  { %v4074_v40 = vpop.f32.mrf.mxu1 }
 0x689   :  { %3582 = vst [vmem:[#allocation16 + $0x80] sm:$0xff] %v3504_v23  ;;  %v4075_v25 = vadd.f32 %v4074_v40, %v4073_v35 }
 0x68a   :  { %v4076_v33 = vpop.f32.mrf.mxu1 }
 0x68b   :  { %v3507_v11 = vadd.f32 %v4075_v25, %v5492_v31 }
 0x68c   :  { %v4077_v37 = vpop.f32.mrf.mxu1 }
 0x68d   :  { %3583 = vst [vmem:[#allocation16 + $0x88] sm:$0xff] %v3507_v11  ;;  %v4078_v29 = vadd.f32 %v4077_v37, %v4076_v33 }
 0x68e   :  { %v4079_v39 = vpop.f32.mrf.mxu1 }
 0x68f   :  { %v3512_v42 = vadd.f32 %v4078_v29, %v5492_v31 }
 0x690   :  { %v4080_v43 = vpop.f32.mrf.mxu1 }
 0x691   :  { %3584 = vst [vmem:[#allocation16 + $0x90] sm:$0xff] %v3512_v42  ;;  %v4081_v45 = vadd.f32 %v4080_v43, %v4079_v39 }
 0x692   :  { %v4082_v48 = vpop.f32.mrf.mxu1 }
 0x693   :  { %v3515_v49 = vadd.f32 %v4081_v45, %v5492_v31 }
 0x694   :  { %v4083_v50 = vpop.f32.mrf.mxu1 }
 0x695   :  { %3585 = vst [vmem:[#allocation16 + $0x98] sm:$0xff] %v3515_v49  ;;  %v4084_v44 = vadd.f32 %v4083_v50, %v4082_v48 }
 0x696   :  { %v4085_v52 = vpop.f32.mrf.mxu1 }
 0x697   :  { %v3520_v21 = vadd.f32 %v4084_v44, %v5492_v31 }
 0x698   :  { %v4086_v46 = vpop.f32.mrf.mxu1 }
 0x699   :  { %3586 = vst [vmem:[#allocation16 + $0xa0] sm:$0xff] %v3520_v21  ;;  %v4087_v53 = vadd.f32 %v4086_v46, %v4085_v52 }
 0x69a   :  { %v4088_v36 = vpop.f32.mrf.mxu1 }
 0x69b   :  { %v3523_v54 = vadd.f32 %v4087_v53, %v5492_v31 }
 0x69c   :  { %v4089_v34 = vpop.f32.mrf.mxu1 }
 0x69d   :  { %3587 = vst [vmem:[#allocation16 + $0xa8] sm:$0xff] %v3523_v54  ;;  %v4090_v47 = vadd.f32 %v4089_v34, %v4088_v36 }
 0x69e   :  { %v4091_v56 = vpop.f32.mrf.mxu1 }
 0x69f   :  { %v3528_v58 = vadd.f32 %v4090_v47, %v5492_v31 }
 0x6a0   :  { %v4092_v60 = vpop.f32.mrf.mxu1 }
 0x6a1   :  { %3588 = vst [vmem:[#allocation16 + $0xb0] sm:$0xff] %v3528_v58  ;;  %v4093_v55 = vadd.f32 %v4092_v60, %v4091_v56 }
 0x6a2   :  { %v4094_v62 = vpop.f32.mrf.mxu1 }
 0x6a3   :  { %v3531_v63 = vadd.f32 %v4093_v55, %v5492_v31 }
 0x6a4   :  { %v4095_v1 = vpop.f32.mrf.mxu1 }
 0x6a5   :  { %3589 = vst [vmem:[#allocation16 + $0xb8] sm:$0xff] %v3531_v63  ;;  %v4096_v51 = vadd.f32 %v4095_v1, %v4094_v62 }
 0x6a6   :  { %v4097_v2 = vpop.f32.mrf.mxu1 }
 0x6a7   :  { %v3536_v3 = vadd.f32 %v4096_v51, %v5492_v31 }
 0x6a8   :  { %v4098_v5 = vpop.f32.mrf.mxu1 }
 0x6a9   :  { %3590 = vst [vmem:[#allocation16 + $0xc0] sm:$0xff] %v3536_v3  ;;  %v4099_v61 = vadd.f32 %v4098_v5, %v4097_v2 }
 0x6aa   :  { %v4100_v6 = vpop.f32.mrf.mxu1 }
 0x6ab   :  { %v3539_v7 = vadd.f32 %v4099_v61, %v5492_v31 }
 0x6ac   :  { %v4101_v8 = vpop.f32.mrf.mxu1 }
 0x6ad   :  { %3591 = vst [vmem:[#allocation16 + $0xc8] sm:$0xff] %v3539_v7  ;;  %v4102_v9 = vadd.f32 %v4101_v8, %v4100_v6 }
 0x6ae   :  { %v4103_v10 = vpop.f32.mrf.mxu1 }
 0x6af   :  { %v3544_v12 = vadd.f32 %v4102_v9, %v5492_v31 }
 0x6b0   :  { %v4104_v14 = vpop.f32.mrf.mxu1 }
 0x6b1   :  { %3592 = vst [vmem:[#allocation16 + $0xd0] sm:$0xff] %v3544_v12  ;;  %v4105_v0 = vadd.f32 %v4104_v14, %v4103_v10 }
 0x6b2   :  { %v4106_v15 = vpop.f32.mrf.mxu1 }
 0x6b3   :  { %v3547_v16 = vadd.f32 %v4105_v0, %v5492_v31 }
 0x6b4   :  { %v4107_v4 = vpop.f32.mrf.mxu1 }
 0x6b5   :  { %3593 = vst [vmem:[#allocation16 + $0xd8] sm:$0xff] %v3547_v16  ;;  %v4108_v41 = vadd.f32 %v4107_v4, %v4106_v15 }
 0x6b6   :  { %v4109_v18 = vpop.f32.mrf.mxu1 }
 0x6b7   :  { %v3552_v19 = vadd.f32 %v4108_v41, %v5492_v31 }
 0x6b8   :  { %v4110_v20 = vpop.f32.mrf.mxu1 }
 0x6b9   :  { %3594 = vst [vmem:[#allocation16 + $0xe0] sm:$0xff] %v3552_v19  ;;  %v4111_v22 = vadd.f32 %v4110_v20, %v4109_v18 }
 0x6ba   :  { %v4112_v59 = vpop.f32.mrf.mxu1 }
 0x6bb   :  { %v3555_v13 = vadd.f32 %v4111_v22, %v5492_v31 }
 0x6bc   :  { %v4113_v24 = vpop.f32.mrf.mxu1 }
 0x6bd   :  { %3595 = vst [vmem:[#allocation16 + $0xe8] sm:$0xff] %v3555_v13  ;;  %v4114_v17 = vadd.f32 %v4113_v24, %v4112_v59 }
 0x6be   :  { %v4115_v26 = vpop.f32.mrf.mxu1 }
 0x6bf   :  { %v3560_v27 = vadd.f32 %v4114_v17, %v5492_v31 }
 0x6c0   :  { %v4116_v28 = vpop.f32.mrf.mxu1 }
 0x6c1   :  { %3596 = vst [vmem:[#allocation16 + $0xf0] sm:$0xff] %v3560_v27  ;;  %v4117_v30 = vadd.f32 %v4116_v28, %v4115_v26 }
 0x6c3   :  { %v3563_v57 = vadd.f32 %v4117_v30, %v5492_v31 }
 0x6c5   :  { %3597 = vst [vmem:[#allocation16 + $0xf8] sm:$0xff] %v3563_v57 }
 0x6c6   :  { %4721 = shalt.err (!%p4718_p2)
}
 0x6c7   :  { %3609 = dma.vmem_to_hbm [thread:$0]  %s3604_s0, 4096, %s5547_s15, [#allocation4], %s4743_s21, %s4743_s21, %s4744_s22  }
 0x6c8   :  { %4740 = dma.done.wait [#allocation4], 4096  }
 0x6c9   :  { %4741 = vsyncadd [#allocation4], 4294963200 }
 0x6ca   :  { %3613 = vsyncpa [#allocation3], 1 }
 0x6cb   :  { %3614 = vsyncpa [#allocation6], 1 }
 0x6cc   :  { %3615 = vsyncpa [#allocation9], 1 }
 0x6cd   :  { %3616 = vsyncpa [#allocation12], 1 }
 0x6ce   :  { %3617 = vsyncpa [#allocation15], 1 }
 0x6cf   :  { %3618 = vsyncpa [#allocation4], 1 }

</bundles_post_ra>
